<compile_context>
chip_gen: v7x
topology: tpu7x:2x2x1
jax: 0.10.0
libtpu: 0.0.40
codegen_flags: <defaults>
</compile_context>

<pallas_src>
import numpy as np
import jax
import jax.numpy as jnp
from jax.experimental import pallas as pl
from jax.experimental.pallas import tpu as pltpu


def pimlp_kernel(x_ref, w1_ref, b1_ref, w2_ref, b2_ref, w3_ref, b3_ref,
                 freq_ref, amp_ref, phase_ref, fb_ref, o_ref):
    # ---- MLP trunk (transposed: batch on lanes) ----
    xt = x_ref[...]                                                           # (D_in, TB)
    h = jnp.dot(w1_ref[...], xt, preferred_element_type=jnp.float32) + b1_ref[...]
    h = jnp.maximum(h, 0.0)                                                   # (H1, TB)
    h = jnp.dot(w2_ref[...], h, preferred_element_type=jnp.float32) + b2_ref[...]
    h = jnp.maximum(h, 0.0)                                                   # (H2, TB)
    y = jnp.dot(w3_ref[...], h, preferred_element_type=jnp.float32) + b3_ref[...]  # (D_out, TB)

    # ---- fourierActivation, fully 2-D and lane-dense ----
    # out = sum_e amp[:, e] * sin(freq[:, e] * y + phase[:, e]) + bias
    E = freq_ref.shape[1]                       # static (block shape)
    acc = jnp.zeros_like(y)                     # (D_out, TB)
    for e in range(E):                          # unrolled: E is small & static
        f = freq_ref[:, e:e + 1]                # (D_out, 1) -> broadcast over lanes
        p = phase_ref[:, e:e + 1]
        a = amp_ref[:, e:e + 1]
        acc = acc + a * jnp.sin(f * y + p)
    o_ref[...] = acc + fb_ref[...]              # (D_out, TB), unmasked lane-dense store


def _full_spec(shape):
    nd = len(shape)
    return pl.BlockSpec(shape, lambda i, _nd=nd: (0,) * _nd)


def _pick_batch_tile(B):
    # >= 2 grid steps keeps both v7x TensorCores busy; tiles are multiples of 256
    # (v6e/v7x MXU granule, also a multiple of v5e's 128) and big enough to amortize
    # the ~0.35 us per-grid-step pipeline overhead.
    half = pl.cdiv(B, 2)
    tb = ((half + 255) // 256) * 256
    return int(min(2048, max(256, tb)))


def base_pimlp_forward(x, params, *, tb=None):
    """Pallas forward pass.  x: (B, D_in) float32.  Returns (B, D_out) float32."""
    B, d_in = x.shape
    w1, b1, w2, b2, w3, b3 = (params[k] for k in ("w1", "b1", "w2", "b2", "w3", "b3"))
    d_out = w3.shape[1]

    if tb is None:
        tb = _pick_batch_tile(B)
    assert tb % 128 == 0, "batch tile must be a multiple of 128 (lane width)"
    B_pad = pl.cdiv(B, tb) * tb

    # --- layout plumbing (wrapper side): batch on lanes everywhere ---
    x_t = jnp.pad(x.astype(jnp.float32).T, ((0, 0), (0, B_pad - B)))          # (D_in, B_pad)
    w1_t, w2_t, w3_t = w1.T, w2.T, w3.T                                       # (out, in)
    b1_c, b2_c, b3_c = b1.reshape(-1, 1), b2.reshape(-1, 1), b3.reshape(-1, 1)

    # --- fold Fourier constants once, in f32, in the wrapper ---
    freq = jnp.squeeze((2.0 * jnp.pi) * params["n"] / params["expL"], axis=0)  # (D_out, E)
    amp = jnp.squeeze(params["fw"] * params["invfact"], axis=0)                # (D_out, E)
    phase = jnp.squeeze(params["phase"], axis=0)                               # (D_out, E)
    fb_c = params["fb"].reshape(-1, 1)                                         # (D_out, 1)

    grid = (B_pad // tb,)
    in_specs = [pl.BlockSpec((d_in, tb), lambda i: (0, i))] + [
        _full_spec(a.shape)
        for a in (w1_t, b1_c, w2_t, b2_c, w3_t, b3_c, freq, amp, phase, fb_c)
    ]
    out_spec = pl.BlockSpec((d_out, tb), lambda i: (0, i))

    out_t = pl.pallas_call(
        pimlp_kernel,
        out_shape=jax.ShapeDtypeStruct((d_out, B_pad), jnp.float32),
        grid=grid,
        in_specs=in_specs,
        out_specs=out_spec,
        compiler_params=pltpu.CompilerParams(dimension_semantics=("parallel",)),
    )(x_t, w1_t, b1_c, w2_t, b2_c, w3_t, b3_c, freq, amp, phase, fb_c)

    return out_t[:, :B].T                                                      # (B, D_out)


def init_params(key, layers, expansion_order):
    """Deterministic synthetic parameters mirroring basePIMLP.__init__ shapes."""
    d_out = layers[-1]
    keys = jax.random.split(key, 12)
    params = {}

    # Linear layers (PyTorch-style uniform(-1/sqrt(fan_in), 1/sqrt(fan_in))).
    for li, (fan_in, fan_out) in enumerate(zip(layers[:-1], layers[1:]), start=1):
        bound = 1.0 / np.sqrt(fan_in)
        params[f"w{li}"] = jax.random.uniform(
            keys[2 * li - 2], (fan_in, fan_out), jnp.float32, -bound, bound)
        params[f"b{li}"] = jax.random.uniform(
            keys[2 * li - 1], (1, fan_out), jnp.float32, -bound, bound)

    # fourierActivation parameters.
    E = expansion_order
    n = (jnp.arange(E, dtype=jnp.float32) + 1.0)                    # 1..E
    logL = jax.random.normal(keys[6], (1, d_out, 1), jnp.float32)   # torch.randn(1, D, 1)
    expL = jnp.exp(logL)
    phase = jnp.pi * jax.random.uniform(keys[7], (1, d_out, E), jnp.float32)
    fw = jax.random.normal(keys[8], (d_out, E), jnp.float32) / expL  # -> (1, D, E), like torch
    fb = (jax.random.normal(keys[9], (1, d_out), jnp.float32) / d_out)
    invfact = jnp.exp(-jax.scipy.special.gammaln(n + 1.0))           # 1 / n!

    params["n"] = n.reshape(1, 1, E)
    params["invfact"] = invfact.reshape(1, 1, E)
    params["expL"] = expL
    params["phase"] = phase
    params["fw"] = fw
    params["fb"] = fb
    return params


def reference_forward(x, params):
    """Pure-JAX reference with identical semantics (for validation)."""
    h = jnp.maximum(x @ params["w1"] + params["b1"], 0.0)
    h = jnp.maximum(h @ params["w2"] + params["b2"], 0.0)
    y = h @ params["w3"] + params["b3"]
    arg = (2.0 * jnp.pi) * params["n"] * y[:, :, None] / params["expL"] + params["phase"]
    return jnp.sum(params["fw"] * jnp.sin(arg) * params["invfact"], axis=-1) + params["fb"]


if __name__ == "__main__":
    # layers = [D_in, H, H, D_out], Fourier expansion order E
    layers = [4, 32, 32, 2]
    expansion_order = 8
    batch = 512          # PINN collocation batch; tiled as 2 x 256 (both v7x cores)

    key = jax.random.PRNGKey(0)
    pkey, xkey = jax.random.split(key)
    params = init_params(pkey, layers, expansion_order)
    x = jax.random.normal(xkey, (batch, layers[0]), jnp.float32)

    out = jax.block_until_ready(base_pimlp_forward(x, params))

    assert out.shape == (batch, layers[-1])
    assert bool(jnp.all(jnp.isfinite(out)))

    ref = jax.block_until_ready(reference_forward(x, params))
    np.testing.assert_allclose(np.asarray(out), np.asarray(ref), rtol=2e-2, atol=2e-2)

    print("KERNEL_OK")
</pallas_src>

<mosaic_0001>
module attributes {stable_mosaic.version = 11 : i64} {
  func.func @pimlp_kernel(%arg0: i32, %arg1: memref<4x256xf32, #tpu.memory_space<vmem>>, %arg2: memref<32x4xf32, #tpu.memory_space<vmem>>, %arg3: memref<32x1xf32, #tpu.memory_space<vmem>>, %arg4: memref<32x32xf32, #tpu.memory_space<vmem>>, %arg5: memref<32x1xf32, #tpu.memory_space<vmem>>, %arg6: memref<2x32xf32, #tpu.memory_space<vmem>>, %arg7: memref<2x1xf32, #tpu.memory_space<vmem>>, %arg8: memref<2x8xf32, #tpu.memory_space<vmem>>, %arg9: memref<2x8xf32, #tpu.memory_space<vmem>>, %arg10: memref<2x8xf32, #tpu.memory_space<vmem>>, %arg11: memref<2x1xf32, #tpu.memory_space<vmem>>, %arg12: memref<2x256xf32, #tpu.memory_space<vmem>>) attributes {dimension_semantics = [#tpu.dimension_semantics<parallel>], iteration_bounds = array<i64: 2>, scalar_prefetch = 0 : i64, scratch_operands = 0 : i64, tpu.core_type = #tpu.core_type<tc>, window_params = [{transform_indices = @transform_0, window_bounds = array<i64: 4, 256>}, {pipeline_mode = #tpu.pipeline_mode<synchronous>, transform_indices = @transform_1, window_bounds = array<i64: 32, 4>}, {pipeline_mode = #tpu.pipeline_mode<synchronous>, transform_indices = @transform_2, window_bounds = array<i64: 32, 1>}, {pipeline_mode = #tpu.pipeline_mode<synchronous>, transform_indices = @transform_3, window_bounds = array<i64: 32, 32>}, {pipeline_mode = #tpu.pipeline_mode<synchronous>, transform_indices = @transform_4, window_bounds = array<i64: 32, 1>}, {pipeline_mode = #tpu.pipeline_mode<synchronous>, transform_indices = @transform_5, window_bounds = array<i64: 2, 32>}, {pipeline_mode = #tpu.pipeline_mode<synchronous>, transform_indices = @transform_6, window_bounds = array<i64: 2, 1>}, {pipeline_mode = #tpu.pipeline_mode<synchronous>, transform_indices = @transform_7, window_bounds = array<i64: 2, 8>}, {pipeline_mode = #tpu.pipeline_mode<synchronous>, transform_indices = @transform_8, window_bounds = array<i64: 2, 8>}, {pipeline_mode = #tpu.pipeline_mode<synchronous>, transform_indices = @transform_9, window_bounds = array<i64: 2, 8>}, {pipeline_mode = #tpu.pipeline_mode<synchronous>, transform_indices = @transform_10, window_bounds = array<i64: 2, 1>}, {transform_indices = @transform_11, window_bounds = array<i64: 2, 256>}]} {
    %c0 = arith.constant 0 : index
    %c0_0 = arith.constant 0 : index
    %0 = vector.load %arg1[%c0, %c0_0] : memref<4x256xf32, #tpu.memory_space<vmem>>, vector<4x256xf32>
    %c0_1 = arith.constant 0 : index
    %c0_2 = arith.constant 0 : index
    %1 = vector.load %arg2[%c0_1, %c0_2] : memref<32x4xf32, #tpu.memory_space<vmem>>, vector<32x4xf32>
    %cst = arith.constant dense<0.000000e+00> : vector<32x256xf32>
    %2 = tpu.matmul %1, %0, %cst {dimension_numbers = #tpu.dot_dimension_numbers<[1], [0], [0], [1], [0, 0, 1, 1], [], []>} : vector<32x4xf32>, vector<4x256xf32>, vector<32x256xf32> -> vector<32x256xf32>
    %c0_3 = arith.constant 0 : index
    %c0_4 = arith.constant 0 : index
    %3 = vector.load %arg3[%c0_3, %c0_4] : memref<32x1xf32, #tpu.memory_space<vmem>>, vector<32x1xf32>
    %4 = vector.broadcast %3 : vector<32x1xf32> to vector<32x256xf32>
    %5 = arith.addf %2, %4 : vector<32x256xf32>
    %cst_5 = arith.constant 0.000000e+00 : f32
    %6 = vector.broadcast %cst_5 : f32 to vector<32x256xf32>
    %7 = arith.maximumf %5, %6 : vector<32x256xf32>
    %c0_6 = arith.constant 0 : index
    %c0_7 = arith.constant 0 : index
    %8 = vector.load %arg4[%c0_6, %c0_7] : memref<32x32xf32, #tpu.memory_space<vmem>>, vector<32x32xf32>
    %cst_8 = arith.constant dense<0.000000e+00> : vector<32x256xf32>
    %9 = tpu.matmul %8, %7, %cst_8 {dimension_numbers = #tpu.dot_dimension_numbers<[1], [0], [0], [1], [0, 0, 1, 1], [], []>} : vector<32x32xf32>, vector<32x256xf32>, vector<32x256xf32> -> vector<32x256xf32>
    %c0_9 = arith.constant 0 : index
    %c0_10 = arith.constant 0 : index
    %10 = vector.load %arg5[%c0_9, %c0_10] : memref<32x1xf32, #tpu.memory_space<vmem>>, vector<32x1xf32>
    %11 = vector.broadcast %10 : vector<32x1xf32> to vector<32x256xf32>
    %12 = arith.addf %9, %11 : vector<32x256xf32>
    %cst_11 = arith.constant 0.000000e+00 : f32
    %13 = vector.broadcast %cst_11 : f32 to vector<32x256xf32>
    %14 = arith.maximumf %12, %13 : vector<32x256xf32>
    %c0_12 = arith.constant 0 : index
    %c0_13 = arith.constant 0 : index
    %15 = vector.load %arg6[%c0_12, %c0_13] : memref<2x32xf32, #tpu.memory_space<vmem>>, vector<2x32xf32>
    %cst_14 = arith.constant dense<0.000000e+00> : vector<2x256xf32>
    %16 = tpu.matmul %15, %14, %cst_14 {dimension_numbers = #tpu.dot_dimension_numbers<[1], [0], [0], [1], [0, 0, 1, 1], [], []>} : vector<2x32xf32>, vector<32x256xf32>, vector<2x256xf32> -> vector<2x256xf32>
    %c0_15 = arith.constant 0 : index
    %c0_16 = arith.constant 0 : index
    %17 = vector.load %arg7[%c0_15, %c0_16] : memref<2x1xf32, #tpu.memory_space<vmem>>, vector<2x1xf32>
    %18 = vector.broadcast %17 : vector<2x1xf32> to vector<2x256xf32>
    %19 = arith.addf %16, %18 : vector<2x256xf32>
    %cst_17 = arith.constant 0.000000e+00 : f32
    %20 = vector.broadcast %cst_17 : f32 to vector<2x256xf32>
    %c0_18 = arith.constant 0 : index
    %c0_19 = arith.constant 0 : index
    %21 = vector.load %arg8[%c0_18, %c0_19] : memref<2x8xf32, #tpu.memory_space<vmem>>, vector<2x1xf32>
    %c0_20 = arith.constant 0 : index
    %c0_21 = arith.constant 0 : index
    %22 = vector.load %arg10[%c0_20, %c0_21] : memref<2x8xf32, #tpu.memory_space<vmem>>, vector<2x1xf32>
    %c0_22 = arith.constant 0 : index
    %c0_23 = arith.constant 0 : index
    %23 = vector.load %arg9[%c0_22, %c0_23] : memref<2x8xf32, #tpu.memory_space<vmem>>, vector<2x1xf32>
    %24 = vector.broadcast %21 : vector<2x1xf32> to vector<2x256xf32>
    %25 = arith.mulf %24, %19 : vector<2x256xf32>
    %26 = vector.broadcast %22 : vector<2x1xf32> to vector<2x256xf32>
    %27 = arith.addf %25, %26 : vector<2x256xf32>
    %28 = math.sin %27 : vector<2x256xf32>
    %29 = vector.broadcast %23 : vector<2x1xf32> to vector<2x256xf32>
    %30 = arith.mulf %29, %28 : vector<2x256xf32>
    %31 = arith.addf %20, %30 : vector<2x256xf32>
    %c0_24 = arith.constant 0 : index
    %c1 = arith.constant 1 : index
    %32 = vector.load %arg8[%c0_24, %c1] : memref<2x8xf32, #tpu.memory_space<vmem>>, vector<2x1xf32>
    %c0_25 = arith.constant 0 : index
    %c1_26 = arith.constant 1 : index
    %33 = vector.load %arg10[%c0_25, %c1_26] : memref<2x8xf32, #tpu.memory_space<vmem>>, vector<2x1xf32>
    %c0_27 = arith.constant 0 : index
    %c1_28 = arith.constant 1 : index
    %34 = vector.load %arg9[%c0_27, %c1_28] : memref<2x8xf32, #tpu.memory_space<vmem>>, vector<2x1xf32>
    %35 = vector.broadcast %32 : vector<2x1xf32> to vector<2x256xf32>
    %36 = arith.mulf %35, %19 : vector<2x256xf32>
    %37 = vector.broadcast %33 : vector<2x1xf32> to vector<2x256xf32>
    %38 = arith.addf %36, %37 : vector<2x256xf32>
    %39 = math.sin %38 : vector<2x256xf32>
    %40 = vector.broadcast %34 : vector<2x1xf32> to vector<2x256xf32>
    %41 = arith.mulf %40, %39 : vector<2x256xf32>
    %42 = arith.addf %31, %41 : vector<2x256xf32>
    %c0_29 = arith.constant 0 : index
    %c2 = arith.constant 2 : index
    %43 = vector.load %arg8[%c0_29, %c2] : memref<2x8xf32, #tpu.memory_space<vmem>>, vector<2x1xf32>
    %c0_30 = arith.constant 0 : index
    %c2_31 = arith.constant 2 : index
    %44 = vector.load %arg10[%c0_30, %c2_31] : memref<2x8xf32, #tpu.memory_space<vmem>>, vector<2x1xf32>
    %c0_32 = arith.constant 0 : index
    %c2_33 = arith.constant 2 : index
    %45 = vector.load %arg9[%c0_32, %c2_33] : memref<2x8xf32, #tpu.memory_space<vmem>>, vector<2x1xf32>
    %46 = vector.broadcast %43 : vector<2x1xf32> to vector<2x256xf32>
    %47 = arith.mulf %46, %19 : vector<2x256xf32>
    %48 = vector.broadcast %44 : vector<2x1xf32> to vector<2x256xf32>
    %49 = arith.addf %47, %48 : vector<2x256xf32>
    %50 = math.sin %49 : vector<2x256xf32>
    %51 = vector.broadcast %45 : vector<2x1xf32> to vector<2x256xf32>
    %52 = arith.mulf %51, %50 : vector<2x256xf32>
    %53 = arith.addf %42, %52 : vector<2x256xf32>
    %c0_34 = arith.constant 0 : index
    %c3 = arith.constant 3 : index
    %54 = vector.load %arg8[%c0_34, %c3] : memref<2x8xf32, #tpu.memory_space<vmem>>, vector<2x1xf32>
    %c0_35 = arith.constant 0 : index
    %c3_36 = arith.constant 3 : index
    %55 = vector.load %arg10[%c0_35, %c3_36] : memref<2x8xf32, #tpu.memory_space<vmem>>, vector<2x1xf32>
    %c0_37 = arith.constant 0 : index
    %c3_38 = arith.constant 3 : index
    %56 = vector.load %arg9[%c0_37, %c3_38] : memref<2x8xf32, #tpu.memory_space<vmem>>, vector<2x1xf32>
    %57 = vector.broadcast %54 : vector<2x1xf32> to vector<2x256xf32>
    %58 = arith.mulf %57, %19 : vector<2x256xf32>
    %59 = vector.broadcast %55 : vector<2x1xf32> to vector<2x256xf32>
    %60 = arith.addf %58, %59 : vector<2x256xf32>
    %61 = math.sin %60 : vector<2x256xf32>
    %62 = vector.broadcast %56 : vector<2x1xf32> to vector<2x256xf32>
    %63 = arith.mulf %62, %61 : vector<2x256xf32>
    %64 = arith.addf %53, %63 : vector<2x256xf32>
    %c0_39 = arith.constant 0 : index
    %c4 = arith.constant 4 : index
    %65 = vector.load %arg8[%c0_39, %c4] : memref<2x8xf32, #tpu.memory_space<vmem>>, vector<2x1xf32>
    %c0_40 = arith.constant 0 : index
    %c4_41 = arith.constant 4 : index
    %66 = vector.load %arg10[%c0_40, %c4_41] : memref<2x8xf32, #tpu.memory_space<vmem>>, vector<2x1xf32>
    %c0_42 = arith.constant 0 : index
    %c4_43 = arith.constant 4 : index
    %67 = vector.load %arg9[%c0_42, %c4_43] : memref<2x8xf32, #tpu.memory_space<vmem>>, vector<2x1xf32>
    %68 = vector.broadcast %65 : vector<2x1xf32> to vector<2x256xf32>
    %69 = arith.mulf %68, %19 : vector<2x256xf32>
    %70 = vector.broadcast %66 : vector<2x1xf32> to vector<2x256xf32>
    %71 = arith.addf %69, %70 : vector<2x256xf32>
    %72 = math.sin %71 : vector<2x256xf32>
    %73 = vector.broadcast %67 : vector<2x1xf32> to vector<2x256xf32>
    %74 = arith.mulf %73, %72 : vector<2x256xf32>
    %75 = arith.addf %64, %74 : vector<2x256xf32>
    %c0_44 = arith.constant 0 : index
    %c5 = arith.constant 5 : index
    %76 = vector.load %arg8[%c0_44, %c5] : memref<2x8xf32, #tpu.memory_space<vmem>>, vector<2x1xf32>
    %c0_45 = arith.constant 0 : index
    %c5_46 = arith.constant 5 : index
    %77 = vector.load %arg10[%c0_45, %c5_46] : memref<2x8xf32, #tpu.memory_space<vmem>>, vector<2x1xf32>
    %c0_47 = arith.constant 0 : index
    %c5_48 = arith.constant 5 : index
    %78 = vector.load %arg9[%c0_47, %c5_48] : memref<2x8xf32, #tpu.memory_space<vmem>>, vector<2x1xf32>
    %79 = vector.broadcast %76 : vector<2x1xf32> to vector<2x256xf32>
    %80 = arith.mulf %79, %19 : vector<2x256xf32>
    %81 = vector.broadcast %77 : vector<2x1xf32> to vector<2x256xf32>
    %82 = arith.addf %80, %81 : vector<2x256xf32>
    %83 = math.sin %82 : vector<2x256xf32>
    %84 = vector.broadcast %78 : vector<2x1xf32> to vector<2x256xf32>
    %85 = arith.mulf %84, %83 : vector<2x256xf32>
    %86 = arith.addf %75, %85 : vector<2x256xf32>
    %c0_49 = arith.constant 0 : index
    %c6 = arith.constant 6 : index
    %87 = vector.load %arg8[%c0_49, %c6] : memref<2x8xf32, #tpu.memory_space<vmem>>, vector<2x1xf32>
    %c0_50 = arith.constant 0 : index
    %c6_51 = arith.constant 6 : index
    %88 = vector.load %arg10[%c0_50, %c6_51] : memref<2x8xf32, #tpu.memory_space<vmem>>, vector<2x1xf32>
    %c0_52 = arith.constant 0 : index
    %c6_53 = arith.constant 6 : index
    %89 = vector.load %arg9[%c0_52, %c6_53] : memref<2x8xf32, #tpu.memory_space<vmem>>, vector<2x1xf32>
    %90 = vector.broadcast %87 : vector<2x1xf32> to vector<2x256xf32>
    %91 = arith.mulf %90, %19 : vector<2x256xf32>
    %92 = vector.broadcast %88 : vector<2x1xf32> to vector<2x256xf32>
    %93 = arith.addf %91, %92 : vector<2x256xf32>
    %94 = math.sin %93 : vector<2x256xf32>
    %95 = vector.broadcast %89 : vector<2x1xf32> to vector<2x256xf32>
    %96 = arith.mulf %95, %94 : vector<2x256xf32>
    %97 = arith.addf %86, %96 : vector<2x256xf32>
    %c0_54 = arith.constant 0 : index
    %c7 = arith.constant 7 : index
    %98 = vector.load %arg8[%c0_54, %c7] : memref<2x8xf32, #tpu.memory_space<vmem>>, vector<2x1xf32>
    %c0_55 = arith.constant 0 : index
    %c7_56 = arith.constant 7 : index
    %99 = vector.load %arg10[%c0_55, %c7_56] : memref<2x8xf32, #tpu.memory_space<vmem>>, vector<2x1xf32>
    %c0_57 = arith.constant 0 : index
    %c7_58 = arith.constant 7 : index
    %100 = vector.load %arg9[%c0_57, %c7_58] : memref<2x8xf32, #tpu.memory_space<vmem>>, vector<2x1xf32>
    %101 = vector.broadcast %98 : vector<2x1xf32> to vector<2x256xf32>
    %102 = arith.mulf %101, %19 : vector<2x256xf32>
    %103 = vector.broadcast %99 : vector<2x1xf32> to vector<2x256xf32>
    %104 = arith.addf %102, %103 : vector<2x256xf32>
    %105 = math.sin %104 : vector<2x256xf32>
    %106 = vector.broadcast %100 : vector<2x1xf32> to vector<2x256xf32>
    %107 = arith.mulf %106, %105 : vector<2x256xf32>
    %108 = arith.addf %97, %107 : vector<2x256xf32>
    %c0_59 = arith.constant 0 : index
    %c0_60 = arith.constant 0 : index
    %109 = vector.load %arg11[%c0_59, %c0_60] : memref<2x1xf32, #tpu.memory_space<vmem>>, vector<2x1xf32>
    %110 = vector.broadcast %109 : vector<2x1xf32> to vector<2x256xf32>
    %111 = arith.addf %108, %110 : vector<2x256xf32>
    %c0_61 = arith.constant 0 : index
    %c0_62 = arith.constant 0 : index
    %112 = vector.load %arg12[%c0_61, %c0_62] : memref<2x256xf32, #tpu.memory_space<vmem>>, vector<2x256xf32>
    tpu.vector_store %arg12[%c0_61, %c0_62], %111 {strides = array<i32>} : memref<2x256xf32, #tpu.memory_space<vmem>>, vector<2x256xf32>,
    return
  }
  func.func @transform_0(%arg0: i32) -> (i32, i32) {
    %c0_i32 = arith.constant 0 : i32
    %c0_i32_0 = arith.constant 0 : i32
    return %c0_i32, %arg0 : i32, i32
  }
  func.func @transform_1(%arg0: i32) -> (i32, i32) {
    %c0_i32 = arith.constant 0 : i32
    %c0_i32_0 = arith.constant 0 : i32
    %c0_i32_1 = arith.constant 0 : i32
    return %c0_i32, %c0_i32_0 : i32, i32
  }
  func.func @transform_2(%arg0: i32) -> (i32, i32) {
    %c0_i32 = arith.constant 0 : i32
    %c0_i32_0 = arith.constant 0 : i32
    %c0_i32_1 = arith.constant 0 : i32
    return %c0_i32, %c0_i32_0 : i32, i32
  }
  func.func @transform_3(%arg0: i32) -> (i32, i32) {
    %c0_i32 = arith.constant 0 : i32
    %c0_i32_0 = arith.constant 0 : i32
    %c0_i32_1 = arith.constant 0 : i32
    return %c0_i32, %c0_i32_0 : i32, i32
  }
  func.func @transform_4(%arg0: i32) -> (i32, i32) {
    %c0_i32 = arith.constant 0 : i32
    %c0_i32_0 = arith.constant 0 : i32
    %c0_i32_1 = arith.constant 0 : i32
    return %c0_i32, %c0_i32_0 : i32, i32
  }
  func.func @transform_5(%arg0: i32) -> (i32, i32) {
    %c0_i32 = arith.constant 0 : i32
    %c0_i32_0 = arith.constant 0 : i32
    %c0_i32_1 = arith.constant 0 : i32
    return %c0_i32, %c0_i32_0 : i32, i32
  }
  func.func @transform_6(%arg0: i32) -> (i32, i32) {
    %c0_i32 = arith.constant 0 : i32
    %c0_i32_0 = arith.constant 0 : i32
    %c0_i32_1 = arith.constant 0 : i32
    return %c0_i32, %c0_i32_0 : i32, i32
  }
  func.func @transform_7(%arg0: i32) -> (i32, i32) {
    %c0_i32 = arith.constant 0 : i32
    %c0_i32_0 = arith.constant 0 : i32
    %c0_i32_1 = arith.constant 0 : i32
    return %c0_i32, %c0_i32_0 : i32, i32
  }
  func.func @transform_8(%arg0: i32) -> (i32, i32) {
    %c0_i32 = arith.constant 0 : i32
    %c0_i32_0 = arith.constant 0 : i32
    %c0_i32_1 = arith.constant 0 : i32
    return %c0_i32, %c0_i32_0 : i32, i32
  }
  func.func @transform_9(%arg0: i32) -> (i32, i32) {
    %c0_i32 = arith.constant 0 : i32
    %c0_i32_0 = arith.constant 0 : i32
    %c0_i32_1 = arith.constant 0 : i32
    return %c0_i32, %c0_i32_0 : i32, i32
  }
  func.func @transform_10(%arg0: i32) -> (i32, i32) {
    %c0_i32 = arith.constant 0 : i32
    %c0_i32_0 = arith.constant 0 : i32
    %c0_i32_1 = arith.constant 0 : i32
    return %c0_i32, %c0_i32_0 : i32, i32
  }
  func.func @transform_11(%arg0: i32) -> (i32, i32) {
    %c0_i32 = arith.constant 0 : i32
    %c0_i32_0 = arith.constant 0 : i32
    return %c0_i32, %arg0 : i32, i32
  }
}

</mosaic_0001>

<bundles_post_ra>
// kernel: tpu_custom_call.1
= control target key start
LH: loop header
LB: loop body
LE: loop exit
PB: predicated region body
PF: predicated region fallthrough
CT: control target
= control target key end

     0   :  { %16 = vsyncpa [#allocation3], 0  ;;  %s5569_s0 = inlined_call_operand.vmem [shape: f32[4,512], index: 0, kind: input, shape index: {}]   ;;  %s5570_s1 = inlined_call_operand.vmem [shape: f32[32,4], index: 1, kind: input, shape index: {}]   ;;  %s5571_s2 = inlined_call_operand.vmem [shape: f32[32,1], index: 2, kind: input, shape index: {}]   ;;  %s5572_s3 = inlined_call_operand.vmem [shape: f32[32,32], index: 3, kind: input, shape index: {}]   ;;  %s5573_s4 = inlined_call_operand.vmem [shape: f32[32,1], index: 4, kind: input, shape index: {}]   ;;  %s5574_s5 = inlined_call_operand.vmem [shape: f32[2,32], index: 5, kind: input, shape index: {}]   ;;  %s5575_s6 = inlined_call_operand.vmem [shape: f32[2,1], index: 6, kind: input, shape index: {}]   ;;  %s5576_s7 = inlined_call_operand.vmem [shape: f32[2,8], index: 7, kind: input, shape index: {}]   ;;  %s5577_s8 = inlined_call_operand.vmem [shape: f32[2,8], index: 8, kind: input, shape index: {}]   ;;  %s5578_s9 = inlined_call_operand.vmem [shape: f32[2,8], index: 9, kind: input, shape index: {}]   ;;  %s5579_s10 = inlined_call_operand.vmem [shape: f32[2,1], index: 10, kind: input, shape index: {}]   ;;  %s5580_s11 = inlined_call_operand.hbm [shape: f32[2,512], index: 11, kind: output, shape index: {}]  }
   0x1   :  { %18 = vsyncpa [#allocation3 + $0x1], 0  ;;  %s3129_s17 = smov 0   ;;  %s3131_s18 = smov 0  }
   0x2   :  { %s3133_s19 = smov 0   ;;  %s3135_s20 = smov 0  }
   0x3 LB: > { %s3150_s21 = sadd.s32 4294967295, %s3051_s20   ;;  %s2677_s22 = sadd.s32 4294967294, %s3051_s20   ;;  %s3051_s20 = sphi %s3135_s20, %s5846_s20   ;;  %s3047_s19 = sphi %s3133_s19, %s5845_s19   ;;  %s3043_s18 = sphi %s3131_s18, %s5844_s18   ;;  %s3039_s17 = sphi %s3129_s17, %s5843_s17  }
   0x4   : > { %s3154_s23 = sadd.s32 1, %s3051_s20   ;;  %s267_s24 = sadd.s32 1, %s3047_s19 }
   0x5   : > { %s264_s25 = ssub.s32 %s3051_s20, %s3154_s23  ;;  %p277_p0 = scmp.ne.s32.totalorder %s3047_s19, %s3043_s18 }
   0x6   : > { %p265_p1 = scmp.eq.s32.totalorder %s264_s25, 0  ;;  %p278_p2 = scmp.eq.s32.totalorder %s3150_s21, 1 }
   0x7   : > { %p283_p3 = scmp.ne.s32.totalorder %s3043_s18, %s3039_s17  ;;  %p284_p4 = scmp.eq.s32.totalorder %s2677_s22, 1 }
   0x8   : > { %s3165_s26 = scalar_select %p265_p1, %s3047_s19, %s267_s24  }
   0x9   : > { %p3167_p5 = por %p278_p2, %p277_p0  ;;  %p3171_p6 = por %p284_p4, %p283_p3 }
   0xa   : > { %5671 = sst [smem:[#allocation5_spill]] %s3165_s26  ;;  %p2680_p7 = scmp.ge.s32.totalorder %s3051_s20, 1 }
   0xb   : > { %p341_p8 = scmp.lt.s32.totalorder %s3051_s20, 3 }
   0xd   : > { %p342_p9 = pnand %p2680_p7, %p341_p8 }
   0xf   : > { %345 = sbr.rel (%p342_p9) target bundleno = 1159 (0x487), region = 64 }
  0x16   : > { %s2682_s29 = sshll.u32 %s3150_s21, 1  ;;  %v3053_v0 = vmov 0.0   ;;  %v395_v1 = vld [vmem:[%s5571_s2 + $0x10] sm:$0xff]  ;;  %v3054_v2 = vmov 0   ;;  %v393_v3 = vld [vmem:[%s5571_s2] sm:$0xff]  ;;  %v396_v4 = vld [vmem:[%s5571_s2 + $0x18] sm:$0xff] }
  0x17   : > { %p382_p10 = scmp.lt.s32.totalorder %s2682_s29, 3  ;;  %501 = vmatprep.mubr.f32.mxu0 %v3053_v0  ;;  %639 = vmatprep.mubr.f32.mxu1 %v3053_v0  ;;  %v394_v5 = vld [vmem:[%s5571_s2 + $0x8] sm:$0xff]  ;;  %vm432_vm0 = vcmask 1043456   ;;  %v389_v9 = vld [vmem:[%s5570_s1] sm:$0xff]  ;;  %vm419_vm1 = vcmask 31744   ;;  %v541_v11 = vld [vmem:[%s5573_s4 + $0x18] sm:$0xff] }
  0x18   : > { %2901 = vset.pattern.permute.xlu1 %v3054_v2  ;;  %2900 = vset.pattern.permute.xlu0 %v3054_v2  ;;  %v539_v8 = vld [vmem:[%s5573_s4 + $0x8] sm:$0xff]  ;;  %v538_v10 = vld [vmem:[%s5573_s4] sm:$0xff]  ;;  %v540_v13 = vld [vmem:[%s5573_s4 + $0x10] sm:$0xff]  ;;  %vm562_vm2 = vcmask 261120   ;;  %v3055_v55 = vmov 1   ;;  %v3056_v56 = vmov 2  }
  0x19   : > { %s5848_s29 = smov (!%p382_p10, %s2682_s29), 3  ;;  %409 = vperm.xlu1 %2901, %v395_v1   ;;  %399 = vperm.xlu0 %2900, %v393_v3   ;;  %v390_v12 = vld [vmem:[%s5570_s1 + $0x8] sm:$0xff]  ;;  %v3221_v14 = vld [vmem:[%s5576_s7] sm:$0x3]  ;;  %v391_v15 = vld [vmem:[%s5570_s1 + $0x10] sm:$0xff]  ;;  %v3057_v57 = vmov 3  }
  0x1a   : > { %s2683_s25 = sshll.u32 %s5848_s29, 2  ;;  %v673_v16 = vld [vmem:[%s5575_s6] sm:$0x3]  ;;  %v392_v18 = vld [vmem:[%s5570_s1 + $0x18] sm:$0xff]  ;;  %v535_v52 = vld [vmem:[%s5572_s3 + $0x8] sm:$0xff]  ;;  %v3058_v58 = vmov 4  }
  0x1b   : > { %s385_s26 = scalar_lea.vmem %s5569_s0, %s2683_s25  ;;  %v3235_v17 = vld [vmem:[%s5578_s9] sm:$0x3]  ;;  %v536_v53 = vld [vmem:[%s5572_s3 + $0x10] sm:$0xff]  ;;  %v537_v54 = vld [vmem:[%s5572_s3 + $0x18] sm:$0xff]  ;;  %v3059_v59 = vmov 5   ;;  %v3060_v60 = vmov 6  }
  0x1c   : > { %v388_v6 = vld [vmem:[%s385_s26] sm:$0xff]  ;;  %v3061_v62 = vmov 7   ;;  %s378_s16 = sand.u32 1, %s3043_s18   ;;  %s2765_s29 = sshll.u32 %s3150_s21, 6 }
  0x1d   : > { %414 = vperm.xlu1 %2901, %v396_v4   ;;  %404 = vperm.xlu0 %2900, %v394_v5   ;;  %v418_v7 = vcombine.high %v388_v6, %v388_v6  ;;  %v534_v51 = vld [vmem:[%s5572_s3] sm:$0xff]  ;;  %s2681_s22 = sshll.u32 %s378_s16, 2  ;;  %s5527_s12 = scalar_lea.hbm %s5580_s11, %s2765_s29 }
  0x1e   : > { %v755_v61 = vld [vmem:[%s5577_s8] sm:$0x3]  ;;  %s380_s26 = scalar_lea.vmem [#allocation2], %s2681_s22  ;;  %s2604_s13 = scalar_lea.sflag [#allocation3], %s378_s16 }
  0x1f   : > { %2684 = vmatprep.subr.msk.mxu0 %vm432_vm0, %v418_v7  ;;  %v2583_v63 = vld [vmem:[%s5579_s10] sm:$0x3]  ;;  %s2618_s24 = sshll.u32 %s380_s26, 4  ;;  %s3068_s21 = smov [#allocation2]   ;;  %s5529_s24 = int_to_ptr.vmem [resolvable:$true] %s2618_s24 }
  0x20   : > { %2685 = vmatpush1.msk.msra.mxu0 %vm432_vm0, %v388_v6  ;;  %s2989_s14 = scalar_lea.vmem %s5529_s24, 64  ;;  %s2993_s15 = sshll.u32 %s3068_s21, 4  ;;  %s2994_s15 = int_to_ptr.vmem [resolvable:$false] %s2993_s15 }
  0x21   : > { %549 = vperm.xlu1 %2901, %v539_v8   ;;  %2686 = vmatmul.mubr.msk.f32.vlgmr.msra.gmra.mrb[0].mxu0 %vm419_vm1, %v389_v9  ;;  %p2990_p11 = scmp.ne.s32.totalorder %s5529_s24, %s2989_s14  ;;  %s2995_s22 = scalar_lea.vmem %s2994_s15, 128 }
  0x22   : > { %544 = vperm.xlu0 %2900, %v538_v10   ;;  %507 = vmatprep.mubr.f32.mxu0 %v3053_v0  ;;  %p2996_p0 = scmp.lt.s32.totalorder %s5529_s24, %s2994_s15  ;;  %p2997_p1 = scmp.lt.s32.totalorder %s2995_s22, %s2989_s14 }
  0x23   : > { %p2991_p12 = pnand %p2990_p11, %p3167_p5 }
  0x24   : > { %p2998_p2 = por %p2997_p1, %p2996_p0 }
  0x25   : > { %559 = vperm.xlu1 %2901, %v541_v11   ;;  %2687 = vmatmul.mubr.msk.f32.gmra.mrb[2].mxu0 %vm419_vm1, %v390_v12  ;;  %p2992_p13 = pneg %p2991_p12 }
  0x26   : > { %554 = vperm.xlu0 %2900, %v540_v13   ;;  %513 = vmatprep.mubr.f32.mxu0 %v3053_v0 }
  0x27   : > { %p2999_p3 = pnand %p2998_p2, %p2992_p13 }
  0x29   : > { %758 = vperm.xlu1 %2901, %v3221_v14   ;;  %2688 = vmatmul.mubr.msk.f32.gmra.mrb[4].mxu0 %vm419_vm1, %v391_v15 }
  0x2a   : > { %676 = vperm.xlu0 %2900, %v673_v16   ;;  %519 = vmatprep.mubr.f32.mxu0 %v3053_v0 }
  0x2d   : > { %765 = vperm.xlu1 %2901, %v3235_v17   ;;  %2689 = vmatmul.mubr.msk.f32.gmra.mrb[6].mxu0 %vm419_vm1, %v392_v18 }
  0x2e   : > { %746 = vmatprep.mubr.f32.mxu0 %v3053_v0  ;;  %2902 = vset.pattern.permute.xlu0 %v3055_v55 }
  0x2f   : > { %988 = vperm.xlu0 %2902, %v3221_v14  }
  0x31   : > { %2903 = vset.pattern.permute.xlu1 %v3055_v55 }
  0x32   : > { %994 = vperm.xlu1 %2903, %v3235_v17  }
  0x33   : > { %2904 = vset.pattern.permute.xlu0 %v3056_v56 }
  0x34   : > { %1216 = vperm.xlu0 %2904, %v3221_v14  }
  0x36   : > { %2905 = vset.pattern.permute.xlu1 %v3056_v56 }
  0x37   : > { %1222 = vperm.xlu1 %2905, %v3235_v17  }
  0x38   : > { %2907 = vset.pattern.permute.xlu0 %v3057_v57 }
  0x39   : > { %1450 = vperm.xlu0 %2907, %v3235_v17  }
  0x3b   : > { %2906 = vset.pattern.permute.xlu1 %v3057_v57 }
  0x3c   : > { %1444 = vperm.xlu1 %2906, %v3221_v14  }
  0x3d   : > { %2909 = vset.pattern.permute.xlu0 %v3059_v59 }
  0x3e   : > { %1900 = vperm.xlu0 %2909, %v3221_v14  }
  0x40   : > { %2908 = vset.pattern.permute.xlu1 %v3058_v58 }
  0x41   : > { %1672 = vperm.xlu1 %2908, %v3221_v14  }
  0x42   : > { %2912 = vset.pattern.permute.xlu0 %v3060_v60 }
  0x43   : > { %2134 = vperm.xlu0 %2912, %v3235_v17  }
  0x45   : > { %1678 = vperm.xlu1 %2908, %v3235_v17  }
  0x47   : > { %2914 = vset.pattern.permute.xlu0 %v3054_v2 }
  0x48   : > { %980 = vperm.xlu0 %2914, %v755_v61  }
  0x49   : > { %2910 = vset.pattern.permute.xlu1 %v3059_v59 }
  0x4a   : > { %1906 = vperm.xlu1 %2910, %v3235_v17  }
  0x4c   : > { %2917 = vset.pattern.permute.xlu0 %v3057_v57 }
  0x4d   : > { %1664 = vperm.xlu0 %2917, %v755_v61  }
  0x4e   : > { %2911 = vset.pattern.permute.xlu1 %v3060_v60 }
  0x4f   : > { %2128 = vperm.xlu1 %2911, %v3221_v14  }
  0x51   : > { %2920 = vset.pattern.permute.xlu0 %v3060_v60 }
  0x52   : > { %2348 = vperm.xlu0 %2920, %v755_v61  }
  0x53   : > { %2913 = vset.pattern.permute.xlu1 %v3061_v62 }
  0x54   : > { %2356 = vperm.xlu1 %2913, %v3221_v14  }
  0x56   : > { %2923 = vset.pattern.permute.xlu0 %v3054_v2 }
  0x58   : > { %2362 = vperm.xlu1 %2913, %v3235_v17  }
  0x5c   : > { %2915 = vset.pattern.permute.xlu1 %v3055_v55 }
  0x5d   : > { %1208 = vperm.xlu1 %2915, %v755_v61  }
  0x61   : > { %2916 = vset.pattern.permute.xlu1 %v3056_v56 }
  0x62   : > { %1436 = vperm.xlu1 %2916, %v755_v61  }
  0x66   : > { %2918 = vset.pattern.permute.xlu1 %v3058_v58 }
  0x67   : > { %1892 = vperm.xlu1 %2918, %v755_v61  }
  0x6b   : > { %2919 = vset.pattern.permute.xlu1 %v3059_v59 }
  0x6c   : > { %2120 = vperm.xlu1 %2919, %v755_v61  }
  0x70   : > { %2921 = vset.pattern.permute.xlu1 %v3061_v62 }
  0x71   : > { %2576 = vperm.xlu1 %2921, %v755_v61  }
  0x75   : > { %2922 = vset.pattern.permute.xlu1 %v3054_v2 }
  0x76   : > { %2586 = vperm.xlu1 %2922, %v2583_v63  }
  0x98   : > { %v400_v19 = vpop.permute.xlu0 %399  ;;  %v410_v28 = vpop.permute.xlu1 %409 }
  0x9c   : > { %v405_v23 = vpop.permute.xlu0 %404  ;;  %v415_v39 = vpop.permute.xlu1 %414 }
  0xa0   : > { %v550_v5 = vpop.permute.xlu1 %549 }
  0xa1   : > { %v545_v3 = vpop.permute.xlu0 %544 }
  0xa5   : > { %v555_v18 = vpop.permute.xlu0 %554 }
  0xf4   : > { %v503_v20 = vpop.f32.mrb[0].mxu0 }
  0xf5   : > { %v505_v21 = vpop.f32.mrb[1].mxu0  ;;  %v504_v22 = vadd.f32 %v503_v20, %v400_v19  ;;  %v560_v20 = vpop.permute.xlu1 %559 }
  0xf6   : > { %v506_v24 = vadd.f32 %v505_v21, %v400_v19 }
  0xf7   : > { %v526_v30 = vmax.f32 %v504_v22, 0.0 }
  0xf8   : > { %v509_v25 = vpop.f32.mrb[2].mxu0  ;;  %v527_v32 = vmax.f32 %v506_v24, 0.0 }
  0xf9   : > { %v510_v26 = vadd.f32 %v509_v25, %v405_v23  ;;  %v511_v27 = vpop.f32.mrb[3].mxu0 }
  0xfa   : > { %v512_v29 = vadd.f32 %v511_v27, %v405_v23 }
  0xfb   : > { %v528_v31 = vmax.f32 %v510_v26, 0.0 }
  0xfc   : > { %v529_v33 = vmax.f32 %v512_v29, 0.0  ;;  %v515_v34 = vpop.f32.mrb[4].mxu0 }
  0xfd   : > { %v517_v35 = vpop.f32.mrb[5].mxu0  ;;  %v2768_v36 = vpack.c.bf16 %v528_v31, %v526_v30  ;;  %v516_v38 = vadd.f32 %v515_v34, %v410_v28  ;;  %v3290_v34 = vpop.permute.xlu1 %758 }
  0xfe   : > { %v2766_v37 = vpack.c.bf16 %v529_v33, %v527_v32  ;;  %v518_v40 = vadd.f32 %v517_v35, %v410_v28  ;;  %v672_v32 = vld [vmem:[%s5574_s5] sm:$0x3] }
  0xff   : > { %v530_v45 = vmax.f32 %v516_v38, 0.0 }
 0x100   : > { %v521_v41 = vpop.f32.mrb[6].mxu0  ;;  %2767 = vmatprep.subr.bf16.mxu1 %v2766_v37  ;;  %v531_v47 = vmax.f32 %v518_v40, 0.0  ;;  %v677_v37 = vpop.permute.xlu0 %676 }
 0x101   : > { %v522_v42 = vadd.f32 %v521_v41, %v415_v39  ;;  %v523_v43 = vpop.f32.mrb[7].mxu0  ;;  %2769 = vmatpush1.bf16.msra.mxu1 %v2768_v36  ;;  %v3292_v36 = vpop.permute.xlu1 %765 }
 0x102   : > { %v524_v44 = vadd.f32 %v523_v43, %v415_v39 }
 0x103   : > { %v532_v46 = vmax.f32 %v522_v42, 0.0 }
 0x104   : > { %v533_v48 = vmax.f32 %v524_v44, 0.0  ;;  %v989_v40 = vpop.permute.xlu0 %988 }
 0x105   : > { %v2772_v49 = vpack.c.bf16 %v532_v46, %v530_v45  ;;  %v995_v38 = vpop.permute.xlu1 %994 }
 0x106   : > { %v2770_v50 = vpack.c.bf16 %v533_v48, %v531_v47 }
 0x108   : > { %2771 = vmatprep.subr.bf16.mxu1 %v2770_v50  ;;  %v3315_v55 = vpop.permute.xlu0 %1216 }
 0x109   : > { %2773 = vmatpush1.bf16.msra.mxu1 %v2772_v49  ;;  %v3297_v42 = vpop.permute.xlu1 %1222 }
 0x10c   : > { %2690 = vmatmul.mubr.msk.f32.vlgmr.msra.gmra.mrb[0].mxu1 %vm562_vm2, %v534_v51  ;;  %v3318_v60 = vpop.permute.xlu0 %1450 }
 0x10d   : > { %645 = vmatprep.mubr.f32.mxu1 %v3053_v0  ;;  %v3301_v44 = vpop.permute.xlu1 %1444  ;;  %5678 = vst [vmem:[#allocation10_spill] sm:$0xff] %v3318_v60 }
 0x10e   : > { %5675 = vst [vmem:[#allocation7_spill] sm:$0xff] %v3301_v44 }
 0x110   : > { %2691 = vmatmul.mubr.msk.f32.gmra.mrb[2].mxu1 %vm562_vm2, %v535_v52 }
 0x111   : > { %651 = vmatprep.mubr.f32.mxu1 %v3053_v0  ;;  %v3304_v47 = vpop.permute.xlu1 %1672 }
 0x114   : > { %2692 = vmatmul.mubr.msk.f32.gmra.mrb[4].mxu1 %vm562_vm2, %v536_v53 }
 0x115   : > { %657 = vmatprep.mubr.f32.mxu1 %v3053_v0  ;;  %v3308_v50 = vpop.permute.xlu1 %1678 }
 0x118   : > { %2693 = vmatmul.mubr.msk.f32.gmra.mrb[6].mxu1 %vm562_vm2, %v537_v54 }
 0x119   : > { %v3313_v54 = vpop.permute.xlu1 %1906 }
 0x11a   : > { %5677 = vst [vmem:[#allocation9_spill] sm:$0xff] %v3313_v54 }
 0x11d   : > { %v2129_v59 = vpop.permute.xlu1 %2128 }
 0x1df   : > { %v641_v0 = vpop.f32.mrb[0].mxu1 }
 0x1e0   : > { %v643_v1 = vpop.f32.mrb[1].mxu1  ;;  %v642_v4 = vadd.f32 %v641_v0, %v545_v3 }
 0x1e1   : > { %v644_v6 = vadd.f32 %v643_v1, %v545_v3  ;;  %v2357_v1 = vpop.permute.xlu1 %2356  ;;  %v3324_v3 = vpop.permute.xlu0 %1900 }
 0x1e2   : > { %v664_v11 = vmax.f32 %v642_v4, 0.0  ;;  %5679 = vst [vmem:[#allocation11_spill] sm:$0xff] %v3324_v3  ;;  %v5594_v4 = vmov 920167782  }
 0x1e3   : > { %v647_v7 = vpop.f32.mrb[2].mxu1  ;;  %v665_v13 = vmax.f32 %v644_v6, 0.0 }
 0x1e4   : > { %v648_v8 = vadd.f32 %v647_v7, %v550_v5  ;;  %v649_v9 = vpop.f32.mrb[3].mxu1  ;;  %v5588_v7 = vmov 1326507024  }
 0x1e5   : > { %v650_v10 = vadd.f32 %v649_v9, %v550_v5 }
 0x1e6   : > { %v666_v12 = vmax.f32 %v648_v8, 0.0 }
 0x1e7   : > { %v667_v14 = vmax.f32 %v650_v10, 0.0  ;;  %v653_v15 = vpop.f32.mrb[4].mxu1 }
 0x1e8   : > { %v2776_v16 = vpack.c.bf16 %v666_v12, %v664_v11  ;;  %v655_v17 = vpop.f32.mrb[5].mxu1  ;;  %v654_v19 = vadd.f32 %v653_v15, %v555_v18  ;;  %v5610_v12 = vmov 2102212464   ;;  %v5597_v15 = vmov 2475754826  }
 0x1e9   : > { %v2774_v2 = vpack.c.bf16 %v667_v14, %v665_v13  ;;  %v656_v21 = vadd.f32 %v655_v17, %v555_v18  ;;  %v5584_v17 = vmov 2131351028  }
 0x1ea   : > { %v668_v26 = vmax.f32 %v654_v19, 0.0 }
 0x1eb   : > { %v659_v22 = vpop.f32.mrb[6].mxu1  ;;  %2775 = vmatprep.subr.bf16.mxu0 %v2774_v2  ;;  %v669_v28 = vmax.f32 %v656_v21, 0.0 }
 0x1ec   : > { %v660_v23 = vadd.f32 %v659_v22, %v560_v20  ;;  %v661_v24 = vpop.f32.mrb[7].mxu1  ;;  %2777 = vmatpush1.bf16.msra.mxu0 %v2776_v16  ;;  %v5586_v22 = vmov 683565275  }
 0x1ed   : > { %v662_v25 = vadd.f32 %v661_v24, %v560_v20 }
 0x1ee   : > { %v670_v27 = vmax.f32 %v660_v23, 0.0 }
 0x1ef   : > { %v671_v29 = vmax.f32 %v662_v25, 0.0  ;;  %v2363_v25 = vpop.permute.xlu1 %2362 }
 0x1f0   : > { %v2780_v30 = vpack.c.bf16 %v670_v27, %v668_v26  ;;  %v2135_v26 = vpop.permute.xlu0 %2134 }
 0x1f1   : > { %v2778_v31 = vpack.c.bf16 %v671_v29, %v669_v28 }
 0x1f3   : > { %2779 = vmatprep.subr.bf16.mxu0 %v2778_v31 }
 0x1f4   : > { %2781 = vmatpush1.bf16.msra.mxu0 %v2780_v30 }
 0x1f7   : > { %2694 = vmatmul.mubr.msk.f32.vlgmr.msra.gmra.mrb[8].mxu0 %vm562_vm2, %v672_v32 }
 0x2ca   : > { %v748_v33 = vpop.f32.mrb[8].mxu0 }
 0x2cb   : > { %v750_v35 = vpop.f32.mrb[9].mxu0  ;;  %v3294_v39 = vadd.f32 %v748_v33, %v677_v37 }
 0x2cc   : > { %v3306_v48 = vadd.f32 %v750_v35, %v677_v37 }
 0x2cd   : > { %5674 = vst [vmem:[#allocation6_spill] sm:$0xff] %v3294_v39  ;;  %v991_v41 = vmul.f32 %v989_v40, %v3294_v39  ;;  %v1219_v0 = vmul.f32 %v3315_v55, %v3294_v39  ;;  %v2359_v6 = vmul.f32 %v2357_v1, %v3294_v39  ;;  %v2131_v21 = vmul.f32 %v2129_v59, %v3294_v39 }
 0x2ce   : > { %5676 = vst [vmem:[#allocation8_spill] sm:$0xff] %v3306_v48  ;;  %v992_v51 = vmul.f32 %v989_v40, %v3306_v48  ;;  %v2360_v20 = vmul.f32 %v2357_v1, %v3306_v48  ;;  %v2132_v30 = vmul.f32 %v2129_v59, %v3306_v48 }
 0x2cf   : > { %v3299_v43 = vadd.f32 %v995_v38, %v991_v41  ;;  %v3336_v14 = vadd.f32 %v3297_v42, %v1219_v0  ;;  %v3357_v40 = vadd.f32 %v2135_v26, %v2131_v21 }
 0x2d0   : > { %v3311_v53 = vadd.f32 %v995_v38, %v992_v51  ;;  %v3355_v38 = vadd.f32 %v2363_v25, %v2359_v6  ;;  %v3365_v51 = vadd.f32 %v2135_v26, %v2132_v30  ;;  %v1220_v6 = vmul.f32 %v3315_v55, %v3306_v48 }
 0x2d1   : > { %v1002_v45 = vand.u32 2139095040, %v3299_v43  ;;  %v5582_v10 = vand.u32 2147483647, %v3299_v43  ;;  %5680 = vst [vmem:[#allocation12_spill] sm:$0xff] %v3336_v14  ;;  %v1230_v32 = vand.u32 2139095040, %v3336_v14  ;;  %5682 = vst [vmem:[#allocation14_spill] sm:$0xff] %v3357_v40 }
 0x2d2   : > { %v1106_v57 = vand.u32 2139095040, %v3311_v53  ;;  %5681 = vst [vmem:[#allocation13_spill] sm:$0xff] %v3355_v38  ;;  %5684 = vst [vmem:[#allocation16_spill] sm:$0xff] %v3365_v51 }
 0x2d3   : > { %v1003_v46 = vshrl.u32 %v1002_v45, 23  ;;  %v1006_v31 = vand.u32 8388607, %v5582_v10 }
 0x2d4   : > { %v1107_v61 = vshrl.u32 %v1106_v57, 23 }
 0x2d5   : > { %v2703_v49 = vadd.s32 4294967169, %v1003_v46  ;;  %v3361_v46 = vadd.f32 %v2363_v25, %v2360_v20  ;;  %v2246_v20 = vand.u32 2139095040, %v3365_v51  ;;  %v5695_v51 = vmov 1326507024  }
 0x2d6   : > { %v2707_v63 = vadd.s32 4294967169, %v1107_v61  ;;  %v2370_v61 = vand.u32 2139095040, %v3355_v38  ;;  %v5699_v38 = vmov 920167782  }
 0x2d7   : > { %v1009_v52 = vadd.s32 1, %v2703_v49  ;;  %5683 = vst [vmem:[#allocation15_spill] sm:$0xff] %v3361_v46 }
 0x2d8   : > { %v1113_v9 = vadd.s32 1, %v2707_v63  ;;  %v2142_v63 = vand.u32 2139095040, %v3357_v40 }
 0x2d9   : > { %vm1010_vm3 = vcmp.gt.s32.totalorder %v1009_v52, 0 }
 0x2da   : > { %v1011_v56 = vsel %vm1010_vm3, %v1009_v52, 0  ;;  %vm1114_vm4 = vcmp.gt.s32.totalorder %v1113_v9, 0  ;;  %v1231_v52 = vshrl.u32 %v1230_v32, 23  ;;  %v2247_v32 = vshrl.u32 %v2246_v20, 23 }
 0x2db   : > { %v1013_v58 = vand.u32 31, %v1011_v56  ;;  %v3332_v11 = vshrl.u32 %v1011_v56, 5  ;;  %v1115_v45 = vsel %vm1114_vm4, %v1113_v9, 0  ;;  %v1007_v56 = vor.u32 8388608, %v1006_v31 }
 0x2dc   : > { %v1117_v59 = vand.u32 31, %v1115_v45  ;;  %v2474_v9 = vand.u32 2139095040, %v3361_v46 }
 0x2dd   : > { %v3320_v62 = vsub.s32 32, %v1013_v58  ;;  %v1025_v13 = vshll.u32 %v5610_v12, %v1013_v58  ;;  %v1028_v19 = vshll.u32 %v5594_v4, %v1013_v58  ;;  %v1016_v23 = vshll.u32 %v5586_v22, %v1013_v58 }
 0x2de   : > { %v1019_v27 = vshll.u32 %v5597_v15, %v1013_v58  ;;  %v1022_v28 = vshll.u32 %v5584_v17, %v1013_v58  ;;  %vm1034_vm5 = vcmp.lt.s32.totalorder %v3332_v11, 4  ;;  %vm1031_vm6 = vcmp.lt.s32.totalorder %v3332_v11, 1 }
 0x2df   : > { %v1026_v5 = vshrl.u32 %v5594_v4, %v3320_v62  ;;  %v1029_v8 = vshrl.u32 %v5588_v7, %v3320_v62  ;;  %v1017_v16 = vshrl.u32 %v5597_v15, %v3320_v62  ;;  %v1020_v18 = vshrl.u32 %v5584_v17, %v3320_v62 }
 0x2e0   : > { %v1023_v2 = vshrl.u32 %v5610_v12, %v3320_v62  ;;  %vm1033_vm7 = vcmp.lt.s32.totalorder %v3332_v11, 3  ;;  %vm1032_vm8 = vcmp.lt.s32.totalorder %v3332_v11, 2  ;;  %v2475_v26 = vshrl.u32 %v2474_v9, 23 }
 0x2e1   : > { %v1027_v24 = vor.u32 %v1026_v5, %v1025_v13  ;;  %v1030_v29 = vor.u32 %v1029_v8, %v1028_v19  ;;  %v1018_v33 = vor.u32 %v1017_v16, %v1016_v23  ;;  %v1021_v35 = vor.u32 %v1020_v18, %v1019_v27 }
 0x2e2   : > { %v1024_v37 = vor.u32 %v1023_v2, %v1022_v28  ;;  %v2711_v8 = vadd.s32 4294967169, %v1231_v52  ;;  %v3387_v16 = vshll.u32 %v1007_v56, 8  ;;  %v3389_v18 = vsub.s32 32, %v1117_v59 }
 0x2e3   : > { %v1040_v41 = vsel %vm1034_vm5, %v1027_v24, 920167782  ;;  %v1044_v49 = vsel %vm1034_vm5, %v1030_v29, 1326507024  ;;  %v1039_v57 = vsel %vm1031_vm6, %v1018_v33, %v1021_v35  ;;  %v2371_v2 = vshrl.u32 %v2370_v61, 23 }
 0x2e4   : > { %v1041_v58 = vsel %vm1033_vm7, %v1024_v37, %v1040_v41  ;;  %v1043_v0 = vsel %vm1031_vm6, %v1021_v35, %v1024_v37  ;;  %v1045_v1 = vsel %vm1033_vm7, %v1027_v24, %v1044_v49  ;;  %v2143_v19 = vshrl.u32 %v2142_v63, 23 }
 0x2e5   : > { %v1042_v5 = vsel %vm1032_vm8, %v1039_v57, %v1041_v58  ;;  %v1046_v13 = vsel %vm1032_vm8, %v1043_v0, %v1045_v1  ;;  %v1237_v25 = vadd.s32 1, %v2711_v8  ;;  %v5581_v27 = vand.u32 2147483647, %v3311_v53 }
 0x2e6   : > { %v3393_v21 = vmul.u32.u64.low %v3387_v16, %v1042_v5  ;;  %v3394_v23 = vmul.u32.u64.high %v3387_v16, %v1042_v5, %v3393_v21  ;;  %v3398_v55 = vmul.u32.u64.low %v3387_v16, %v1046_v13  ;;  %v3399_v24 = vmul.u32.u64.high %v3387_v16, %v1046_v13, %v3398_v55 }
 0x2e7   : > { %v1133_v28 = vshrl.u32 %v5588_v7, %v3389_v18  ;;  %v3405_v29 = vadd.f32 %v3297_v42, %v1220_v6  ;;  %v2751_v30 = vadd.s32 4294967169, %v2371_v2  ;;  %v2743_v31 = vadd.s32 4294967169, %v2143_v19 }
 0x2e8   : > { %v1130_v41 = vshrl.u32 %v5594_v4, %v3389_v18  ;;  %v1015_v49 = vshrl.u32 %v5586_v22, %v3320_v62  ;;  %v1036_v52 = vsel %vm1034_vm5, %v1024_v37, 2102212464  ;;  %v3413_v56 = vshrl.u32 %v1115_v45, 5 }
 0x2e9   : > { %5685 = vst [vmem:[#allocation17_spill] sm:$0xff] %v3405_v29  ;;  %v1132_v57 = vshll.u32 %v5594_v4, %v1117_v59  ;;  %v1124_v42 = vshrl.u32 %v5584_v17, %v3389_v18  ;;  %v1127_v58 = vshrl.u32 %v5610_v12, %v3389_v18  ;;  %v1129_v61 = vshll.u32 %v5610_v12, %v1117_v59 }
 0x2ea   : > { %vm1238_vm9 = vcmp.gt.s32.totalorder %v1237_v25, 0  ;;  %v1035_v63 = vsel %vm1031_vm6, %v1015_v49, %v1018_v33  ;;  %v1110_v62 = vand.u32 8388607, %v5581_v27  ;;  %v1121_v37 = vshrl.u32 %v5597_v15, %v3389_v18 }
 0x2eb   : > { %v1134_v45 = vor.u32 %v1133_v28, %v1132_v57  ;;  %v1037_v0 = vsel %vm1033_vm7, %v1021_v35, %v1036_v52  ;;  %v1123_v1 = vshll.u32 %v5597_v15, %v1117_v59  ;;  %v1126_v5 = vshll.u32 %v5584_v17, %v1117_v59 }
 0x2ec   : > { %v1131_v6 = vor.u32 %v1130_v41, %v1129_v61  ;;  %v1057_v8 = vadd.s32 1, %v3394_v23  ;;  %v1120_v9 = vshll.u32 %v5586_v22, %v1117_v59  ;;  %vm1138_vm10 = vcmp.lt.s32.totalorder %v3413_v56, 4 }
 0x2ed   : > { %v1239_v33 = vsel %vm1238_vm9, %v1237_v25, 0  ;;  %vm1056_vm11 = vc.u32 %v3399_v24, %v3393_v21  ;;  %v3436_v13 = vor.u32 %v1124_v42, %v1123_v1  ;;  %v1128_v2 = vor.u32 %v1127_v58, %v1126_v5 }
 0x2ee   : > { %v1334_v35 = vand.u32 2139095040, %v3405_v29  ;;  %v2755_v19 = vadd.s32 4294967169, %v2475_v26  ;;  %v1038_v20 = vsel %vm1032_vm8, %v1035_v63, %v1037_v0  ;;  %v3441_v55 = vor.u32 %v1121_v37, %v1120_v9 }
 0x2ef   : > { %v1148_v59 = vsel %vm1138_vm10, %v1134_v45, 1326507024  ;;  %v2377_v28 = vadd.s32 1, %v2751_v30  ;;  %v2149_v41 = vadd.s32 1, %v2743_v31  ;;  %v1144_v25 = vsel %vm1138_vm10, %v1131_v6, 920167782 }
 0x2f0   : > { %v1241_v49 = vand.u32 31, %v1239_v33  ;;  %v1058_v52 = vsel %vm1056_vm11, %v1057_v8, %v3394_v23  ;;  %v1111_v57 = vor.u32 8388608, %v1110_v62  ;;  %vm1135_vm12 = vcmp.lt.s32.totalorder %v3413_v56, 1 }
 0x2f1   : > { %vm1137_vm13 = vcmp.lt.s32.totalorder %v3413_v56, 3  ;;  %v1054_v11 = vmul.u32 %v3387_v16, %v1038_v20  ;;  %v1147_v26 = vsel %vm1135_vm12, %v3436_v13, %v1128_v2  ;;  %v1335_v31 = vshrl.u32 %v1334_v35, 23 }
 0x2f2   : > { %v1149_v30 = vsel %vm1137_vm13, %v1131_v6, %v1148_v59  ;;  %v2481_v42 = vadd.s32 1, %v2755_v19  ;;  %v2747_v58 = vadd.s32 4294967169, %v2247_v32  ;;  %v1143_v23 = vsel %vm1135_vm12, %v3441_v55, %v3436_v13 }
 0x2f3   : > { %v1145_v61 = vsel %vm1137_vm13, %v1128_v2, %v1144_v25  ;;  %vm2378_vm14 = vcmp.gt.s32.totalorder %v2377_v28, 0  ;;  %v3462_v16 = vadd.s32 %v1058_v52, %v1054_v11  ;;  %vm1136_vm15 = vcmp.lt.s32.totalorder %v3413_v56, 2 }
 0x2f4   : > { %v3465_v63 = vsub.s32 32, %v1241_v49  ;;  %v1150_v62 = vsel %vm1136_vm15, %v1147_v26, %v1149_v30  ;;  %vm2150_vm0 = vcmp.gt.s32.totalorder %v2149_v41, 0  ;;  %v1146_v32 = vsel %vm1136_vm15, %v1143_v23, %v1145_v61 }
 0x2f5   : > { %v3471_v37 = vshll.u32 %v1111_v57, 8  ;;  %v2715_v45 = vadd.s32 4294967169, %v1335_v31  ;;  %v2379_v0 = vsel %vm2378_vm14, %v2377_v28, 0  ;;  %vm2482_vm1 = vcmp.gt.s32.totalorder %v2481_v42, 0 }
 0x2f6   : > { %v3473_v1 = vadd.s32 1, %v2747_v58  ;;  %v1060_v5 = vadd.s32 536870912, %v3462_v16  ;;  %v1254_v9 = vshrl.u32 %v5594_v4, %v3465_v63  ;;  %v2151_v35 = vsel %vm2150_vm0, %v2149_v41, 0 }
 0x2f7   : > { %v3477_v6 = vmul.u32.u64.low %v3471_v37, %v1150_v62  ;;  %v3478_v8 = vmul.u32.u64.high %v3471_v37, %v1150_v62, %v3477_v6  ;;  %v3483_v19 = vmul.u32.u64.low %v3471_v37, %v1146_v32  ;;  %v3484_v20 = vmul.u32.u64.high %v3471_v37, %v1146_v32, %v3483_v19 }
 0x2f8   : > { %v1257_v59 = vshrl.u32 %v5588_v7, %v3465_v63  ;;  %v5583_v28 = vand.u32 2147483647, %v3336_v14  ;;  %v3490_v25 = vshrl.u32 %v1239_v33, 5  ;;  %v1253_v52 = vshll.u32 %v5610_v12, %v1241_v49 }
 0x2f9   : > { %v1341_v57 = vadd.s32 1, %v2715_v45  ;;  %v1245_v11 = vshrl.u32 %v5597_v15, %v3465_v63  ;;  %v1248_v41 = vshrl.u32 %v5584_v17, %v3465_v63  ;;  %v1251_v26 = vshrl.u32 %v5610_v12, %v3465_v63 }
 0x2fa   : > { %v1256_v30 = vshll.u32 %v5594_v4, %v1241_v49  ;;  %v3500_v31 = vshrl.u32 %v2379_v0, 5  ;;  %v3502_v58 = vshrl.u32 %v1060_v5, 30  ;;  %v1140_v33 = vsel %vm1138_vm10, %v1128_v2, 2102212464 }
 0x2fb   : > { %v1255_v23 = vor.u32 %v1254_v9, %v1253_v52  ;;  %vm2254_vm2 = vcmp.gt.s32.totalorder %v3473_v1, 0  ;;  %v1244_v61 = vshll.u32 %v5586_v22, %v1241_v49  ;;  %v1247_v62 = vshll.u32 %v5597_v15, %v1241_v49 }
 0x2fc   : > { %5686 = vst [vmem:[#allocation18_spill] sm:$0xff] %v3500_v31  ;;  %v1250_v32 = vshll.u32 %v5584_v17, %v1241_v49  ;;  %v1258_v45 = vor.u32 %v1257_v59, %v1256_v30  ;;  %v1119_v6 = vshrl.u32 %v5586_v22, %v3389_v18  ;;  %v1234_v5 = vand.u32 8388607, %v5583_v28 }
 0x2fd   : > { %vm1342_vm3 = vcmp.gt.s32.totalorder %v1341_v57, 0  ;;  %v1675_v2 = vmul.f32 %v3304_v47, %v3294_v39  ;;  %v1246_v9 = vor.u32 %v1245_v11, %v1244_v61  ;;  %v1249_v52 = vor.u32 %v1248_v41, %v1247_v62 }
 0x2fe   : > { %v1252_v27 = vor.u32 %v1251_v26, %v1250_v32  ;;  %vm1262_vm4 = vcmp.lt.s32.totalorder %v3490_v25, 4  ;;  %v2483_v10 = vsel %vm2482_vm1, %v2481_v42, 0  ;;  %v1139_v49 = vsel %vm1135_vm12, %v1119_v6, %v3441_v55 }
 0x2ff   : > { %v1141_v18 = vsel %vm1137_vm13, %v3436_v13, %v1140_v33  ;;  %v1268_v59 = vsel %vm1262_vm4, %v1255_v23, 920167782  ;;  %v1062_v30 = vshll.u32 %v3502_v58, 30  ;;  %v1161_v11 = vadd.s32 1, %v3484_v20 }
 0x300   : > { %v1272_v41 = vsel %vm1262_vm4, %v1258_v45, 1326507024  ;;  %v1343_v26 = vsel %vm1342_vm3, %v1341_v57, 0  ;;  %vm1160_vm5 = vc.u32 %v3478_v8, %v3483_v19  ;;  %v1235_v42 = vor.u32 8388608, %v1234_v5 }
 0x301   : > { %vm1259_vm6 = vcmp.lt.s32.totalorder %v3490_v25, 1  ;;  %vm1261_vm7 = vcmp.lt.s32.totalorder %v3490_v25, 3  ;;  %v1142_v13 = vsel %vm1136_vm15, %v1139_v49, %v1141_v18  ;;  %v3541_v61 = vadd.f32 %v3308_v50, %v1675_v2 }
 0x302   : > { %v1267_v55 = vsel %vm1259_vm6, %v1246_v9, %v1249_v52  ;;  %v1269_v33 = vsel %vm1261_vm7, %v1252_v27, %v1268_v59  ;;  %v3543_v57 = vand.u32 31, %v2379_v0  ;;  %v1271_v62 = vsel %vm1259_vm6, %v1249_v52, %v1252_v27 }
 0x303   : > { %5687 = vst [vmem:[#allocation19_spill] sm:$0xff] %v3541_v61  ;;  %v1273_v32 = vsel %vm1261_vm7, %v1255_v23, %v1272_v41  ;;  %v1345_v45 = vand.u32 31, %v1343_v26  ;;  %v3549_v56 = vshrl.u32 %v2151_v35, 5  ;;  %v3552_v6 = vsub.s32 %v3462_v16, %v1062_v30 }
 0x304   : > { %5688 = vst [vmem:[#allocation20_spill] sm:$0xff] %v3543_v57  ;;  %v1162_v5 = vsel %vm1160_vm5, %v1161_v11, %v3484_v20  ;;  %vm1260_vm8 = vcmp.lt.s32.totalorder %v3490_v25, 2  ;;  %v3556_v2 = vshrl.u32 %v2483_v10, 5  ;;  %v3558_v0 = vand.u32 31, %v2483_v10 }
 0x305   : > { %5689 = vst [vmem:[#allocation21_spill] sm:$0xff] %v3549_v56  ;;  %v1158_v49 = vmul.u32 %v3471_v37, %v1142_v13  ;;  %v1270_v18 = vsel %vm1260_vm8, %v1267_v55, %v1269_v33  ;;  %v3563_v23 = vand.u32 31, %v2151_v35  ;;  %v1274_v59 = vsel %vm1260_vm8, %v1271_v62, %v1273_v32 }
 0x306   : > { %5690 = vst [vmem:[#allocation22_spill] sm:$0xff] %v3556_v2  ;;  %5691 = vst [vmem:[#allocation23_spill] sm:$0xff] %v3558_v0  ;;  %v3567_v16 = vshll.u32 %v1235_v42, 8  ;;  %v1686_v20 = vand.u32 2139095040, %v3541_v61  ;;  %v3573_v30 = vsel %vm2254_vm2, %v3473_v1, 0  ;;  %v3578_v11 = vsub.s32 32, %v1345_v45 }
 0x307   : > { %5692 = vst [vmem:[#allocation24_spill] sm:$0xff] %v3563_v23  ;;  %v3575_v10 = vadd.s32 %v1162_v5, %v1158_v49  ;;  %v5596_v37 = vand.u32 2147483647, %v3405_v29  ;;  %v1065_v35 = vsub.s32 0, %v3552_v6  ;;  %v3587_v55 = vsub.s32 32, %v3543_v57 }
 0x308   : > { %v3582_v41 = vmul.u32.u64.low %v3567_v16, %v1270_v18  ;;  %v3583_v13 = vmul.u32.u64.high %v3567_v16, %v1270_v18, %v3582_v41  ;;  %v1687_v42 = vshrl.u32 %v1686_v20, 23  ;;  %v1264_v1 = vsel %vm1262_vm4, %v1252_v27, 2102212464 }
 0x309   : > { %5693 = vst [vmem:[#allocation25_spill] sm:$0xff] %v3587_v55  ;;  %v3592_v33 = vmul.u32.u64.low %v3567_v16, %v1274_v59  ;;  %v3593_v62 = vmul.u32.u64.high %v3567_v16, %v1274_v59, %v3592_v33  ;;  %v3597_v32 = vshll.u32 %v5610_v12, %v3543_v57  ;;  %v3601_v5 = vshll.u32 %v5594_v4, %v3543_v57 }
 0x30a   : > { %v1243_v49 = vshrl.u32 %v5586_v22, %v3465_v63  ;;  %v2727_v18 = vadd.s32 4294967169, %v1687_v42  ;;  %v3606_v20 = vsub.s32 32, %v3558_v0  ;;  %v3610_v27 = vshll.u32 %v5610_v12, %v3558_v0 }
 0x30b   : > { %v1164_v59 = vadd.s32 536870912, %v3575_v10  ;;  %v1358_v33 = vshrl.u32 %v5594_v4, %v3578_v11  ;;  %v2704_v28 = vmin.u32 %v1065_v35, %v3552_v6  ;;  %v1265_v63 = vsel %vm1261_vm7, %v1249_v52, %v1264_v1 }
 0x30c   : > { %5694 = vst [vmem:[#allocation26_spill] sm:$0xff] %v3606_v20  ;;  %v1263_v17 = vsel %vm1259_vm6, %v1243_v49, %v1246_v9  ;;  %v1338_v42 = vand.u32 8388607, %v5596_v37  ;;  %v1349_v22 = vshrl.u32 %v5597_v15, %v3578_v11  ;;  %v1357_v7 = vshll.u32 %v5610_v12, %v1345_v45 }
 0x30d   : > { %v1361_v40 = vshrl.u32 %v5695_v51, %v3578_v11  ;;  %v1676_v35 = vmul.f32 %v3304_v47, %v3306_v48  ;;  %v3629_v4 = vshrl.u32 %v1343_v26, 5  ;;  %v5696_v9 = vmov 2131351028  }
 0x30e   : > { %v1352_v49 = vshrl.u32 %v5696_v9, %v3578_v11  ;;  %v1355_v52 = vshrl.u32 %v5610_v12, %v3578_v11  ;;  %v1693_v1 = vadd.s32 1, %v2727_v18  ;;  %v3635_v37 = vshrl.u32 %v1164_v59, 30 }
 0x30f   : > { %v5698_v15 = vmov 683565275   ;;  %v1359_v57 = vor.u32 %v1358_v33, %v1357_v7  ;;  %v1360_v60 = vshll.u32 %v5699_v38, %v1345_v45  ;;  %v1266_v44 = vsel %vm1260_vm8, %v1263_v17, %v1265_v63 }
 0x310   : > { %5697 = vst [vmem:[#allocation27_spill] sm:$0xff] %v3635_v37  ;;  %v1348_v46 = vshll.u32 %v5698_v15, %v1345_v45  ;;  %v1285_v47 = vadd.s32 1, %v3583_v13  ;;  %v5700_v26 = vmov 2475754826   ;;  %v1354_v54 = vshll.u32 %v5696_v9, %v1345_v45 }
 0x311   : > { %v1351_v29 = vshll.u32 %v5700_v26, %v1345_v45  ;;  %vm1284_vm9 = vc.u32 %v3593_v62, %v3582_v41  ;;  %v1362_v59 = vor.u32 %v1361_v40, %v1360_v60  ;;  %v3649_v12 = vadd.f32 %v3308_v50, %v1676_v35 }
 0x312   : > { %v3646_v18 = vor.u32 %v1349_v22, %v1348_v46  ;;  %v1356_v33 = vor.u32 %v1355_v52, %v1354_v54  ;;  %vm1366_vm10 = vcmp.lt.s32.totalorder %v3629_v4, 4  ;;  %vm1694_vm11 = vcmp.gt.s32.totalorder %v1693_v1, 0 }
 0x313   : > { %5701 = vst [vmem:[#allocation28_spill] sm:$0xff] %v3649_v12  ;;  %v3651_v7 = vor.u32 %v1352_v49, %v1351_v29  ;;  %v2394_v17 = vshrl.u32 %v5699_v38, %v3587_v55  ;;  %v2397_v25 = vshrl.u32 %v5695_v51, %v3587_v55  ;;  %v3660_v22 = vshll.u32 %v5699_v38, %v3558_v0 }
 0x314   : > { %v1372_v50 = vsel %vm1366_vm10, %v1359_v57, 920167782  ;;  %v1067_v60 = vclz %v2704_v28  ;;  %v1166_v40 = vshll.u32 %v3635_v37, 30  ;;  %v1282_v54 = vmul.u32 %v3567_v16, %v1266_v44 }
 0x315   : > { %v1286_v46 = vsel %vm1284_vm9, %v1285_v47, %v3583_v13  ;;  %vm1363_vm12 = vcmp.lt.s32.totalorder %v3629_v4, 1  ;;  %vm1365_vm13 = vcmp.lt.s32.totalorder %v3629_v4, 3  ;;  %v1376_v29 = vsel %vm1366_vm10, %v1362_v59, 1326507024 }
 0x316   : > { %v1695_v45 = vsel %vm1694_vm11, %v1693_v1, 0  ;;  %vm2402_vm14 = vcmp.lt.s32.totalorder %v3500_v31, 4  ;;  %v1339_v63 = vor.u32 8388608, %v1338_v42  ;;  %v1371_v28 = vsel %vm1363_vm12, %v3646_v18, %v3651_v7 }
 0x317   : > { %v1373_v44 = vsel %vm1365_vm13, %v1356_v33, %v1372_v50  ;;  %v1790_v16 = vand.u32 2139095040, %v3649_v12  ;;  %v2498_v13 = vshrl.u32 %v5699_v38, %v3606_v20  ;;  %v3682_v35 = vsub.s32 32, %v3563_v23 }
 0x318   : > { %v5703_v49 = vmov 2102212464   ;;  %v3686_v42 = vadd.s32 %v1286_v46, %v1282_v54  ;;  %vm1364_vm15 = vcmp.lt.s32.totalorder %v3629_v4, 2  ;;  %v1375_v1 = vsel %vm1363_vm12, %v3651_v7, %v1356_v33 }
 0x319   : > { %5702 = vst [vmem:[#allocation29_spill] sm:$0xff] %v3682_v35  ;;  %v2165_v52 = vshll.u32 %v5703_v49, %v3563_v23  ;;  %v1377_v47 = vsel %vm1365_vm13, %v1359_v57, %v1376_v29  ;;  %v1697_v59 = vand.u32 31, %v1695_v45  ;;  %v3696_v50 = vshrl.u32 %v5695_v51, %v3606_v20 }
 0x31a   : > { %v3700_v0 = vshll.u32 %v5699_v38, %v3563_v23  ;;  %v3703_v54 = vsub.s32 %v3575_v10, %v1166_v40  ;;  %v1374_v46 = vsel %vm1364_vm15, %v1371_v28, %v1373_v44  ;;  %v3708_v55 = vor.u32 %v2394_v17, %v3597_v32 }
 0x31b   : > { %v2705_v3 = vadd.s32 4294967294, %v1067_v60  ;;  %v3710_v57 = vshll.u32 %v1339_v63, 8  ;;  %v1791_v29 = vshrl.u32 %v1790_v16, 23  ;;  %v2398_v20 = vor.u32 %v2397_v25, %v3601_v5 }
 0x31c   : > { %5704 = vst [vmem:[#allocation30_spill] sm:$0xff] %v3708_v55  ;;  %v2166_v14 = vshrl.u32 %v5699_v38, %v3682_v35  ;;  %v3717_v23 = vshrl.u32 %v5695_v51, %v3682_v35  ;;  %v1378_v10 = vsel %vm1364_vm15, %v1375_v1, %v1377_v47  ;;  %v1288_v40 = vadd.s32 536870912, %v3686_v42 }
 0x31d   : > { %v3723_v32 = vmul.u32.u64.low %v3710_v57, %v1374_v46  ;;  %v3724_v17 = vmul.u32.u64.high %v3710_v57, %v1374_v46, %v3723_v32  ;;  %v3727_v60 = vsub.s32 32, %v1697_v59  ;;  %v3730_v5 = vor.u32 %v2498_v13, %v3610_v27 }
 0x31e   : > { %v2502_v25 = vor.u32 %v3696_v50, %v3660_v22  ;;  %v3735_v63 = vshrl.u32 %v3573_v30, 5  ;;  %v1169_v28 = vsub.s32 0, %v3703_v54  ;;  %vm2706_vm0 = vcmp.lt.s32.totalorder %v2705_v3, 0 }
 0x31f   : > { %5705 = vst [vmem:[#allocation31_spill] sm:$0xff] %v3730_v5  ;;  %v3739_v44 = vmul.u32.u64.low %v3710_v57, %v1378_v10  ;;  %v3740_v16 = vmul.u32.u64.high %v3710_v57, %v1378_v10, %v3739_v44  ;;  %v2731_v1 = vadd.s32 4294967169, %v1791_v29  ;;  %v3745_v47 = vsel %vm2402_vm14, %v3708_v55, 920167782 }
 0x320   : > { %5706 = vst [vmem:[#allocation32_spill] sm:$0xff] %v3735_v63  ;;  %5707 = vst [vmem:[#allocation33_spill] sm:$0xff] %v3745_v47  ;;  %vm2506_vm1 = vcmp.lt.s32.totalorder %v3556_v2, 4  ;;  %v3749_v27 = vand.u32 31, %v3573_v30  ;;  %v1347_v22 = vshrl.u32 %v5698_v15, %v3578_v11  ;;  %v1368_v13 = vsel %vm1366_vm10, %v1356_v33, 2102212464 }
 0x321   : > { %v3757_v50 = vsel %vm2402_vm14, %v2398_v20, 1326507024  ;;  %v3759_v46 = vor.u32 %v2166_v14, %v2165_v52  ;;  %v3761_v29 = vshrl.u32 %v1288_v40, 30  ;;  %v1710_v10 = vshrl.u32 %v5699_v38, %v3727_v60 }
 0x322   : > { %5708 = vst [vmem:[#allocation34_spill] sm:$0xff] %v3749_v27  ;;  %5709 = vst [vmem:[#allocation35_spill] sm:$0xff] %v3757_v50  ;;  %v3765_v44 = vsel %vm2706_vm0, 0, %v2705_v3  ;;  %v2708_v30 = vmin.u32 %v1169_v28, %v3703_v54  ;;  %v1367_v11 = vsel %vm1363_vm12, %v1347_v22, %v3646_v18  ;;  %v1369_v14 = vsel %vm1365_vm13, %v3651_v7, %v1368_v13 }
 0x323   : > { %5710 = vst [vmem:[#allocation36_spill] sm:$0xff] %v3759_v46  ;;  %5711 = vst [vmem:[#allocation37_spill] sm:$0xff] %v3761_v29  ;;  %v1709_v20 = vshll.u32 %v5703_v49, %v1697_v59  ;;  %v1713_v52 = vshrl.u32 %v5695_v51, %v3727_v60  ;;  %v1797_v40 = vadd.s32 1, %v2731_v1  ;;  %v3778_v3 = vshrl.u32 %v1695_v45, 5 }
 0x324   : > { %v1701_v28 = vshrl.u32 %v5700_v26, %v3727_v60  ;;  %v1704_v18 = vshrl.u32 %v5696_v9, %v3727_v60  ;;  %v1707_v22 = vshrl.u32 %v5703_v49, %v3727_v60  ;;  %v1290_v33 = vshll.u32 %v3761_v29, 30 }
 0x325   : > { %v1389_v7 = vadd.s32 1, %v3724_v17  ;;  %v1711_v13 = vor.u32 %v1710_v10, %v1709_v20  ;;  %v1712_v35 = vshll.u32 %v5699_v38, %v1697_v59  ;;  %vm2174_vm2 = vcmp.lt.s32.totalorder %v3549_v56, 4 }
 0x326   : > { %v1700_v45 = vshll.u32 %v5698_v15, %v1697_v59  ;;  %v1703_v1 = vshll.u32 %v5700_v26, %v1697_v59  ;;  %v1706_v55 = vshll.u32 %v5696_v9, %v1697_v59  ;;  %vm1798_vm3 = vcmp.gt.s32.totalorder %v1797_v40, 0 }
 0x327   : > { %v1370_v50 = vsel %vm1364_vm15, %v1367_v11, %v1369_v14  ;;  %vm1388_vm4 = vc.u32 %v3740_v16, %v3723_v32  ;;  %v5712_v47 = vand.u32 2147483647, %v3541_v61  ;;  %v1714_v20 = vor.u32 %v1713_v52, %v1712_v35 }
 0x328   : > { %v1702_v31 = vor.u32 %v1701_v28, %v1700_v45  ;;  %v1705_v29 = vor.u32 %v1704_v18, %v1703_v1  ;;  %v1708_v37 = vor.u32 %v1707_v22, %v1706_v55  ;;  %vm1718_vm5 = vcmp.lt.s32.totalorder %v3778_v3, 4 }
 0x329   : > { %v1690_v10 = vand.u32 8388607, %v5712_v47  ;;  %v3803_v59 = vsel %vm2506_vm1, %v3730_v5, 920167782  ;;  %v2170_v4 = vor.u32 %v3717_v23, %v3700_v0  ;;  %v1724_v11 = vsel %vm1718_vm5, %v1711_v13, 920167782 }
 0x32a   : > { %5713 = vst [vmem:[#allocation38_spill] sm:$0xff] %v3803_v59  ;;  %v1799_v14 = vsel %vm1798_vm3, %v1797_v40, 0  ;;  %v1075_v47 = vsub.s32 4294967266, %v3765_v44  ;;  %v1171_v35 = vclz %v2708_v30  ;;  %v3811_v52 = vsub.s32 %v3686_v42, %v1290_v33 }
 0x32b   : > { %v1390_v55 = vsel %vm1388_vm4, %v1389_v7, %v3724_v17  ;;  %v1386_v28 = vmul.u32 %v3710_v57, %v1370_v50  ;;  %vm1715_vm6 = vcmp.lt.s32.totalorder %v3778_v3, 1  ;;  %vm1717_vm7 = vcmp.lt.s32.totalorder %v3778_v3, 3 }
 0x32c   : > { %v1728_v0 = vsel %vm1718_vm5, %v1714_v20, 1326507024  ;;  %v1691_v23 = vor.u32 8388608, %v1690_v10  ;;  %v1723_v40 = vsel %vm1715_vm6, %v1702_v31, %v1705_v29  ;;  %v1725_v30 = vsel %vm1717_vm7, %v1708_v37, %v1724_v11 }
 0x32d   : > { %v1801_v42 = vand.u32 31, %v1799_v14  ;;  %v3825_v17 = vsel %vm2506_vm1, %v2502_v25, 1326507024  ;;  %v3828_v57 = vsub.s32 32, %v3749_v27  ;;  %v3832_v50 = vshll.u32 %v5703_v49, %v3749_v27 }
 0x32e   : > { %5714 = vst [vmem:[#allocation39_spill] sm:$0xff] %v3825_v17  ;;  %v3834_v33 = vadd.s32 %v1390_v55, %v1386_v28  ;;  %v1076_v18 = vadd.s32 127, %v1075_v47  ;;  %vm1716_vm8 = vcmp.lt.s32.totalorder %v3778_v3, 2  ;;  %v1727_v22 = vsel %vm1715_vm6, %v1705_v29, %v1708_v37 }
 0x32f   : > { %5715 = vst [vmem:[#allocation40_spill] sm:$0xff] %v3828_v57  ;;  %v1729_v7 = vsel %vm1717_vm7, %v1711_v13, %v1728_v0  ;;  %v3844_v25 = vsel %vm2174_vm2, %v3759_v46, 920167782  ;;  %v3848_v45 = vsel %vm2174_vm2, %v2170_v4, 1326507024  ;;  %v2709_v1 = vadd.s32 4294967294, %v1171_v35 }
 0x330   : > { %5716 = vst [vmem:[#allocation41_spill] sm:$0xff] %v3844_v25  ;;  %5717 = vst [vmem:[#allocation42_spill] sm:$0xff] %v3848_v45  ;;  %v1726_v10 = vsel %vm1716_vm8, %v1723_v40, %v1725_v30  ;;  %v3854_v20 = vshll.u32 %v5699_v38, %v3749_v27  ;;  %v1293_v11 = vsub.s32 0, %v3811_v52  ;;  %v3857_v13 = vshll.u32 %v1691_v23, 8 }
 0x331   : > { %v3859_v47 = vsub.s32 32, %v1801_v42  ;;  %v1055_v55 = vadd.s32 %v3393_v21, %v3399_v24  ;;  %v1071_v4 = vsub.s32 32, %v3765_v44  ;;  %v1392_v35 = vadd.s32 536870912, %v3834_v33 }
 0x332   : > { %v1730_v28 = vsel %vm1716_vm8, %v1727_v22, %v1729_v7  ;;  %v1077_v40 = vshll.u32 %v1076_v18, 23  ;;  %v3870_v30 = vmul.u32.u64.low %v3857_v13, %v1726_v10  ;;  %v3871_v23 = vmul.u32.u64.high %v3857_v13, %v1726_v10, %v3870_v30 }
 0x333   : > { %vm2710_vm9 = vcmp.lt.s32.totalorder %v2709_v1, 0  ;;  %v1699_v21 = vshrl.u32 %v5698_v15, %v3727_v60  ;;  %v1720_v24 = vsel %vm1718_vm5, %v1708_v37, 2102212464  ;;  %v761_v27 = vmul.f32 %v3290_v34, %v3294_v39 }
 0x334   : > { %5718 = vst [vmem:[#allocation43_spill] sm:$0xff] %v3870_v30  ;;  %v2712_v22 = vmin.u32 %v1293_v11, %v3811_v52  ;;  %v3882_v7 = vmul.u32.u64.low %v3857_v13, %v1730_v28  ;;  %v3883_v18 = vmul.u32.u64.high %v3857_v13, %v1730_v28, %v3882_v7  ;;  %v1814_v10 = vshrl.u32 %v5699_v38, %v3859_v47 }
 0x335   : > { %v3887_v0 = vshrl.u32 %v1392_v35, 30  ;;  %v1719_v60 = vsel %vm1715_vm6, %v1699_v21, %v1702_v31  ;;  %v1817_v37 = vshrl.u32 %v5695_v51, %v3859_v47  ;;  %v1721_v11 = vsel %vm1717_vm7, %v1705_v29, %v1720_v24 }
 0x336   : > { %v3896_v45 = vshrl.u32 %v1799_v14, 5  ;;  %v1805_v28 = vshrl.u32 %v5700_v26, %v3859_v47  ;;  %v1813_v7 = vshll.u32 %v5703_v49, %v1801_v42  ;;  %v1808_v35 = vshrl.u32 %v5696_v9, %v3859_v47 }
 0x337   : > { %5719 = vst [vmem:[#allocation44_spill] sm:$0xff] %v3887_v0  ;;  %v1811_v31 = vshrl.u32 %v5703_v49, %v3859_v47  ;;  %v1816_v21 = vshll.u32 %v5699_v38, %v1801_v42  ;;  %v3907_v46 = vadd.f32 %v3292_v36, %v761_v27  ;;  %v3910_v29 = vsel %vm2710_vm9, 0, %v2709_v1 }
 0x338   : > { %v1295_v14 = vclz %v2712_v22  ;;  %v1804_v24 = vshll.u32 %v5698_v15, %v1801_v42  ;;  %v1815_v25 = vor.u32 %v1814_v10, %v1813_v7  ;;  %v1394_v56 = vshll.u32 %v3887_v0, 30 }
 0x339   : > { %5720 = vst [vmem:[#allocation45_spill] sm:$0xff] %v3907_v46  ;;  %v1807_v59 = vshll.u32 %v5700_v26, %v1801_v42  ;;  %v1810_v5 = vshll.u32 %v5696_v9, %v1801_v42  ;;  %v1818_v17 = vor.u32 %v1817_v37, %v1816_v21  ;;  %v1722_v2 = vsel %vm1716_vm8, %v1719_v60, %v1721_v11 }
 0x33a   : > { %v1741_v27 = vadd.s32 1, %v3871_v23  ;;  %v5721_v61 = vand.u32 2147483647, %v3649_v12  ;;  %v3921_v39 = vor.u32 %v1805_v28, %v1804_v24  ;;  %vm1822_vm10 = vcmp.lt.s32.totalorder %v3896_v45, 4 }
 0x33b   : > { %v3923_v22 = vor.u32 %v1808_v35, %v1807_v59  ;;  %v1812_v10 = vor.u32 %v1811_v31, %v1810_v5  ;;  %v773_v7 = vand.u32 2139095040, %v3907_v46  ;;  %v1073_v0 = vshrl.u32 %v1055_v55, %v1071_v4 }
 0x33c   : > { %v1794_v1 = vand.u32 8388607, %v5721_v61  ;;  %v1078_v42 = vor.u32 4788187, %v1077_v40  ;;  %vm1740_vm11 = vc.u32 %v3883_v18, %v3870_v30  ;;  %v1828_v3 = vsel %vm1822_vm10, %v1815_v25, 920167782 }
 0x33d   : > { %v1179_v60 = vsub.s32 4294967266, %v3910_v29  ;;  %v2713_v61 = vadd.s32 4294967294, %v1295_v14  ;;  %v3933_v37 = vsub.s32 %v3834_v33, %v1394_v56  ;;  %v1832_v5 = vsel %vm1822_vm10, %v1818_v17, 1326507024 }
 0x33e   : > { %v1738_v59 = vmul.u32 %v3857_v13, %v1722_v2  ;;  %vm1819_vm12 = vcmp.lt.s32.totalorder %v3896_v45, 1  ;;  %vm1821_vm13 = vcmp.lt.s32.totalorder %v3896_v45, 3  ;;  %v774_v55 = vshrl.u32 %v773_v7, 23 }
 0x33f   : > { %v1742_v4 = vsel %vm1740_vm11, %v1741_v27, %v3871_v23  ;;  %v1795_v40 = vor.u32 8388608, %v1794_v1  ;;  %v1827_v11 = vsel %vm1819_vm12, %v3921_v39, %v3923_v22  ;;  %v1829_v56 = vsel %vm1821_vm13, %v1812_v10, %v1828_v3 }
 0x340   : > { %v1831_v2 = vsel %vm1819_vm12, %v3923_v22, %v1812_v10  ;;  %v1833_v17 = vsel %vm1821_vm13, %v1815_v25, %v1832_v5  ;;  %v762_v33 = vmul.f32 %v3290_v34, %v3306_v48  ;;  %v2695_v13 = vadd.s32 4294967169, %v774_v55 }
 0x341   : > { %v3956_v23 = vshrl.u32 %v5699_v38, %v3828_v57  ;;  %v3960_v28 = vshrl.u32 %v5695_v51, %v3828_v57  ;;  %v1397_v35 = vsub.s32 0, %v3933_v37  ;;  %vm1820_vm15 = vcmp.lt.s32.totalorder %v3896_v45, 2 }
 0x342   : > { %v5722_v31 = vshll.u32 %v3552_v6, %v3765_v44  ;;  %v3967_v21 = vadd.s32 %v1742_v4, %v1738_v59  ;;  %v1830_v34 = vsel %vm1820_vm15, %v1827_v11, %v1829_v56  ;;  %v780_v14 = vadd.s32 1, %v2695_v13 }
 0x343   : > { %v1079_v24 = vand.u32 2147483647, %v1078_v42  ;;  %v1175_v27 = vsub.s32 32, %v3910_v29  ;;  %v1834_v1 = vsel %vm1820_vm15, %v1831_v2, %v1833_v17  ;;  %v3974_v7 = vshll.u32 %v1795_v40, 8 }
 0x344   : > { %v1074_v25 = vor.u32 %v1073_v0, %v5722_v31  ;;  %v3976_v3 = vadd.s32 127, %v1179_v60  ;;  %vm2714_vm0 = vcmp.lt.s32.totalorder %v2713_v61, 0  ;;  %v3979_v6 = vadd.f32 %v3292_v36, %v762_v33 }
 0x345   : > { %vm781_vm3 = vcmp.gt.s32.totalorder %v780_v14, 0  ;;  %v2716_v44 = vmin.u32 %v1397_v35, %v3933_v37  ;;  %v3983_v0 = vmul.u32.u64.low %v3974_v7, %v1830_v34  ;;  %v3984_v5 = vmul.u32.u64.high %v3974_v7, %v1830_v34, %v3983_v0 }
 0x346   : > { %v782_v42 = vsel %vm781_vm3, %v780_v14, 0  ;;  %v1744_v59 = vadd.s32 536870912, %v3967_v21  ;;  %v3989_v55 = vmul.u32.u64.low %v3974_v7, %v1834_v1  ;;  %v3990_v4 = vmul.u32.u64.high %v3974_v7, %v1834_v1, %v3989_v55 }
 0x347   : > { %v784_v60 = vand.u32 31, %v782_v42  ;;  %v1081_v40 = vcvt.s32.f32 %v1074_v25  ;;  %v1159_v11 = vadd.s32 %v3483_v19, %v3478_v8  ;;  %v3995_v56 = vsel %vm2714_vm0, 0, %v2713_v61 }
 0x348   : > { %v1824_v2 = vsel %vm1822_vm10, %v1812_v10, 2102212464  ;;  %v5646_v17 = vand.u32 2147483647, %v3907_v46  ;;  %v877_v13 = vand.u32 2139095040, %v3979_v6  ;;  %v1181_v25 = vshll.u32 %v3976_v3, 23 }
 0x349   : > { %v4000_v33 = vsub.s32 32, %v784_v60  ;;  %v4003_v35 = vmul.f32 %v1081_v40, %v1079_v24  ;;  %v1177_v31 = vshrl.u32 %v1159_v11, %v1175_v27  ;;  %v1803_v34 = vshrl.u32 %v5698_v15, %v3859_v47 }
 0x34a   : > { %v1303_v8 = vsub.s32 4294967266, %v3995_v56  ;;  %v1399_v19 = vclz %v2716_v44  ;;  %v4009_v61 = vshrl.u32 %v1744_v59, 30  ;;  %v1825_v24 = vsel %vm1821_vm13, %v3923_v22, %v1824_v2 }
 0x34b   : > { %v788_v10 = vshrl.u32 %v5700_v26, %v4000_v33  ;;  %v1823_v14 = vsel %vm1819_vm12, %v1803_v34, %v3921_v39  ;;  %v791_v27 = vshrl.u32 %v5696_v9, %v4000_v33  ;;  %v794_v47 = vshrl.u32 %v5703_v49, %v4000_v33 }
 0x34c   : > { %v777_v1 = vand.u32 8388607, %v5646_v17  ;;  %v787_v3 = vshll.u32 %v5698_v15, %v784_v60  ;;  %v790_v44 = vshll.u32 %v5700_v26, %v784_v60  ;;  %v878_v59 = vshrl.u32 %v877_v13, 23 }
 0x34d   : > { %v4027_v55 = vshrl.u32 %v782_v42, 5  ;;  %v793_v39 = vshll.u32 %v5696_v9, %v784_v60  ;;  %v796_v22 = vshll.u32 %v5703_v49, %v784_v60  ;;  %v797_v40 = vshrl.u32 %v5699_v38, %v4000_v33 }
 0x34e   : > { %vm1001_vm4 = vcmp.lt.s32.totalorder %v3299_v43, 0  ;;  %vm1844_vm5 = vc.u32 %v3990_v4, %v3983_v0  ;;  %v1845_v11 = vadd.s32 1, %v3984_v5  ;;  %v4037_v2 = vor.u32 %v788_v10, %v787_v3 }
 0x34f   : > { %v4039_v34 = vor.u32 %v791_v27, %v790_v44  ;;  %v795_v42 = vor.u32 %v794_v47, %v793_v39  ;;  %v798_v13 = vor.u32 %v797_v40, %v796_v22  ;;  %v799_v17 = vshll.u32 %v5699_v38, %v784_v60 }
 0x350   : > { %v800_v36 = vshrl.u32 %v5695_v51, %v4000_v33  ;;  %v2717_v57 = vadd.s32 4294967294, %v1399_v19  ;;  %v1746_v46 = vshll.u32 %v4009_v61, 30  ;;  %v1826_v12 = vsel %vm1820_vm15, %v1823_v14, %v1825_v24 }
 0x351   : > { %v778_v48 = vor.u32 8388608, %v777_v1  ;;  %vm802_vm6 = vcmp.lt.s32.totalorder %v4027_v55, 1  ;;  %vm805_vm7 = vcmp.lt.s32.totalorder %v4027_v55, 4  ;;  %v2699_v10 = vadd.s32 4294967169, %v878_v59 }
 0x352   : > { %v801_v30 = vor.u32 %v800_v36, %v799_v17  ;;  %v5723_v27 = vand.u32 2147483647, %v3299_v43  ;;  %v1846_v19 = vsel %vm1844_vm5, %v1845_v11, %v3984_v5  ;;  %vm804_vm9 = vcmp.lt.s32.totalorder %v4027_v55, 3 }
 0x353   : > { %v810_v45 = vsel %vm802_vm6, %v4037_v2, %v4039_v34  ;;  %v811_v36 = vsel %vm805_vm7, %v798_v13, 920167782  ;;  %v1842_v17 = vmul.u32 %v3974_v7, %v1826_v12  ;;  %v814_v24 = vsel %vm802_vm6, %v4039_v34, %v795_v42 }
 0x354   : > { %vm4051_vm8 = vcmp.le.f32.partialorder %v5723_v27, 0.7853982  ;;  %v812_v14 = vsel %vm804_vm9, %v795_v42, %v811_v36  ;;  %v815_v5 = vsel %vm805_vm7, %v801_v30, 1326507024  ;;  %v1176_v47 = vshll.u32 %v3703_v54, %v3910_v29 }
 0x355   : > { %vm2718_vm10 = vcmp.lt.s32.totalorder %v2717_v57, 0  ;;  %v4077_v1 = vsub.s32 %v3967_v21, %v1746_v46  ;;  %vm803_vm11 = vcmp.lt.s32.totalorder %v4027_v55, 2  ;;  %v4080_v12 = vadd.s32 %v1846_v19, %v1842_v17 }
 0x356   : > { %v813_v7 = vsel %vm803_vm11, %v810_v45, %v812_v14  ;;  %v816_v3 = vsel %vm804_vm9, %v798_v13, %v815_v5  ;;  %v884_v44 = vadd.s32 1, %v2699_v10  ;;  %v1182_v59 = vor.u32 4788187, %v1181_v25 }
 0x357   : > { %v1304_v30 = vadd.s32 127, %v1303_v8  ;;  %v817_v54 = vsel %vm803_vm11, %v814_v24, %v816_v3  ;;  %v4088_v29 = vshll.u32 %v778_v48, 8  ;;  %v1083_v46 = vxor.u32 2147483648, %v4003_v35 }
 0x358   : > { %v5726_v21 = vsub.s32 4, %v3502_v58  ;;  %v1178_v22 = vor.u32 %v1177_v31, %v1176_v47  ;;  %v1299_v40 = vsub.s32 32, %v3995_v56  ;;  %v1402_v11 = vsel %vm2718_vm10, 0, %v2717_v57 }
 0x359   : > { %v4098_v25 = vmul.u32.u64.low %v4088_v29, %v813_v7  ;;  %v4099_v8 = vmul.u32.u64.high %v4088_v29, %v813_v7, %v4098_v25  ;;  %vm885_vm12 = vcmp.gt.s32.totalorder %v884_v44, 0  ;;  %v1749_v48 = vsub.s32 0, %v4077_v1 }
 0x35a   : > { %v1086_v39 = vsel %vm1001_vm4, %v5726_v21, %v3502_v58  ;;  %v1848_v13 = vadd.s32 536870912, %v4080_v12  ;;  %v4105_v10 = vmul.u32.u64.low %v4088_v29, %v817_v54  ;;  %v4106_v27 = vmul.u32.u64.high %v4088_v29, %v817_v54, %v4105_v10  ;;  %v5728_v54 = vld [vmem:[#allocation27_spill] sm:$0xff] }
 0x35b   : > { %vm2278_vm13 = vcmp.lt.s32.totalorder %v3735_v63, 4  ;;  %vm1105_vm15 = vcmp.lt.s32.totalorder %v3311_v53, 0  ;;  %v1183_v58 = vand.u32 2147483647, %v1182_v59  ;;  %v1283_v57 = vadd.s32 %v3582_v41, %v3593_v62 }
 0x35c   : > { %v1305_v31 = vshll.u32 %v1304_v30, 23  ;;  %v886_v19 = vsel %vm885_vm12, %v884_v44, 0  ;;  %v4114_v45 = vor.u32 %v3956_v23, %v3832_v50  ;;  %v1084_v17 = vsel %vm1001_vm4, %v1083_v46, %v4003_v35 }
 0x35d   : > { %v1088_v14 = vsel %vm4051_vm8, 0, %v1086_v39  ;;  %v1185_v24 = vcvt.s32.f32 %v1178_v22  ;;  %v1301_v5 = vshrl.u32 %v1283_v57, %v1299_v40  ;;  %v1407_v47 = vsub.s32 4294967266, %v1402_v11 }
 0x35e   : > { %5727 = vst [vmem:[#allocation46_spill] sm:$0xff] %v4114_v45  ;;  %v807_v41 = vsel %vm805_vm7, %v795_v42, 2102212464  ;;  %v2728_v62 = vmin.u32 %v1749_v48, %v4077_v1  ;;  %v4126_v50 = vshrl.u32 %v1848_v13, 30  ;;  %v786_v23 = vshrl.u32 %v5698_v15, %v4000_v33 }
 0x35f   : > { %v888_v7 = vand.u32 31, %v886_v19  ;;  %v1186_v3 = vmul.f32 %v1185_v24, %v1183_v58  ;;  %v1300_v35 = vshll.u32 %v3811_v52, %v3995_v56  ;;  %v1306_v44 = vor.u32 4788187, %v1305_v31 }
 0x360   : > { %v1403_v59 = vsub.s32 32, %v1402_v11  ;;  %v1087_v30 = vsel %vm4051_vm8, %v3299_v43, %v1084_v17  ;;  %v1189_v42 = vsub.s32 4, %v5728_v54  ;;  %v806_v46 = vsel %vm802_vm6, %v786_v23, %v4037_v2 }
 0x361   : > { %v808_v33 = vsel %vm804_vm9, %v4039_v34, %v807_v41  ;;  %v1302_v21 = vor.u32 %v1301_v5, %v1300_v35  ;;  %v1387_v52 = vadd.s32 %v3723_v32, %v3740_v16  ;;  %v1408_v56 = vadd.s32 127, %v1407_v47 }
 0x362   : > { %v828_v39 = vadd.s32 1, %v4099_v8  ;;  %v1751_v22 = vclz %v2728_v62  ;;  %v1850_v60 = vshll.u32 %v4126_v50, 30  ;;  %vm827_vm0 = vc.u32 %v4106_v27, %v4098_v25 }
 0x363   : > { %v4148_v40 = vsub.s32 32, %v888_v7  ;;  %v1187_v2 = vxor.u32 2147483648, %v1186_v3  ;;  %v1307_v48 = vand.u32 2147483647, %v1306_v44  ;;  %v1405_v13 = vshrl.u32 %v1387_v52, %v1403_v59 }
 0x364   : > { %v809_v34 = vsel %vm803_vm11, %v806_v46, %v808_v33  ;;  %v4155_v32 = vsel %vm2278_vm13, %v4114_v45, 920167782  ;;  %2925 = vcosq.f32 %v1087_v30  ;;  %v1092_v16 = vadd.s32 3, %v1088_v14 }
 0x365   : > { %5729 = vst [vmem:[#allocation27_spill] sm:$0xff] %v4155_v32  ;;  %v4160_v10 = vsel %vm1105_vm15, %v1189_v42, %v5728_v54  ;;  %v5730_v58 = vand.u32 2147483647, %v3311_v53  ;;  %v1309_v55 = vcvt.s32.f32 %v1302_v21  ;;  %v1404_v31 = vshll.u32 %v3933_v37, %v1402_v11  ;;  %v5733_v42 = vld [vmem:[#allocation12_spill] sm:$0xff] }
 0x366   : > { %v1409_v17 = vshll.u32 %v1408_v56, 23  ;;  %v829_v24 = vsel %vm827_vm0, %v828_v39, %v4099_v8  ;;  %v2729_v5 = vadd.s32 4294967294, %v1751_v22  ;;  %v4171_v14 = vsub.s32 %v4080_v12, %v1850_v60 }
 0x367   : > { %vm4164_vm3 = vcmp.le.f32.partialorder %v5730_v58, 0.7853982  ;;  %v825_v47 = vmul.u32 %v4088_v29, %v809_v34  ;;  %v901_v41 = vshrl.u32 %v5699_v38, %v4148_v40  ;;  %v1188_v62 = vsel %vm1105_vm15, %v1187_v2, %v1186_v3  ;;  %v5734_v2 = vld [vmem:[#allocation6_spill] sm:$0xff] }
 0x368   : > { %v1310_v23 = vmul.f32 %v1309_v55, %v1307_v48  ;;  %v1406_v35 = vor.u32 %v1405_v13, %v1404_v31  ;;  %v904_v37 = vshrl.u32 %v5695_v51, %v4148_v40  ;;  %v5656_v8 = vand.u32 2147483647, %v3979_v6  ;;  %v5735_v48 = vld [vmem:[#allocation11_spill] sm:$0xff] }
 0x369   : > { %v4180_v11 = vadd.s32 %v829_v24, %v825_v47  ;;  %v4183_v44 = vshrl.u32 %v886_v19, 5  ;;  %v900_v12 = vshll.u32 %v5703_v49, %v888_v7  ;;  %v892_v29 = vshrl.u32 %v5700_v26, %v4148_v40 }
 0x36a   : > { %v895_v59 = vshrl.u32 %v5696_v9, %v4148_v40  ;;  %v898_v3 = vshrl.u32 %v5703_v49, %v4148_v40  ;;  %v903_v54 = vshll.u32 %v5699_v38, %v888_v7  ;;  %vm1229_vm4 = vcmp.lt.s32.totalorder %v5733_v42, 0 }
 0x36b   : > { %v1410_v46 = vor.u32 4788187, %v1409_v17  ;;  %vm2730_vm5 = vcmp.lt.s32.totalorder %v2729_v5, 0  ;;  %v1853_v19 = vsub.s32 0, %v4171_v14  ;;  %v902_v33 = vor.u32 %v901_v41, %v900_v12 }
 0x36c   : > { %v891_v21 = vshll.u32 %v5698_v15, %v888_v7  ;;  %v894_v52 = vshll.u32 %v5700_v26, %v888_v7  ;;  %v897_v56 = vshll.u32 %v5696_v9, %v888_v7  ;;  %v905_v39 = vor.u32 %v904_v37, %v903_v54 }
 0x36d   : > { %2927 = vsinq.f32 %v1087_v30  ;;  %v831_v22 = vadd.s32 536870912, %v4180_v11  ;;  %v881_v60 = vand.u32 8388607, %v5656_v8  ;;  %v1903_v13 = vmul.f32 %v5735_v48, %v5734_v2 }
 0x36e   : > { %v5736_v34 = vand.u32 2147483647, %v5733_v42  ;;  %v4209_v55 = vor.u32 %v892_v29, %v891_v21  ;;  %v4211_v31 = vor.u32 %v895_v59, %v894_v52  ;;  %v899_v7 = vor.u32 %v898_v3, %v897_v56  ;;  %v4214_v30 = vpop.eup %2925 }
 0x36f   : > { %vm909_vm7 = vcmp.lt.s32.totalorder %v4183_v44, 4  ;;  %v1191_v17 = vsel %vm4164_vm3, %v3311_v53, %v1188_v62  ;;  %v4220_v24 = vsel %vm2730_vm5, 0, %v2729_v5  ;;  %v2732_v47 = vmin.u32 %v1853_v19, %v4171_v14  ;;  %v5739_v62 = vld [vmem:[#allocation9_spill] sm:$0xff] }
 0x370   : > { %vm4205_vm6 = vcmp.le.f32.partialorder %v5736_v34, 0.7853982  ;;  %v915_v41 = vsel %vm909_vm7, %v902_v33, 920167782  ;;  %v1311_v37 = vxor.u32 2147483648, %v1310_v23  ;;  %v1413_v29 = vcvt.s32.f32 %v1406_v35 }
 0x371   : > { %v1411_v12 = vand.u32 2147483647, %v1410_v46  ;;  %v919_v59 = vsel %vm909_vm7, %v905_v39, 1326507024  ;;  %v4227_v3 = vshrl.u32 %v831_v22, 30  ;;  %vm906_vm8 = vcmp.lt.s32.totalorder %v4183_v44, 1 }
 0x372   : > { %vm908_vm9 = vcmp.lt.s32.totalorder %v4183_v44, 3  ;;  %v4232_v5 = vadd.f32 %v5739_v62, %v1903_v13  ;;  %v1759_v54 = vsub.s32 4294967266, %v4220_v24  ;;  %v882_v19 = vor.u32 8388608, %v881_v60  ;;  %v5740_v13 = vld [vmem:[#allocation17_spill] sm:$0xff] }
 0x373   : > { %v914_v35 = vsel %vm906_vm8, %v4209_v55, %v4211_v31  ;;  %v916_v46 = vsel %vm908_vm9, %v899_v7, %v915_v41  ;;  %v4241_v21 = vand.u32 3, %v1092_v16  ;;  %v1855_v52 = vclz %v2732_v47 }
 0x374   : > { %v918_v56 = vsel %vm906_vm8, %v4211_v31, %v899_v7  ;;  %v920_v39 = vsel %vm908_vm9, %v902_v33, %v919_v59  ;;  %v1192_v22 = vsel %vm4164_vm3, 0, %v4160_v10  ;;  %v1312_v60 = vsel %vm1229_vm4, %v1311_v37, %v1310_v23 }
 0x375   : > { %vm1333_vm10 = vcmp.lt.s32.totalorder %v5740_v13, 0  ;;  %v1414_v34 = vmul.f32 %v1413_v29, %v1411_v12  ;;  %vm907_vm11 = vcmp.lt.s32.totalorder %v4183_v44, 2  ;;  %2929 = vcosq.f32 %v1191_v17  ;;  %v5741_v12 = vld [vmem:[#allocation37_spill] sm:$0xff] }
 0x376   : > { %v833_v16 = vshll.u32 %v4227_v3, 30  ;;  %v917_v47 = vsel %vm907_vm11, %v914_v35, %v916_v46  ;;  %v1914_v33 = vand.u32 2139095040, %v4232_v5  ;;  %2931 = vsinq.f32 %v1191_v17 }
 0x377   : > { %v1760_v41 = vadd.s32 127, %v1759_v54  ;;  %v921_v10 = vsel %vm907_vm11, %v918_v56, %v920_v39  ;;  %v4261_v57 = vshll.u32 %v882_v19, 8  ;;  %v2928_v23 = vpop.eup %2927  ;;  %v1196_v37 = vadd.s32 3, %v1192_v22 }
 0x378   : > { %v1313_v29 = vsub.s32 4, %v5741_v12  ;;  %v1315_v59 = vsel %vm4205_vm6, %v5733_v42, %v1312_v60  ;;  %v2733_v8 = vadd.s32 4294967294, %v1855_v52  ;;  %v1415_v36 = vxor.u32 2147483648, %v1414_v34  ;;  %v5745_v60 = vld [vmem:[#allocation43_spill] sm:$0xff] }
 0x379   : > { %v1755_v35 = vsub.s32 32, %v4220_v24  ;;  %v4269_v17 = vmul.u32.u64.low %v4261_v57, %v917_v47  ;;  %v4270_v54 = vmul.u32.u64.high %v4261_v57, %v917_v47, %v4269_v17  ;;  %v4274_v19 = vsub.s32 %v4180_v11, %v833_v16 }
 0x37a   : > { %v4277_v46 = vmul.u32.u64.low %v4261_v57, %v921_v10  ;;  %v4278_v56 = vmul.u32.u64.high %v4261_v57, %v921_v10, %v4277_v46  ;;  %v1915_v39 = vshrl.u32 %v1914_v33, 23  ;;  %vm1095_vm12 = vcmp.eq.s32.totalorder %v4241_v21, 0 }
 0x37b   : > { %v5742_v52 = vand.u32 2147483647, %v5740_v13  ;;  %v1739_v47 = vadd.s32 %v5745_v60, %v3883_v18  ;;  %v1761_v45 = vshll.u32 %v1760_v41, 23  ;;  %vm1098_vm0 = vcmp.eq.s32.totalorder %v4241_v21, 2 }
 0x37c   : > { %v4290_v11 = vand.u32 3, %v1196_v37  ;;  %2933 = vcosq.f32 %v1315_v59  ;;  %vm2734_vm3 = vcmp.lt.s32.totalorder %v2733_v8, 0  ;;  %v1314_v16 = vsel %vm1229_vm4, %v1313_v29, %v5741_v12 }
 0x37d   : > { %vm4283_vm15 = vcmp.le.f32.partialorder %v5742_v52, 0.7853982  ;;  %2935 = vsinq.f32 %v1315_v59  ;;  %v1757_v33 = vshrl.u32 %v1739_v47, %v1755_v35  ;;  %v911_v10 = vsel %vm909_vm7, %v899_v7, 2102212464 }
 0x37e   : > { %vm1094_vm5 = vcmp.lt.s32.totalorder %v4241_v21, 2  ;;  %v1416_v18 = vsel %vm1333_vm10, %v1415_v36, %v1414_v34  ;;  %v836_v41 = vsub.s32 0, %v4274_v19  ;;  %v890_v37 = vshrl.u32 %v5698_v15, %v4148_v40 }
 0x37f   : > { %v2735_v46 = vadd.s32 4294967169, %v1915_v39  ;;  %v1099_v52 = vxor.u32 2147483648, %v4214_v30  ;;  %v1756_v12 = vshll.u32 %v4077_v1, %v4220_v24  ;;  %v1762_v29 = vor.u32 4788187, %v1761_v45  ;;  %v2930_v7 = vpop.eup %2929 }
 0x380   : > { %v4306_v59 = vsel %vm2734_vm3, 0, %v2733_v8  ;;  %v1096_v35 = vxor.u32 2147483648, %v2928_v23  ;;  %v1316_v60 = vsel %vm4205_vm6, 0, %v1314_v16  ;;  %v910_v36 = vsel %vm906_vm8, %v890_v37, %v4209_v55  ;;  %v2932_v34 = vpop.eup %2931 }
 0x381   : > { %v912_v40 = vsel %vm908_vm9, %v4211_v31, %v911_v10  ;;  %vm1199_vm4 = vcmp.eq.s32.totalorder %v4290_v11, 0  ;;  %vm1202_vm7 = vcmp.eq.s32.totalorder %v4290_v11, 2  ;;  %v1419_v1 = vsel %vm4283_vm15, %v5740_v13, %v1416_v18 }
 0x382   : > { %v1758_v45 = vor.u32 %v1757_v33, %v1756_v12  ;;  %v932_v8 = vadd.s32 1, %v4270_v54  ;;  %v1863_v58 = vsub.s32 4294967266, %v4306_v59  ;;  %v2696_v55 = vmin.u32 %v836_v41, %v4274_v19  ;;  %v5746_v41 = vld [vmem:[#allocation44_spill] sm:$0xff] }
 0x383   : > { %vm931_vm6 = vc.u32 %v4278_v56, %v4269_v17  ;;  %v1921_v31 = vadd.s32 1, %v2735_v46  ;;  %v1100_v24 = vsel %vm1098_vm0, %v1099_v52, %v2928_v23  ;;  %v1320_v39 = vadd.s32 3, %v1316_v60 }
 0x384   : > { %v1763_v47 = vand.u32 2147483647, %v1762_v29  ;;  %v913_v16 = vsel %vm907_vm11, %v910_v36, %v912_v40  ;;  %vm1091_vm8 = vweird.f32 %v3299_v43  ;;  %v1097_v33 = vsel %vm1095_vm12, %v4214_v30, %v1096_v35  ;;  %v5747_v40 = vld [vmem:[#allocation19_spill] sm:$0xff]  ;;  %v4377_v43 = vpop.permute.xlu1 %1208 }
 0x385   : > { %v1200_v10 = vxor.u32 2147483648, %v2932_v34  ;;  %v1203_v18 = vxor.u32 2147483648, %v2930_v7  ;;  %v1417_v37 = vsub.s32 4, %v5746_v41  ;;  %2937 = vcosq.f32 %v1419_v1 }
 0x386   : > { %v1765_v46 = vcvt.s32.f32 %v1758_v45  ;;  %v1769_v12 = vsub.s32 4, %v4009_v61  ;;  %v933_v23 = vsel %vm931_vm6, %v932_v8, %v4270_v54  ;;  %v2934_v52 = vpop.eup %2933  ;;  %v1864_v29 = vadd.s32 127, %v1863_v58 }
 0x387   : > { %v838_v44 = vclz %v2696_v55  ;;  %v929_v60 = vmul.u32 %v4261_v57, %v913_v16  ;;  %vm1922_vm9 = vcmp.gt.s32.totalorder %v1921_v31, 0  ;;  %v2936_v36 = vpop.eup %2935  ;;  %v1101_v30 = vsel %vm1094_vm5, %v1097_v33, %v1100_v24 }
 0x388   : > { %v1321_v35 = vand.u32 3, %v1320_v39  ;;  %vm1685_vm11 = vcmp.lt.s32.totalorder %v5747_v40, 0  ;;  %v1766_v32 = vmul.f32 %v1765_v46, %v1763_v47  ;;  %v1418_v45 = vsel %vm1333_vm10, %v1417_v37, %v5746_v41 }
 0x389   : > { %2939 = vsinq.f32 %v1419_v1  ;;  %v1859_v54 = vsub.s32 32, %v4306_v59  ;;  %v4345_v8 = vadd.s32 %v933_v23, %v929_v60  ;;  %vm1195_vm12 = vweird.f32 %v3311_v53 }
 0x38a   : > { %v1204_v57 = vsel %vm1202_vm7, %v1203_v18, %v2932_v34  ;;  %v5748_v21 = vand.u32 2147483647, %v5747_v40  ;;  %v1770_v55 = vsel %vm1685_vm11, %v1769_v12, %v4009_v61  ;;  %v1923_v1 = vsel %vm1922_vm9, %v1921_v31, 0 }
 0x38b   : > { %v1201_v24 = vsel %vm1199_vm4, %v2930_v7, %v1200_v10  ;;  %v1843_v39 = vadd.s32 %v3983_v0, %v3990_v4  ;;  %v1865_v47 = vshll.u32 %v1864_v29, 23  ;;  %v2697_v16 = vadd.s32 4294967294, %v838_v44 }
 0x38c   : > { %vm4352_vm0 = vcmp.le.f32.partialorder %v5748_v21, 0.7853982  ;;  %v1324_v34 = vxor.u32 2147483648, %v2936_v36  ;;  %v1327_v33 = vxor.u32 2147483648, %v2934_v52  ;;  %v1420_v18 = vsel %vm4283_vm15, 0, %v1418_v45 }
 0x38d   : > { %v1767_v41 = vxor.u32 2147483648, %v1766_v32  ;;  %v1772_v37 = vsel %vm4352_vm0, 0, %v1770_v55  ;;  %v1861_v46 = vshrl.u32 %v1843_v39, %v1859_v54  ;;  %v935_v61 = vadd.s32 536870912, %v4345_v8 }
 0x38e   : > { %v1925_v31 = vand.u32 31, %v1923_v1  ;;  %v1102_v7 = vsel %vm1091_vm8, nan, %v1101_v30  ;;  %vm1198_vm10 = vcmp.lt.s32.totalorder %v4290_v11, 2  ;;  %vm1323_vm3 = vcmp.eq.s32.totalorder %v1321_v35, 0 }
 0x38f   : > { %vm1326_vm5 = vcmp.eq.s32.totalorder %v1321_v35, 2  ;;  %v1205_v0 = vsel %vm1198_vm10, %v1201_v24, %v1204_v57  ;;  %v1860_v4 = vshll.u32 %v4171_v14, %v4306_v59  ;;  %v1866_v22 = vor.u32 4788187, %v1865_v47  ;;  %v4373_v10 = vpop.eup %2937  ;;  %v5754_v57 = vld [vmem:[#allocation8_spill] sm:$0xff] }
 0x390   : > { %vm2698_vm15 = vcmp.lt.s32.totalorder %v2697_v16, 0  ;;  %v1328_v12 = vsel %vm1326_vm5, %v1327_v33, %v2936_v36  ;;  %v1424_v23 = vadd.s32 3, %v1420_v18  ;;  %v1768_v29 = vsel %vm1685_vm11, %v1767_v41, %v1766_v32 }
 0x391   : > { %v1776_v44 = vadd.s32 3, %v1772_v37  ;;  %v1325_v60 = vsel %vm1323_vm3, %v2934_v52, %v1324_v34  ;;  %v1862_v11 = vor.u32 %v1861_v46, %v1860_v4  ;;  %v4379_v30 = vshrl.u32 %v935_v61, 30 }
 0x392   : > { %v4381_v45 = vsub.s32 32, %v1925_v31  ;;  %v5751_v14 = vor.u32 %v3960_v28, %v3854_v20  ;;  %v4391_v36 = vmul.f32 %v4377_v43, %v1102_v7  ;;  %vm1322_vm4 = vcmp.lt.s32.totalorder %v1321_v35, 2 }
 0x393   : > { %v4393_v32 = vsel %vm2698_vm15, 0, %v2697_v16  ;;  %v4395_v54 = vpop.eup %2939  ;;  %v4399_v52 = vsel %vm1195_vm12, nan, %v1205_v0  ;;  %v1771_v20 = vsel %vm4352_vm0, %v5747_v40, %v1768_v29  ;;  %v1867_v28 = vand.u32 2147483647, %v1866_v22  ;;  %v5755_v29 = vld [vmem:[#allocation28_spill] sm:$0xff] }
 0x394   : > { %v4388_v59 = vsel %vm2278_vm13, %v5751_v14, 1326507024  ;;  %5753 = vst [vmem:[#allocation6_spill] sm:$0xff] %v4391_v36  ;;  %v1904_v21 = vmul.f32 %v5735_v48, %v5754_v57  ;;  %v1329_v55 = vsel %vm1322_vm4, %v1325_v60, %v1328_v12  ;;  %v4406_v24 = vand.u32 3, %v1424_v23 }
 0x395   : > { %5752 = vst [vmem:[#allocation12_spill] sm:$0xff] %v4388_v59  ;;  %v1431_v35 = vxor.u32 2147483648, %v4373_v10  ;;  %v4409_v39 = vand.u32 3, %v1776_v44  ;;  %v1869_v47 = vcvt.s32.f32 %v1862_v11  ;;  %v846_v53 = vsub.s32 4294967266, %v4393_v32 }
 0x396   : > { %v937_v16 = vshll.u32 %v4379_v30, 30  ;;  %v1938_v58 = vshrl.u32 %v5699_v38, %v4381_v45  ;;  %v1428_v34 = vxor.u32 2147483648, %v4395_v54  ;;  %2941 = vcosq.f32 %v1771_v20 }
 0x397   : > { %v5659_v48 = vand.u32 2147483647, %v4232_v5  ;;  %v1941_v33 = vshrl.u32 %v5695_v51, %v4381_v45  ;;  %v1870_v18 = vmul.f32 %v1869_v47, %v1867_v28  ;;  %v4420_v41 = vadd.f32 %v5739_v62, %v1904_v21 }
 0x398   : > { %v1929_v37 = vshrl.u32 %v5700_v26, %v4381_v45  ;;  %v1937_v46 = vshll.u32 %v5703_v49, %v1925_v31  ;;  %v4425_v61 = vshrl.u32 %v1923_v1, 5  ;;  %v1932_v7 = vshrl.u32 %v5696_v9, %v4381_v45 }
 0x399   : > { %v1935_v0 = vshrl.u32 %v5703_v49, %v4381_v45  ;;  %v1940_v4 = vshll.u32 %v5699_v38, %v1925_v31  ;;  %vm1319_vm7 = vweird.f32 %v5733_v42  ;;  %v847_v22 = vadd.s32 127, %v846_v53  ;;  %v5756_v53 = vld [vmem:[#allocation7_spill] sm:$0xff] }
 0x39a   : > { %v4434_v62 = vsub.s32 %v4345_v8, %v937_v16  ;;  %v1928_v12 = vshll.u32 %v5698_v15, %v1925_v31  ;;  %v1939_v23 = vor.u32 %v1938_v58, %v1937_v46  ;;  %vm1789_vm6 = vcmp.lt.s32.totalorder %v5755_v29, 0 }
 0x39b   : > { %v1918_v1 = vand.u32 8388607, %v5659_v48  ;;  %v1931_v44 = vshll.u32 %v5700_v26, %v1925_v31  ;;  %v1934_v60 = vshll.u32 %v5696_v9, %v1925_v31  ;;  %v1942_v11 = vor.u32 %v1941_v33, %v1940_v4 }
 0x39c   : > { %2943 = vsinq.f32 %v1771_v20  ;;  %v842_v14 = vsub.s32 32, %v4393_v32  ;;  %v4443_v28 = vor.u32 %v1929_v37, %v1928_v12  ;;  %v2018_v8 = vand.u32 2139095040, %v4420_v41 }
 0x39d   : > { %v4446_v21 = vor.u32 %v1932_v7, %v1931_v44  ;;  %v1936_v47 = vor.u32 %v1935_v0, %v1934_v60  ;;  %vm1946_vm8 = vcmp.lt.s32.totalorder %v4425_v61, 4  ;;  %v1447_v16 = vmul.f32 %v5756_v53, %v5734_v2  ;;  %v5760_v60 = vld [vmem:[#allocation10_spill] sm:$0xff] }
 0x39e   : > { %v5757_v58 = vand.u32 2147483647, %v5755_v29  ;;  %v826_v20 = vadd.s32 %v4098_v25, %v4106_v27  ;;  %v848_v33 = vshll.u32 %v847_v22, 23  ;;  %v940_v37 = vsub.s32 0, %v4434_v62 }
 0x39f   : > { %v1952_v46 = vsel %vm1946_vm8, %v1939_v23, 920167782  ;;  %v1871_v7 = vxor.u32 2147483648, %v1870_v18  ;;  %v1873_v0 = vsub.s32 4, %v4126_v50  ;;  %v1919_v4 = vor.u32 8388608, %v1918_v1 }
 0x3a0   : > { %vm4453_vm9 = vcmp.le.f32.partialorder %v5757_v58, 0.7853982  ;;  %v1956_v2 = vsel %vm1946_vm8, %v1942_v11, 1326507024  ;;  %vm1426_vm11 = vcmp.lt.s32.totalorder %v4406_v24, 2  ;;  %v843_v12 = vshll.u32 %v4274_v19, %v4393_v32  ;;  %v4470_v25 = vpop.eup %2941 }
 0x3a1   : > { %v844_v44 = vshrl.u32 %v826_v20, %v842_v14  ;;  %vm1943_vm12 = vcmp.lt.s32.totalorder %v4425_v61, 1  ;;  %vm1945_vm0 = vcmp.lt.s32.totalorder %v4425_v61, 3  ;;  %v2019_v1 = vshrl.u32 %v2018_v8, 23 }
 0x3a2   : > { %v1951_v27 = vsel %vm1943_vm12, %v4443_v28, %v4446_v21  ;;  %v1953_v22 = vsel %vm1945_vm0, %v1936_v47, %v1952_v46  ;;  %v4479_v11 = vadd.f32 %v5760_v60, %v1447_v16  ;;  %v849_v19 = vor.u32 4788187, %v848_v33 }
 0x3a3   : > { %v2700_v32 = vmin.u32 %v940_v37, %v4434_v62  ;;  %v1955_v14 = vsel %vm1943_vm12, %v4446_v21, %v1936_v47  ;;  %v1957_v58 = vsel %vm1945_vm0, %v1939_v23, %v1956_v2  ;;  %v4489_v20 = vsel %vm1319_vm7, nan, %v1329_v55 }
 0x3a4   : > { %vm1423_vm10 = vweird.f32 %v5740_v13  ;;  %vm1427_vm3 = vcmp.eq.s32.totalorder %v4406_v24, 0  ;;  %vm1430_vm5 = vcmp.eq.s32.totalorder %v4406_v24, 2  ;;  %vm1944_vm15 = vcmp.lt.s32.totalorder %v4425_v61, 2 }
 0x3a5   : > { %v1432_v8 = vsel %vm1430_vm5, %v1431_v35, %v4395_v54  ;;  %v1872_v16 = vsel %vm1789_vm6, %v1871_v7, %v1870_v18  ;;  %v845_v23 = vor.u32 %v844_v44, %v843_v12  ;;  %v1954_v42 = vsel %vm1944_vm15, %v1951_v27, %v1953_v22 }
 0x3a6   : > { %v1958_v55 = vsel %vm1944_vm15, %v1955_v14, %v1957_v58  ;;  %v4504_v33 = vshll.u32 %v1919_v4, 8  ;;  %v2739_v37 = vadd.s32 4294967169, %v2019_v1  ;;  %v1458_v46 = vand.u32 2139095040, %v4479_v11  ;;  %v2944_v2 = vpop.eup %2943 }
 0x3a7   : > { %v1429_v35 = vsel %vm1427_vm3, %v4373_v10, %v1428_v34  ;;  %vm1779_vm4 = vcmp.eq.s32.totalorder %v4409_v39, 0  ;;  %v1874_v18 = vsel %vm1789_vm6, %v1873_v0, %v4126_v50  ;;  %v850_v7 = vand.u32 2147483647, %v849_v19 }
 0x3a8   : > { %v942_v12 = vclz %v2700_v32  ;;  %v4517_v4 = vsel %vm4453_vm9, %v5755_v29, %v1872_v16  ;;  %v4520_v44 = vmul.u32.u64.low %v4504_v33, %v1954_v42  ;;  %v4521_v27 = vmul.u32.u64.high %v4504_v33, %v1954_v42, %v4520_v44 }
 0x3a9   : > { %v1459_v54 = vshrl.u32 %v1458_v46, 23  ;;  %vm1782_vm7 = vcmp.eq.s32.totalorder %v4409_v39, 2  ;;  %v852_v10 = vcvt.s32.f32 %v845_v23  ;;  %v1433_v50 = vsel %vm1426_vm11, %v1429_v35, %v1432_v8  ;;  %v5761_v8 = vld [vmem:[#allocation45_spill] sm:$0xff] }
 0x3aa   : > { %v4526_v34 = vmul.u32.u64.low %v4504_v33, %v1958_v55  ;;  %v4527_v22 = vmul.u32.u64.high %v4504_v33, %v1958_v55, %v4526_v34  ;;  %v856_v0 = vsub.s32 4, %v4227_v3  ;;  %v2025_v1 = vadd.s32 1, %v2739_v37 }
 0x3ab   : > { %v2719_v19 = vadd.s32 4294967169, %v1459_v54  ;;  %v1876_v32 = vsel %vm4453_vm9, 0, %v1874_v18  ;;  %2945 = vcosq.f32 %v4517_v4  ;;  %v853_v14 = vmul.f32 %v852_v10, %v850_v7 }
 0x3ac   : > { %v2701_v58 = vadd.s32 4294967294, %v942_v12  ;;  %v1780_v16 = vxor.u32 2147483648, %v2944_v2  ;;  %v1783_v23 = vxor.u32 2147483648, %v4470_v25  ;;  %v1948_v42 = vsel %vm1946_vm8, %v1936_v47, 2102212464 }
 0x3ad   : > { %v1465_v55 = vadd.s32 1, %v2719_v19  ;;  %v1434_v24 = vsel %vm1423_vm10, nan, %v1433_v50  ;;  %vm1775_vm6 = vweird.f32 %v5747_v40  ;;  %v5762_v37 = vand.u32 2147483647, %v5761_v8 }
 0x3ae   : > { %vm772_vm9 = vcmp.lt.s32.totalorder %v5761_v8, 0  ;;  %v1927_v46 = vshrl.u32 %v5698_v15, %v4381_v45  ;;  %v1880_v35 = vadd.s32 3, %v1876_v32  ;;  %vm2026_vm8 = vcmp.gt.s32.totalorder %v2025_v1, 0 }
 0x3af   : > { %vm4543_vm11 = vcmp.le.f32.partialorder %v5762_v37, 0.7853982  ;;  %v857_v47 = vsel %vm772_vm9, %v856_v0, %v4227_v3  ;;  %vm1466_vm10 = vcmp.gt.s32.totalorder %v1465_v55, 0  ;;  %v854_v13 = vxor.u32 2147483648, %v853_v14 }
 0x3b0   : > { %vm2702_vm3 = vcmp.lt.s32.totalorder %v2701_v58, 0  ;;  %v1947_v18 = vsel %vm1943_vm12, %v1927_v46, %v4443_v28  ;;  %v1949_v7 = vsel %vm1945_vm0, %v4446_v21, %v1948_v42  ;;  %v1781_v45 = vsel %vm1779_vm4, %v4470_v25, %v1780_v16  ;;  %v1437_v25 = vpop.permute.xlu1 %1436 }
 0x3b1   : > { %v1784_v12 = vsel %vm1782_vm7, %v1783_v23, %v2944_v2  ;;  %v1969_v3 = vadd.s32 1, %v4521_v27  ;;  %v1467_v54 = vsel %vm1466_vm10, %v1465_v55, 0  ;;  %v859_v10 = vsel %vm4543_vm11, 0, %v857_v47 }
 0x3b2   : > { %vm1968_vm12 = vc.u32 %v4527_v22, %v4520_v44  ;;  %v5658_v28 = vand.u32 2147483647, %v4420_v41  ;;  %v2027_v34 = vsel %vm2026_vm8, %v2025_v1, 0  ;;  %v4572_v21 = vmul.f32 %v4377_v43, %v4399_v52 }
 0x3b3   : > { %vm1778_vm0 = vcmp.lt.s32.totalorder %v4409_v39, 2  ;;  %v4575_v2 = vsel %vm2702_vm3, 0, %v2701_v58  ;;  %v1950_v50 = vsel %vm1944_vm15, %v1947_v18, %v1949_v7  ;;  %v4580_v0 = vmul.f32 %v1437_v25, %v4489_v20 }
 0x3b4   : > { %5765 = vst [vmem:[#allocation11_spill] sm:$0xff] %v4572_v21  ;;  %v1785_v19 = vsel %vm1778_vm0, %v1781_v45, %v1784_v12  ;;  %v855_v32 = vsel %vm772_vm9, %v854_v13, %v853_v14  ;;  %v1469_v1 = vand.u32 31, %v1467_v54  ;;  %v4584_v16 = vmul.f32 %v1437_v25, %v1434_v24 }
 0x3b5   : > { %5766 = vst [vmem:[#allocation9_spill] sm:$0xff] %v4580_v0  ;;  %v863_v43 = vadd.s32 3, %v859_v10  ;;  %v1970_v52 = vsel %vm1968_vm12, %v1969_v3, %v4521_v27  ;;  %v2029_v23 = vand.u32 31, %v2027_v34  ;;  %v4587_v39 = vpop.eup %2945  ;;  %v4589_v58 = vand.u32 3, %v1880_v35 }
 0x3b6   : > { %5767 = vst [vmem:[#allocation17_spill] sm:$0xff] %v4584_v16  ;;  %v946_v61 = vsub.s32 32, %v4575_v2  ;;  %v1966_v20 = vmul.u32 %v4504_v33, %v1950_v50  ;;  %v4595_v42 = vand.u32 8388607, %v5658_v28  ;;  %v4599_v14 = vsel %vm1775_vm6, nan, %v1785_v19 }
 0x3b7   : > { %v4604_v27 = vsel %vm4543_vm11, %v5761_v8, %v855_v32  ;;  %v950_v55 = vsub.s32 4294967266, %v4575_v2  ;;  %v1448_v24 = vmul.f32 %v5756_v53, %v5754_v57  ;;  %2947 = vsinq.f32 %v4517_v4 }
 0x3b8   : > { %v930_v33 = vadd.s32 %v4269_v17, %v4278_v56  ;;  %v4612_v37 = vadd.s32 %v1970_v52, %v1966_v20  ;;  %v4614_v40 = vsub.s32 32, %v1469_v1  ;;  %v4617_v35 = vand.u32 3, %v863_v43 }
 0x3b9   : > { %v4620_v47 = vsub.s32 32, %v2029_v23  ;;  %2949 = vcosq.f32 %v4604_v27  ;;  %v4628_v56 = vadd.s32 127, %v950_v55  ;;  %v4630_v4 = vshrl.u32 %v2027_v34, 5 }
 0x3ba   : > { %v4625_v53 = vshrl.u32 %v930_v33, %v946_v61  ;;  %v2032_v13 = vshll.u32 %v5698_v15, %v2029_v23  ;;  %v4634_v18 = vadd.f32 %v5760_v60, %v1448_v24  ;;  %v1972_v7 = vadd.s32 536870912, %v4612_v37 }
 0x3bb   : > { %v2035_v45 = vshll.u32 %v5700_v26, %v2029_v23  ;;  %v2038_v12 = vshll.u32 %v5696_v9, %v2029_v23  ;;  %v1482_v3 = vshrl.u32 %v5699_v38, %v4614_v40  ;;  %v2033_v10 = vshrl.u32 %v5700_v26, %v4620_v47 }
 0x3bc   : > { %5768 = vst [vmem:[#allocation37_spill] sm:$0xff] %v4634_v18  ;;  %v2036_v34 = vshrl.u32 %v5696_v9, %v4620_v47  ;;  %v2042_v25 = vshrl.u32 %v5699_v38, %v4620_v47  ;;  %v1485_v60 = vshrl.u32 %v5695_v51, %v4614_v40  ;;  %v4650_v19 = vshrl.u32 %v1467_v54, 5 }
 0x3bd   : > { %v1473_v32 = vshrl.u32 %v5700_v26, %v4614_v40  ;;  %v1481_v43 = vshll.u32 %v5703_v49, %v1469_v1  ;;  %v1476_v52 = vshrl.u32 %v5696_v9, %v4614_v40  ;;  %v1479_v61 = vshrl.u32 %v5703_v49, %v4614_v40 }
 0x3be   : > { %v1484_v20 = vshll.u32 %v5699_v38, %v1469_v1  ;;  %v1562_v55 = vand.u32 2139095040, %v4634_v18  ;;  %v2039_v24 = vshrl.u32 %v5703_v49, %v4620_v47  ;;  %v2041_v54 = vshll.u32 %v5703_v49, %v2029_v23 }
 0x3bf   : > { %v1472_v33 = vshll.u32 %v5698_v15, %v1469_v1  ;;  %v1483_v28 = vor.u32 %v1482_v3, %v1481_v43  ;;  %v4665_v48 = vshrl.u32 %v1972_v7, 30  ;;  %v1475_v46 = vshll.u32 %v5700_v26, %v1469_v1 }
 0x3c0   : > { %v1478_v31 = vshll.u32 %v5696_v9, %v1469_v1  ;;  %v1486_v57 = vor.u32 %v1485_v60, %v1484_v20  ;;  %v2043_v50 = vor.u32 %v2042_v25, %v2041_v54  ;;  %v2045_v16 = vshrl.u32 %v5695_v51, %v4620_v47 }
 0x3c1   : > { %v4669_v17 = vpop.eup %2947  ;;  %v5769_v0 = vand.u32 2147483647, %v4479_v11  ;;  %v1474_v36 = vor.u32 %v1473_v32, %v1472_v33  ;;  %v1477_v59 = vor.u32 %v1476_v52, %v1475_v46  ;;  %vm1490_vm5 = vcmp.lt.s32.totalorder %v4650_v19, 4 }
 0x3c2   : > { %v1480_v63 = vor.u32 %v1479_v61, %v1478_v31  ;;  %v1563_v7 = vshrl.u32 %v1562_v55, 23  ;;  %v4678_v43 = vor.u32 %v2033_v10, %v2032_v13  ;;  %v4680_v1 = vor.u32 %v2036_v34, %v2035_v45 }
 0x3c3   : > { %v1462_v21 = vand.u32 8388607, %v5769_v0  ;;  %v4676_v3 = vpop.eup %2949  ;;  %v2044_v25 = vshll.u32 %v5699_v38, %v2029_v23  ;;  %v1496_v60 = vsel %vm1490_vm5, %v1483_v28, 920167782  ;;  %v4685_v20 = vor.u32 %v2039_v24, %v2038_v12 }
 0x3c4   : > { %vm2050_vm15 = vcmp.lt.s32.totalorder %v4630_v4, 4  ;;  %v1500_v0 = vsel %vm1490_vm5, %v1486_v57, 1326507024  ;;  %v2723_v46 = vadd.s32 4294967169, %v1563_v7  ;;  %vm1487_vm4 = vcmp.lt.s32.totalorder %v4650_v19, 1 }
 0x3c5   : > { %v2046_v31 = vor.u32 %v2045_v16, %v2044_v25  ;;  %v2056_v13 = vsel %vm2050_vm15, %v2043_v50, 920167782  ;;  %vm1489_vm7 = vcmp.lt.s32.totalorder %v4650_v19, 3  ;;  %v1463_v23 = vor.u32 8388608, %v1462_v21 }
 0x3c6   : > { %v1495_v45 = vsel %vm1487_vm4, %v1474_v36, %v1477_v59  ;;  %v1497_v12 = vsel %vm1489_vm7, %v1480_v63, %v1496_v60  ;;  %v1569_v10 = vadd.s32 1, %v2723_v46  ;;  %vm2047_vm6 = vcmp.lt.s32.totalorder %v4630_v4, 1 }
 0x3c7   : > { %vm2049_vm11 = vcmp.lt.s32.totalorder %v4630_v4, 3  ;;  %v1499_v16 = vsel %vm1487_vm4, %v1477_v59, %v1480_v63  ;;  %v1501_v57 = vsel %vm1489_vm7, %v1483_v28, %v1500_v0  ;;  %v2055_v21 = vsel %vm2047_vm6, %v4678_v43, %v4680_v1 }
 0x3c8   : > { %v2057_v34 = vsel %vm2049_vm11, %v4685_v20, %v2056_v13  ;;  %vm1488_vm9 = vcmp.lt.s32.totalorder %v4650_v19, 2  ;;  %vm1570_vm8 = vcmp.gt.s32.totalorder %v1569_v10, 0  ;;  %v952_v32 = vshll.u32 %v4628_v56, 23 }
 0x3c9   : > { %v5770_v52 = vor.u32 8388608, %v4595_v42  ;;  %v1498_v28 = vsel %vm1488_vm9, %v1495_v45, %v1497_v12  ;;  %v1571_v55 = vsel %vm1570_vm8, %v1569_v10, 0  ;;  %vm2048_vm10 = vcmp.lt.s32.totalorder %v4630_v4, 2 }
 0x3ca   : > { %v2060_v24 = vsel %vm2050_vm15, %v2046_v31, 1326507024  ;;  %v1502_v54 = vsel %vm1488_vm9, %v1499_v16, %v1501_v57  ;;  %v4724_v33 = vshll.u32 %v1463_v23, 8  ;;  %v5771_v56 = vshll.u32 %v4434_v62, %v4575_v2 }
 0x3cb   : > { %v4715_v61 = vshll.u32 %v5770_v52, 8  ;;  %v1974_v7 = vshll.u32 %v4665_v48, 30  ;;  %v2058_v25 = vsel %vm2048_vm10, %v2055_v21, %v2057_v34  ;;  %v1573_v60 = vand.u32 31, %v1571_v55 }
 0x3cc   : > { %v4730_v42 = vor.u32 %v4625_v53, %v5771_v56  ;;  %v2059_v0 = vsel %vm2047_vm6, %v4680_v1, %v4685_v20  ;;  %v4740_v46 = vmul.u32.u64.low %v4724_v33, %v1498_v28  ;;  %v4741_v31 = vmul.u32.u64.high %v4724_v33, %v1498_v28, %v4740_v46 }
 0x3cd   : > { %v5662_v62 = vand.u32 2147483647, %v4634_v18  ;;  %v2061_v2 = vsel %vm2049_vm11, %v2043_v50, %v2060_v24  ;;  %v4748_v53 = vmul.u32.u64.low %v4724_v33, %v1502_v54  ;;  %v4749_v13 = vmul.u32.u64.high %v4724_v33, %v1502_v54, %v4748_v53 }
 0x3ce   : > { %v4751_v23 = vsub.s32 32, %v1573_v60  ;;  %v4753_v45 = vor.u32 4788187, %v952_v32  ;;  %v4756_v12 = vmul.u32.u64.low %v4715_v61, %v2058_v25  ;;  %v4757_v10 = vmul.u32.u64.high %v4715_v61, %v2058_v25, %v4756_v12 }
 0x3cf   : > { %v1492_v16 = vsel %vm1490_vm5, %v1480_v63, 2102212464  ;;  %v2031_v57 = vshrl.u32 %v5698_v15, %v4620_v47  ;;  %v1471_v50 = vshrl.u32 %v5698_v15, %v4614_v40  ;;  %v4771_v32 = vsub.s32 %v4612_v37, %v1974_v7 }
 0x3d0   : > { %v1577_v21 = vshrl.u32 %v5700_v26, %v4751_v23  ;;  %v1580_v34 = vshrl.u32 %v5696_v9, %v4751_v23  ;;  %v2062_v52 = vsel %vm2048_vm10, %v2059_v0, %v2061_v2  ;;  %v1566_v63 = vand.u32 8388607, %v5662_v62 }
 0x3d1   : > { %v1583_v47 = vshrl.u32 %v5703_v49, %v4751_v23  ;;  %v1491_v40 = vsel %vm1487_vm4, %v1471_v50, %v1474_v36  ;;  %v1493_v28 = vsel %vm1489_vm7, %v1477_v59, %v1492_v16  ;;  %v1576_v24 = vshll.u32 %v5698_v15, %v1573_v60 }
 0x3d2   : > { %v1579_v37 = vshll.u32 %v5700_v26, %v1573_v60  ;;  %v4785_v54 = vshrl.u32 %v1571_v55, 5  ;;  %v1582_v56 = vshll.u32 %v5696_v9, %v1573_v60  ;;  %v1585_v7 = vshll.u32 %v5703_v49, %v1573_v60 }
 0x3d3   : > { %v1586_v25 = vshrl.u32 %v5699_v38, %v4751_v23  ;;  %v4791_v0 = vor.u32 %v1577_v21, %v1576_v24  ;;  %v1588_v36 = vshll.u32 %v5699_v38, %v1573_v60  ;;  %v1589_v59 = vshrl.u32 %v5695_v51, %v4751_v23  ;;  %v5772_v24 = vld [vmem:[#allocation13_spill] sm:$0xff] }
 0x3d4   : > { %v4793_v2 = vor.u32 %v1580_v34, %v1579_v37  ;;  %v1977_v53 = vsub.s32 0, %v4771_v32  ;;  %v1513_v55 = vadd.s32 1, %v4741_v31  ;;  %v1584_v16 = vor.u32 %v1583_v47, %v1582_v56 }
 0x3d5   : > { %v1587_v50 = vor.u32 %v1586_v25, %v1585_v7  ;;  %v4801_v62 = vmul.u32.u64.low %v4715_v61, %v2062_v52  ;;  %v4802_v18 = vmul.u32.u64.high %v4715_v61, %v2062_v52, %v4801_v62  ;;  %vm1512_vm3 = vc.u32 %v4749_v13, %v4740_v46 }
 0x3d6   : > { %v1590_v21 = vor.u32 %v1589_v59, %v1588_v36  ;;  %v1494_v38 = vsel %vm1488_vm9, %v1491_v40, %v1493_v28  ;;  %v1567_v60 = vor.u32 8388608, %v1566_v63  ;;  %vm1591_vm12 = vcmp.lt.s32.totalorder %v4785_v54, 1 }
 0x3d7   : > { %vm1594_vm0 = vcmp.lt.s32.totalorder %v4785_v54, 4  ;;  %vm1593_vm5 = vcmp.lt.s32.totalorder %v4785_v54, 3  ;;  %v1599_v51 = vsel %vm1591_vm12, %v4791_v0, %v4793_v2  ;;  %vm876_vm4 = vcmp.lt.s32.totalorder %v3979_v6, 0 }
 0x3d8   : > { %v1600_v62 = vsel %vm1594_vm0, %v1587_v50, 920167782  ;;  %v1604_v34 = vsel %vm1594_vm0, %v1590_v21, 1326507024  ;;  %v1514_v19 = vsel %vm1512_vm3, %v1513_v55, %v4741_v31  ;;  %v1603_v63 = vsel %vm1591_vm12, %v4793_v2, %v1584_v16 }
 0x3d9   : > { %v1601_v52 = vsel %vm1593_vm5, %v1584_v16, %v1600_v62  ;;  %v1605_v47 = vsel %vm1593_vm5, %v1587_v50, %v1604_v34  ;;  %v2052_v40 = vsel %vm2050_vm15, %v4685_v20, 2102212464  ;;  %v1510_v28 = vmul.u32 %v4724_v33, %v1494_v38 }
 0x3da   : > { %vm1592_vm7 = vcmp.lt.s32.totalorder %v4785_v54, 2  ;;  %v5665_v31 = vand.u32 2147483647, %v5772_v24  ;;  %v954_v37 = vand.u32 2147483647, %v4753_v45  ;;  %v956_v56 = vcvt.s32.f32 %v4730_v42  ;;  %v5773_v45 = vld [vmem:[#allocation25_spill] sm:$0xff] }
 0x3db   : > { %v2051_v7 = vsel %vm2047_vm6, %v2031_v57, %v4678_v43  ;;  %v1602_v25 = vsel %vm1592_vm7, %v1599_v51, %v1601_v52  ;;  %v2736_v36 = vmin.u32 %v1977_v53, %v4771_v32  ;;  %v4842_v20 = vadd.s32 %v1514_v19, %v1510_v28 }
 0x3dc   : > { %v1606_v33 = vsel %vm1592_vm7, %v1603_v63, %v1605_v47  ;;  %v4846_v59 = vshll.u32 %v1567_v60, 8  ;;  %v2053_v42 = vsel %vm2049_vm11, %v4680_v1, %v2052_v40  ;;  %v2385_v55 = vshrl.u32 %v5700_v26, %v5773_v45  ;;  %v5777_v60 = vld [vmem:[#allocation20_spill] sm:$0xff] }
 0x3dd   : > { %v2388_v43 = vshrl.u32 %v5696_v9, %v5773_v45  ;;  %v2391_v57 = vshrl.u32 %v5703_v49, %v5773_v45  ;;  %v5774_v53 = vand.u32 2147483647, %v3979_v6  ;;  %v2073_v21 = vadd.s32 1, %v4757_v10 }
 0x3de   : > { %v4865_v38 = vmul.u32.u64.low %v4846_v59, %v1602_v25  ;;  %v4866_v1 = vmul.u32.u64.high %v4846_v59, %v1602_v25, %v4865_v38  ;;  %v2384_v51 = vshll.u32 %v5698_v15, %v5777_v60  ;;  %v2387_v19 = vshll.u32 %v5700_v26, %v5777_v60 }
 0x3df   : > { %vm4859_vm15 = vcmp.le.f32.partialorder %v5774_v53, 0.7853982  ;;  %v4872_v62 = vmul.u32.u64.low %v4846_v59, %v1606_v33  ;;  %v4873_v34 = vmul.u32.u64.high %v4846_v59, %v1606_v33, %v4872_v62  ;;  %v2390_v52 = vshll.u32 %v5696_v9, %v5777_v60 }
 0x3e0   : > { %vm1883_vm6 = vcmp.eq.s32.totalorder %v4589_v58, 0  ;;  %vm1886_vm11 = vcmp.eq.s32.totalorder %v4589_v58, 2  ;;  %v2054_v63 = vsel %vm2048_vm10, %v2051_v7, %v2053_v42  ;;  %vm2072_vm9 = vc.u32 %v4802_v18, %v4756_v12 }
 0x3e1   : > { %v1516_v47 = vadd.s32 536870912, %v4842_v20  ;;  %v2374_v40 = vand.u32 8388607, %v5665_v31  ;;  %2951 = vsinq.f32 %v4604_v27  ;;  %v4889_v28 = vor.u32 %v2385_v55, %v2384_v51  ;;  %v5781_v51 = vld [vmem:[#allocation35_spill] sm:$0xff] }
 0x3e2   : > { %v4891_v25 = vor.u32 %v2388_v43, %v2387_v19  ;;  %v2392_v33 = vor.u32 %v2391_v57, %v2390_v52  ;;  %v1884_v53 = vxor.u32 2147483648, %v4669_v17  ;;  %v957_v60 = vmul.f32 %v956_v56, %v954_v37  ;;  %v5779_v56 = vld [vmem:[#allocation18_spill] sm:$0xff] }
 0x3e3   : > { %v5778_v4 = vsub.s32 4, %v4379_v30  ;;  %v1596_v42 = vsel %vm1594_vm0, %v1584_v16, 2102212464  ;;  %v1979_v62 = vclz %v2736_v36  ;;  %v2070_v27 = vmul.u32 %v4715_v61, %v2054_v63  ;;  %v5782_v19 = vld [vmem:[#allocation30_spill] sm:$0xff] }
 0x3e4   : > { %v2074_v55 = vsel %vm2072_vm9, %v2073_v21, %v4757_v10  ;;  %v1575_v43 = vshrl.u32 %v5698_v15, %v4751_v23  ;;  %v4905_v57 = vshrl.u32 %v1516_v47, 30  ;;  %v2375_v37 = vor.u32 8388608, %v2374_v40  ;;  %v5780_v10 = vld [vmem:[#allocation33_spill] sm:$0xff] }
 0x3e5   : > { %v961_v7 = vsel %vm876_vm4, %v5778_v4, %v4379_v30  ;;  %vm2399_vm8 = vcmp.lt.s32.totalorder %v5779_v56, 1  ;;  %vm2401_vm10 = vcmp.lt.s32.totalorder %v5779_v56, 3  ;;  %vm1882_vm3 = vcmp.lt.s32.totalorder %v4589_v58, 2 }
 0x3e6   : > { %v1595_v30 = vsel %vm1591_vm12, %v1575_v43, %v4791_v0  ;;  %v1597_v61 = vsel %vm1593_vm5, %v4793_v2, %v1596_v42  ;;  %v2407_v23 = vsel %vm2399_vm8, %v4889_v28, %v4891_v25  ;;  %v2409_v16 = vsel %vm2401_vm10, %v2392_v33, %v5780_v10 }
 0x3e7   : > { %v958_v36 = vxor.u32 2147483648, %v957_v60  ;;  %v1617_v21 = vadd.s32 1, %v4866_v1  ;;  %v2411_v0 = vsel %vm2399_vm8, %v4891_v25, %v2392_v33  ;;  %v2413_v2 = vsel %vm2401_vm10, %v5782_v19, %v5781_v51 }
 0x3e8   : > { %v963_v52 = vsel %vm4859_vm15, 0, %v961_v7  ;;  %v4933_v63 = vadd.s32 %v2074_v55, %v2070_v27  ;;  %vm1616_vm12 = vc.u32 %v4873_v34, %v4865_v38  ;;  %vm2400_vm0 = vcmp.lt.s32.totalorder %v5779_v56, 2 }
 0x3e9   : > { %v2737_v47 = vadd.s32 4294967294, %v1979_v62  ;;  %v1518_v40 = vshll.u32 %v4905_v57, 30  ;;  %v1598_v4 = vsel %vm1592_vm7, %v1595_v30, %v1597_v61  ;;  %v2410_v42 = vsel %vm2400_vm0, %v2407_v23, %v2409_v16 }
 0x3ea   : > { %v1885_v7 = vsel %vm1883_vm6, %v4587_v39, %v1884_v53  ;;  %v5783_v27 = vxor.u32 2147483648, %v4587_v39  ;;  %v2414_v62 = vsel %vm2400_vm0, %v2411_v0, %v2413_v2  ;;  %v4953_v43 = vshll.u32 %v2375_v37, 8  ;;  %v4966_v37 = vpop.permute.xlu1 %1892 }
 0x3eb   : > { %v870_v54 = vxor.u32 2147483648, %v4676_v3  ;;  %v959_v30 = vsel %vm876_vm4, %v958_v36, %v957_v60  ;;  %v967_v61 = vadd.s32 3, %v963_v52  ;;  %v1618_v23 = vsel %vm1616_vm12, %v1617_v21, %v4866_v1  ;;  %v2952_v53 = vpop.eup %2951  ;;  %5784 = vst [vmem:[#allocation43_spill] sm:$0xff] %v4966_v37 }
 0x3ec   : > { %v1888_v55 = vsel %vm1886_vm11, %v5783_v27, %v4669_v17  ;;  %v2076_v10 = vadd.s32 536870912, %v4933_v63  ;;  %v1614_v39 = vmul.u32 %v4846_v59, %v1598_v4  ;;  %vm2738_vm5 = vcmp.lt.s32.totalorder %v2737_v47, 0  ;;  %v5787_v27 = vld [vmem:[#allocation26_spill] sm:$0xff] }
 0x3ed   : > { %v4962_v17 = vmul.u32.u64.low %v4953_v43, %v2410_v42  ;;  %v4963_v16 = vmul.u32.u64.high %v4953_v43, %v2410_v42, %v4962_v17  ;;  %v4969_v0 = vsub.s32 %v4842_v20, %v1518_v40  ;;  %v4977_v1 = vmul.f32 %v4966_v37, %v4599_v14  ;;  %v5786_v42 = vld [vmem:[#allocation15_spill] sm:$0xff] }
 0x3ee   : > { %v4972_v60 = vmul.u32.u64.low %v4953_v43, %v2414_v62  ;;  %v4973_v36 = vmul.u32.u64.high %v4953_v43, %v2414_v62, %v4972_v60  ;;  %vm866_vm4 = vcmp.eq.s32.totalorder %v4617_v35, 0  ;;  %v4980_v59 = vadd.s32 %v1618_v23, %v1614_v39 }
 0x3ef   : > { %5785 = vst [vmem:[#allocation44_spill] sm:$0xff] %v4977_v1  ;;  %v2404_v21 = vsel %vm2402_vm14, %v2392_v33, 2102212464  ;;  %v4986_v51 = vsel %vm1882_vm3, %v1885_v7, %v1888_v55  ;;  %vm865_vm7 = vcmp.lt.s32.totalorder %v4617_v35, 2  ;;  %v867_v20 = vxor.u32 2147483648, %v2952_v53 }
 0x3f0   : > { %vm869_vm6 = vcmp.eq.s32.totalorder %v4617_v35, 2  ;;  %v2383_v14 = vshrl.u32 %v5698_v15, %v5773_v45  ;;  %v962_v19 = vsel %vm4859_vm15, %v3979_v6, %v959_v30  ;;  %v4995_v2 = vand.u32 3, %v967_v61  ;;  %v5788_v61 = vld [vmem:[#allocation23_spill] sm:$0xff] }
 0x3f1   : > { %v4997_v52 = vsel %vm2738_vm5, 0, %v2737_v47  ;;  %v4999_v33 = vshrl.u32 %v2076_v10, 30  ;;  %v871_v58 = vsel %vm869_vm6, %v870_v54, %v2952_v53  ;;  %v1521_v40 = vsub.s32 0, %v4969_v0 }
 0x3f2   : > { %v2403_v4 = vsel %vm2399_vm8, %v2383_v14, %v4889_v28  ;;  %v2405_v45 = vsel %vm2401_vm10, %v4891_v25, %v2404_v21  ;;  %v1620_v50 = vadd.s32 536870912, %v4980_v59  ;;  %v5667_v7 = vand.u32 2147483647, %v5786_v42 }
 0x3f3   : > { %v2492_v47 = vshrl.u32 %v5696_v9, %v5787_v27  ;;  %v2495_v55 = vshrl.u32 %v5703_v49, %v5787_v27  ;;  %vm862_vm14 = vweird.f32 %v5761_v8  ;;  %v868_v28 = vsel %vm866_vm4, %v4676_v3, %v867_v20 }
 0x3f4   : > { %2953 = vcosq.f32 %v962_v19  ;;  %v1987_v62 = vsub.s32 4294967266, %v4997_v52  ;;  %v2489_v25 = vshrl.u32 %v5700_v26, %v5787_v27  ;;  %v2078_v54 = vshll.u32 %v4999_v33, 30 }
 0x3f5   : > { %v2425_v30 = vadd.s32 1, %v4963_v16  ;;  %v2491_v23 = vshll.u32 %v5700_v26, %v5788_v61  ;;  %v2494_v53 = vshll.u32 %v5696_v9, %v5788_v61  ;;  %v2720_v10 = vmin.u32 %v1521_v40, %v4969_v0 }
 0x3f6   : > { %v2406_v3 = vsel %vm2400_vm0, %v2403_v4, %v2405_v45  ;;  %vm2424_vm15 = vc.u32 %v4973_v36, %v4962_v17  ;;  %v2488_v39 = vshll.u32 %v5698_v15, %v5788_v61  ;;  %vm1879_vm11 = vweird.f32 %v5755_v29 }
 0x3f7   : > { %v5035_v60 = vshrl.u32 %v1620_v50, 30  ;;  %v2478_v21 = vand.u32 8388607, %v5667_v7  ;;  %v2493_v20 = vor.u32 %v2492_v47, %v2491_v23  ;;  %v2496_v14 = vor.u32 %v2495_v55, %v2494_v53  ;;  %v5789_v55 = vld [vmem:[#allocation22_spill] sm:$0xff] }
 0x3f8   : > { %2955 = vsinq.f32 %v962_v19  ;;  %v1967_v56 = vadd.s32 %v4520_v44, %v4527_v22  ;;  %v1983_v40 = vsub.s32 32, %v4997_v52  ;;  %v2490_v4 = vor.u32 %v2489_v25, %v2488_v39  ;;  %v5790_v19 = vld [vmem:[#allocation39_spill] sm:$0xff] }
 0x3f9   : > { %v872_v45 = vsel %vm865_vm7, %v868_v28, %v871_v58  ;;  %v1988_v61 = vadd.s32 127, %v1987_v62  ;;  %v5045_v31 = vsub.s32 %v4933_v63, %v2078_v54  ;;  %v2426_v50 = vsel %vm2424_vm15, %v2425_v30, %v4963_v16  ;;  %v5791_v58 = vld [vmem:[#allocation31_spill] sm:$0xff]  ;;  %v5792_v62 = vld [vmem:[#allocation38_spill] sm:$0xff] }
 0x3fa   : > { %v1523_v37 = vclz %v2720_v10  ;;  %v2422_v47 = vmul.u32 %v4953_v43, %v2406_v3  ;;  %vm2503_vm9 = vcmp.lt.s32.totalorder %v5789_v55, 1  ;;  %vm2505_vm8 = vcmp.lt.s32.totalorder %v5789_v55, 3 }
 0x3fb   : > { %v1622_v44 = vshll.u32 %v5035_v60, 30  ;;  %v2479_v22 = vor.u32 8388608, %v2478_v21  ;;  %v2515_v35 = vsel %vm2503_vm9, %v2493_v20, %v2496_v14  ;;  %v2517_v63 = vsel %vm2505_vm8, %v5791_v58, %v5790_v19 }
 0x3fc   : > { %v1985_v28 = vshrl.u32 %v1967_v56, %v1983_v40  ;;  %v5058_v16 = vadd.s32 %v2426_v50, %v2422_v47  ;;  %v2511_v43 = vsel %vm2503_vm9, %v2490_v4, %v2493_v20  ;;  %v2513_v25 = vsel %vm2505_vm8, %v2496_v14, %v5792_v62  ;;  %v5075_v56 = vpop.permute.xlu0 %980  ;;  %v5795_v62 = vld [vmem:[#allocation29_spill] sm:$0xff] }
 0x3fd   : > { %v873_v54 = vsel %vm862_vm14, nan, %v872_v45  ;;  %v1984_v30 = vshll.u32 %v4771_v32, %v4997_v52  ;;  %v1989_v23 = vshll.u32 %v1988_v61, 23  ;;  %vm2504_vm10 = vcmp.lt.s32.totalorder %v5789_v55, 2 }
 0x3fe   : > { %v2954_v53 = vpop.eup %2953  ;;  %v2081_v10 = vsub.s32 0, %v5045_v31  ;;  %v2721_v3 = vadd.s32 4294967294, %v1523_v37  ;;  %v2508_v39 = vsel %vm2506_vm1, %v2496_v14, 2102212464  ;;  %v2518_v21 = vsel %vm2504_vm10, %v2515_v35, %v2517_v63 }
 0x3ff   : > { %v5078_v8 = vsub.s32 %v4980_v59, %v1622_v44  ;;  %v2487_v32 = vshrl.u32 %v5698_v15, %v5787_v27  ;;  %v2514_v52 = vsel %vm2504_vm10, %v2511_v43, %v2513_v25  ;;  %v2519_v40 = vshll.u32 %v2479_v22, 8 }
 0x400   : > { %v5087_v37 = vsel %vm1879_vm11, nan, %v4986_v51  ;;  %v5090_v14 = vmul.f32 %v5075_v56, %v873_v54  ;;  %v1986_v45 = vor.u32 %v1985_v28, %v1984_v30  ;;  %v2428_v61 = vadd.s32 536870912, %v5058_v16  ;;  %v5794_v28 = vld [vmem:[#allocation14_spill] sm:$0xff] }
 0x401   : > { %5793 = vst [vmem:[#allocation19_spill] sm:$0xff] %v5087_v37  ;;  %vm970_vm1 = vcmp.eq.s32.totalorder %v4995_v2, 0  ;;  %vm973_vm3 = vcmp.eq.s32.totalorder %v4995_v2, 2  ;;  %v2507_v59 = vsel %vm2503_vm9, %v2487_v32, %v2490_v4  ;;  %v2509_v27 = vsel %vm2505_vm8, %v2493_v20, %v2508_v39  ;;  %v5796_v32 = vld [vmem:[#allocation24_spill] sm:$0xff] }
 0x402   : > { %v5099_v50 = vmul.u32.u64.low %v2519_v40, %v2518_v21  ;;  %v5100_v29 = vmul.u32.u64.high %v2519_v40, %v2518_v21, %v5099_v50  ;;  %v2956_v51 = vpop.eup %2955  ;;  %v1990_v47 = vor.u32 4788187, %v1989_v23  ;;  %v2740_v44 = vmin.u32 %v2081_v10, %v5045_v31 }
 0x403   : > { %v5103_v22 = vmul.u32.u64.low %v2519_v40, %v2514_v52  ;;  %v5104_v35 = vmul.u32.u64.high %v2519_v40, %v2514_v52, %v5103_v22  ;;  %v974_v19 = vxor.u32 2147483648, %v2954_v53  ;;  %vm2722_vm12 = vcmp.lt.s32.totalorder %v2721_v3, 0 }
 0x404   : > { %v1625_v4 = vsub.s32 0, %v5078_v8  ;;  %v5109_v63 = vshrl.u32 %v2428_v61, 30  ;;  %v2510_v20 = vsel %vm2504_vm10, %v2507_v59, %v2509_v27  ;;  %v5668_v43 = vand.u32 2147483647, %v5794_v28 }
 0x405   : > { %v2157_v25 = vshrl.u32 %v5700_v26, %v5795_v62  ;;  %v971_v54 = vxor.u32 2147483648, %v2956_v51  ;;  %v1993_v30 = vcvt.s32.f32 %v1986_v45  ;;  %vm2528_vm0 = vc.u32 %v5100_v29, %v5103_v22 }
 0x406   : > { %v2160_v23 = vshrl.u32 %v5696_v9, %v5795_v62  ;;  %v1991_v10 = vand.u32 2147483647, %v1990_v47  ;;  %v2083_v39 = vclz %v2740_v44  ;;  %v2529_v21 = vadd.s32 1, %v5104_v35 }
 0x407   : > { %v2156_v55 = vshll.u32 %v5698_v15, %v5796_v32  ;;  %v5124_v52 = vsel %vm2722_vm12, 0, %v2721_v3  ;;  %v2724_v61 = vmin.u32 %v1625_v4, %v5078_v8  ;;  %v2526_v59 = vmul.u32 %v2519_v40, %v2510_v20 }
 0x408   : > { %v2159_v45 = vshll.u32 %v5700_v26, %v5796_v32  ;;  %v2430_v27 = vshll.u32 %v5109_v63, 30  ;;  %v2530_v50 = vsel %vm2528_vm0, %v2529_v21, %v5104_v35  ;;  %v2146_v47 = vand.u32 8388607, %v5668_v43 }
 0x409   : > { %v2158_v44 = vor.u32 %v2157_v25, %v2156_v55  ;;  %v2531_v7 = vadd.s32 %v2530_v50, %v2526_v59  ;;  %v2162_v3 = vshll.u32 %v5696_v9, %v5796_v32  ;;  %v2163_v4 = vshrl.u32 %v5703_v49, %v5795_v62  ;;  %v5797_v59 = vld [vmem:[#allocation21_spill] sm:$0xff] }
 0x40a   : > { %v2161_v58 = vor.u32 %v2160_v23, %v2159_v45  ;;  %v972_v40 = vsel %vm970_vm1, %v2954_v53, %v971_v54  ;;  %v975_v20 = vsel %vm973_vm3, %v974_v19, %v2956_v51  ;;  %v2741_v37 = vadd.s32 4294967294, %v2083_v39  ;;  %v5799_v19 = vld [vmem:[#allocation41_spill] sm:$0xff]  ;;  %v5801_v39 = vld [vmem:[#allocation36_spill] sm:$0xff] }
 0x40b   : > { %v1531_v35 = vsub.s32 4294967266, %v5124_v52  ;;  %v1994_v21 = vmul.f32 %v1993_v30, %v1991_v10  ;;  %v1627_v43 = vclz %v2724_v61  ;;  %v2532_v25 = vadd.s32 536870912, %v2531_v7  ;;  %v5800_v10 = vld [vmem:[#allocation42_spill] sm:$0xff] }
 0x40c   : > { %v2164_v55 = vor.u32 %v2163_v4, %v2162_v3  ;;  %vm969_vm5 = vcmp.lt.s32.totalorder %v4995_v2, 2  ;;  %vm1913_vm4 = vcmp.lt.s32.totalorder %v4232_v5, 0  ;;  %v5145_v23 = vsub.s32 %v5058_v16, %v2430_v27 }
 0x40d   : > { %v2147_v32 = vor.u32 8388608, %v2146_v47  ;;  %vm2171_vm7 = vcmp.lt.s32.totalorder %v5797_v59, 1  ;;  %vm2173_vm6 = vcmp.lt.s32.totalorder %v5797_v59, 3  ;;  %v5149_v53 = vshrl.u32 %v2532_v25, 30 }
 0x40e   : > { %v2179_v51 = vsel %vm2171_vm7, %v2158_v44, %v2161_v58  ;;  %v2181_v54 = vsel %vm2173_vm6, %v2164_v55, %v5799_v19  ;;  %v2183_v30 = vsel %vm2171_vm7, %v2161_v58, %v2164_v55  ;;  %vm2742_vm14 = vcmp.lt.s32.totalorder %v2741_v37, 0 }
 0x40f   : > { %5798 = vst [vmem:[#allocation8_spill] sm:$0xff] %v5149_v53  ;;  %v1532_v16 = vadd.s32 127, %v1531_v35  ;;  %vm2172_vm15 = vcmp.lt.s32.totalorder %v5797_v59, 2  ;;  %v2185_v61 = vsel %vm2173_vm6, %v5801_v39, %v5800_v10  ;;  %v1995_v45 = vxor.u32 2147483648, %v1994_v21 }
 0x410   : > { %v1527_v27 = vsub.s32 32, %v5124_v52  ;;  %v2534_v50 = vshll.u32 %v5149_v53, 30  ;;  %v2186_v47 = vsel %vm2172_vm15, %v2183_v30, %v2185_v61  ;;  %v5802_v3 = vand.u32 2147483647, %v4232_v5 }
 0x411   : > { %v2725_v35 = vadd.s32 4294967294, %v1627_v43  ;;  %v2176_v25 = vsel %vm2174_vm2, %v2164_v55, 2102212464  ;;  %v2182_v19 = vsel %vm2172_vm15, %v2179_v51, %v2181_v54  ;;  %v2187_v10 = vshll.u32 %v2147_v32, 8 }
 0x412   : > { %vm5169_vm11 = vcmp.le.f32.partialorder %v5802_v3, 0.7853982  ;;  %vm966_vm9 = vweird.f32 %v3979_v6  ;;  %v2086_v39 = vsel %vm2742_vm14, 0, %v2741_v37  ;;  %v2433_v1 = vsub.s32 0, %v5145_v23 }
 0x413   : > { %v5179_v30 = vsub.s32 %v2531_v7, %v2534_v50  ;;  %v2155_v61 = vshrl.u32 %v5698_v15, %v5795_v62  ;;  %vm2017_vm8 = vcmp.lt.s32.totalorder %v4420_v41, 0  ;;  %v1511_v43 = vadd.s32 %v4740_v46, %v4749_v13 }
 0x414   : > { %v1533_v55 = vshll.u32 %v1532_v16, 23  ;;  %v5186_v3 = vmul.u32.u64.low %v2187_v10, %v2186_v47  ;;  %v5187_v53 = vmul.u32.u64.high %v2187_v10, %v2186_v47, %v5186_v3  ;;  %v2177_v37 = vsel %vm2173_vm6, %v2161_v58, %v2176_v25 }
 0x415   : > { %v2175_v32 = vsel %vm2171_vm7, %v2155_v61, %v2158_v44  ;;  %v5193_v7 = vmul.u32.u64.low %v2187_v10, %v2182_v19  ;;  %v5194_v51 = vmul.u32.u64.high %v2187_v10, %v2182_v19, %v5193_v7  ;;  %v2087_v62 = vsub.s32 32, %v2086_v39 }
 0x416   : > { %v1529_v54 = vshrl.u32 %v1511_v43, %v1527_v27  ;;  %vm2726_vm2 = vcmp.lt.s32.totalorder %v2725_v35, 0  ;;  %v2537_v50 = vsub.s32 0, %v5179_v30  ;;  %v976_v46 = vsel %vm969_vm5, %v972_v40, %v975_v20 }
 0x417   : > { %v5805_v13 = vsub.s32 4, %v4665_v48  ;;  %v2071_v58 = vadd.s32 %v4756_v12, %v4802_v18  ;;  %v2752_v16 = vmin.u32 %v2433_v1, %v5145_v23  ;;  %v1996_v27 = vsel %vm1913_vm4, %v1995_v45, %v1994_v21 }
 0x418   : > { %v2101_v47 = vsub.s32 4, %v4999_v33  ;;  %v1528_v2 = vshll.u32 %v4969_v0, %v5124_v52  ;;  %v2178_v40 = vsel %vm2172_vm15, %v2175_v32, %v2177_v37  ;;  %v2091_v20 = vsub.s32 4294967266, %v2086_v39 }
 0x419   : > { %v5205_v44 = vsel %vm1913_vm4, %v5805_v13, %v4665_v48  ;;  %v1534_v25 = vor.u32 4788187, %v1533_v55  ;;  %v1630_v48 = vsel %vm2726_vm2, 0, %v2725_v35  ;;  %vm2196_vm10 = vc.u32 %v5187_v53, %v5193_v7 }
 0x41a   : > { %v2089_v18 = vshrl.u32 %v2071_v58, %v2087_v62  ;;  %v1530_v12 = vor.u32 %v1529_v54, %v1528_v2  ;;  %v2756_v1 = vmin.u32 %v2537_v50, %v5179_v30  ;;  %v2197_v21 = vadd.s32 1, %v5194_v51 }
 0x41b   : > { %v1999_v45 = vsel %vm5169_vm11, %v4232_v5, %v1996_v27  ;;  %v2000_v0 = vsel %vm5169_vm11, 0, %v5205_v44  ;;  %v2435_v52 = vclz %v2752_v16  ;;  %v2194_v59 = vmul.u32 %v2187_v10, %v2178_v40 }
 0x41c   : > { %v5229_v35 = vsel %vm966_vm9, nan, %v976_v46  ;;  %v2088_v19 = vshll.u32 %v5045_v31, %v2086_v39  ;;  %v1635_v61 = vsub.s32 4294967266, %v1630_v48  ;;  %v2198_v43 = vsel %vm2196_vm10, %v2197_v21, %v5194_v51  ;;  %v5806_v31 = vld [vmem:[#allocation16_spill] sm:$0xff] }
 0x41d   : > { %v2092_v55 = vadd.s32 127, %v2091_v20  ;;  %v5236_v3 = vsel %vm2017_vm8, %v2101_v47, %v4999_v33  ;;  %v1535_v32 = vand.u32 2147483647, %v1534_v25  ;;  %v2199_v37 = vadd.s32 %v2198_v43, %v2194_v59  ;;  %v5807_v51 = vld [vmem:[#allocation40_spill] sm:$0xff]  ;;  %v5808_v25 = vld [vmem:[#allocation34_spill] sm:$0xff] }
 0x41e   : > { %2957 = vcosq.f32 %v1999_v45  ;;  %v5238_v62 = vor.u32 %v2089_v18, %v2088_v19  ;;  %v1537_v10 = vcvt.s32.f32 %v1530_v12  ;;  %v2539_v6 = vclz %v2756_v1 }
 0x41f   : > { %v1631_v54 = vsub.s32 32, %v1630_v48  ;;  %v2753_v50 = vadd.s32 4294967294, %v2435_v52  ;;  %v2200_v46 = vadd.s32 536870912, %v2199_v37  ;;  %v2243_v39 = vand.u32 2147483647, %v5806_v31 }
 0x420   : > { %v1636_v13 = vadd.s32 127, %v1635_v61  ;;  %v2261_v58 = vshrl.u32 %v5700_v26, %v5807_v51  ;;  %v2264_v33 = vshrl.u32 %v5696_v9, %v5807_v51  ;;  %v2267_v16 = vshrl.u32 %v5703_v49, %v5807_v51 }
 0x421   : > { %v2093_v27 = vshll.u32 %v2092_v55, 23  ;;  %v1538_v47 = vmul.f32 %v1537_v10, %v1535_v32  ;;  %v1615_v2 = vadd.s32 %v4865_v38, %v4873_v34  ;;  %v5249_v40 = vshrl.u32 %v2200_v46, 30  ;;  %v5812_v46 = vld [vmem:[#allocation32_spill] sm:$0xff] }
 0x422   : > { %v2757_v20 = vadd.s32 4294967294, %v2539_v6  ;;  %v2260_v18 = vshll.u32 %v5698_v15, %v5808_v25  ;;  %v2263_v12 = vshll.u32 %v5700_v26, %v5808_v25  ;;  %v2266_v1 = vshll.u32 %v5696_v9, %v5808_v25 }
 0x423   : > { %vm1457_vm1 = vcmp.lt.s32.totalorder %v4479_v11, 0  ;;  %v1633_v49 = vshrl.u32 %v1615_v2, %v1631_v54  ;;  %vm2754_vm3 = vcmp.lt.s32.totalorder %v2753_v50, 0  ;;  %v2202_v21 = vshll.u32 %v5249_v40, 30 }
 0x424   : > { %v2250_v38 = vand.u32 8388607, %v2243_v39  ;;  %v1637_v34 = vshll.u32 %v1636_v13, 23  ;;  %v2262_v52 = vor.u32 %v2261_v58, %v2260_v18  ;;  %v2265_v59 = vor.u32 %v2264_v33, %v2263_v12  ;;  %v5813_v33 = vld [vmem:[#allocation27_spill] sm:$0xff]  ;;  %v5814_v18 = vld [vmem:[#allocation12_spill] sm:$0xff]  ;;  %v5815_v12 = vld [vmem:[#allocation46_spill] sm:$0xff] }
 0x425   : > { %v2268_v19 = vor.u32 %v2267_v16, %v2266_v1  ;;  %2959 = vsinq.f32 %v1999_v45  ;;  %v5261_v61 = vor.u32 4788187, %v2093_v27  ;;  %v2097_v26 = vcvt.s32.f32 %v5238_v62 }
 0x426   : > { %v5264_v43 = vsub.s32 %v2199_v37, %v2202_v21  ;;  %v5809_v9 = vand.u32 2147483647, %v4479_v11  ;;  %v1539_v32 = vxor.u32 2147483648, %v1538_v47  ;;  %v1632_v10 = vshll.u32 %v5078_v8, %v1630_v48 }
 0x427   : > { %v5273_v6 = vsel %vm2754_vm3, 0, %v2753_v50  ;;  %vm2758_vm0 = vcmp.lt.s32.totalorder %v2757_v20, 0  ;;  %v2251_v54 = vor.u32 8388608, %v2250_v38  ;;  %vm2275_vm5 = vcmp.lt.s32.totalorder %v5812_v46, 1 }
 0x428   : > { %vm5268_vm12 = vcmp.le.f32.partialorder %v5809_v9, 0.7853982  ;;  %v2205_v45 = vsub.s32 0, %v5264_v43  ;;  %vm2277_vm4 = vcmp.lt.s32.totalorder %v5812_v46, 3  ;;  %v5278_v37 = vpop.eup %2957  ;;  %v1634_v62 = vor.u32 %v1633_v49, %v1632_v10 }
 0x429   : > { %v1638_v13 = vor.u32 4788187, %v1637_v34  ;;  %v2283_v58 = vsel %vm2275_vm5, %v2262_v52, %v2265_v59  ;;  %v2285_v8 = vsel %vm2277_vm4, %v2268_v19, %v5813_v33  ;;  %v2443_v48 = vsub.s32 4294967266, %v5273_v6 }
 0x42a   : > { %v2744_v50 = vmin.u32 %v2205_v45, %v5264_v43  ;;  %v2259_v16 = vshrl.u32 %v5698_v15, %v5807_v51  ;;  %v2287_v27 = vsel %vm2275_vm5, %v2265_v59, %v2268_v19  ;;  %v5291_v2 = vsel %vm2758_vm0, 0, %v2757_v20 }
 0x42b   : > { %vm2276_vm7 = vcmp.lt.s32.totalorder %v5812_v46, 2  ;;  %v2280_v25 = vsel %vm2278_vm13, %v2268_v19, 2102212464  ;;  %v2289_v1 = vsel %vm2277_vm4, %v5815_v12, %v5814_v18  ;;  %v2291_v51 = vshll.u32 %v2251_v54, 8 }
 0x42c   : > { %v2207_v49 = vclz %v2744_v50  ;;  %v2286_v21 = vsel %vm2276_vm7, %v2283_v58, %v2285_v8  ;;  %v2290_v15 = vsel %vm2276_vm7, %v2287_v27, %v2289_v1  ;;  %v2095_v20 = vand.u32 2147483647, %v5261_v61 }
 0x42d   : > { %v1540_v38 = vsel %vm1457_vm1, %v1539_v32, %v1538_v47  ;;  %v1639_v34 = vand.u32 2147483647, %v1638_v13  ;;  %v2279_v19 = vsel %vm2275_vm5, %v2259_v16, %v2262_v52  ;;  %v2281_v10 = vsel %vm2277_vm4, %v2265_v59, %v2280_v25 }
 0x42e   : > { %v2745_v9 = vadd.s32 4294967294, %v2207_v49  ;;  %v5311_v45 = vmul.u32.u64.low %v2291_v51, %v2290_v15  ;;  %v5312_v33 = vmul.u32.u64.high %v2291_v51, %v2290_v15, %v5311_v45  ;;  %v2444_v58 = vadd.s32 127, %v2443_v48 }
 0x42f   : > { %v2547_v8 = vsub.s32 4294967266, %v5291_v2  ;;  %v5315_v54 = vmul.u32.u64.low %v2291_v51, %v2286_v21  ;;  %v5316_v50 = vmul.u32.u64.high %v2291_v51, %v2286_v21, %v5315_v54  ;;  %v5319_v61 = vpop.eup %2959  ;;  %v5816_v47 = vand.u32 2147483647, %v4420_v41 }
 0x430   : > { %v1541_v59 = vsub.s32 4, %v4905_v57  ;;  %v1543_v32 = vsel %vm5268_vm12, %v4479_v11, %v1540_v38  ;;  %v1641_v13 = vcvt.s32.f32 %v1634_v62  ;;  %vm2746_vm6 = vcmp.lt.s32.totalorder %v2745_v9, 0 }
 0x431   : > { %vm5323_vm13 = vcmp.le.f32.partialorder %v5816_v47, 0.7853982  ;;  %v2423_v48 = vadd.s32 %v4962_v17, %v4973_v36  ;;  %v2439_v16 = vsub.s32 32, %v5273_v6  ;;  %v2210_v27 = vsel %vm2746_vm6, 0, %v2745_v9 }
 0x432   : > { %v2282_v25 = vsel %vm2276_vm7, %v2279_v19, %v2281_v10  ;;  %v1642_v18 = vmul.f32 %v1641_v13, %v1639_v34  ;;  %v2195_v12 = vadd.s32 %v5193_v7, %v5187_v53  ;;  %v2211_v1 = vsub.s32 32, %v2210_v27 }
 0x433   : > { %v2215_v49 = vsub.s32 4294967266, %v2210_v27  ;;  %v2445_v21 = vshll.u32 %v2444_v58, 23  ;;  %v2548_v15 = vadd.s32 127, %v2547_v8  ;;  %vm2300_vm14 = vc.u32 %v5312_v33, %v5315_v54 }
 0x434   : > { %v2301_v62 = vadd.s32 1, %v5316_v50  ;;  %v2212_v17 = vshll.u32 %v5264_v43, %v2210_v27  ;;  %v2213_v36 = vshrl.u32 %v2195_v12, %v2211_v1  ;;  %v2298_v9 = vmul.u32 %v2291_v51, %v2282_v25 }
 0x435   : > { %v2216_v38 = vadd.s32 127, %v2215_v49  ;;  %v2098_v46 = vmul.f32 %v2097_v26, %v2095_v20  ;;  %v1542_v34 = vsel %vm1457_vm1, %v1541_v59, %v4905_v57  ;;  %v2441_v53 = vshrl.u32 %v2423_v48, %v2439_v16  ;;  %v5819_v59 = vld [vmem:[#allocation37_spill] sm:$0xff] }
 0x436   : > { %v2302_v7 = vsel %vm2300_vm14, %v2301_v62, %v5316_v50  ;;  %v2543_v19 = vsub.s32 32, %v5291_v2  ;;  %v2214_v10 = vor.u32 %v2213_v36, %v2212_v17  ;;  %2961 = vcosq.f32 %v1543_v32 }
 0x437   : > { %v2217_v45 = vshll.u32 %v2216_v38, 23  ;;  %v2303_v58 = vadd.s32 %v2302_v7, %v2298_v9  ;;  %v1643_v8 = vxor.u32 2147483648, %v1642_v18  ;;  %v2440_v43 = vshll.u32 %v5145_v23, %v5273_v6 }
 0x438   : > { %v2446_v47 = vor.u32 4788187, %v2445_v21  ;;  %v2527_v26 = vadd.s32 %v5103_v22, %v5100_v29  ;;  %v2549_v51 = vshll.u32 %v2548_v15, 23  ;;  %v2104_v50 = vsel %vm5323_vm13, 0, %v5236_v3  ;;  %v5820_v21 = vld [vmem:[#allocation6_spill] sm:$0xff] }
 0x439   : > { %v2218_v20 = vor.u32 4788187, %v2217_v45  ;;  %v2304_v57 = vadd.s32 536870912, %v2303_v58  ;;  %2963 = vsinq.f32 %v1543_v32  ;;  %vm1561_vm15 = vcmp.lt.s32.totalorder %v5819_v59, 0 }
 0x43a   : > { %v2442_v13 = vor.u32 %v2441_v53, %v2440_v43  ;;  %v2545_v48 = vshrl.u32 %v2527_v26, %v2543_v19  ;;  %v2221_v27 = vcvt.s32.f32 %v2214_v10  ;;  %v2099_v23 = vxor.u32 2147483648, %v2098_v46  ;;  %v5824_v53 = vld [vmem:[#allocation11_spill] sm:$0xff] }
 0x43b   : > { %v2219_v16 = vand.u32 2147483647, %v2218_v20  ;;  %v5355_v25 = vshrl.u32 %v2304_v57, 30  ;;  %v1544_v29 = vsel %vm5268_vm12, 0, %v1542_v34  ;;  %v1644_v22 = vsel %vm1561_vm15, %v1643_v8, %v1642_v18 }
 0x43c   : > { %v2447_v6 = vand.u32 2147483647, %v2446_v47  ;;  %v2544_v3 = vshll.u32 %v5179_v30, %v5291_v2  ;;  %v2550_v32 = vor.u32 4788187, %v2549_v51  ;;  %v984_v49 = vmul.f32 %v5075_v56, %v5229_v35 }
 0x43d   : > { %v2222_v12 = vmul.f32 %v2221_v27, %v2219_v16  ;;  %v2306_v1 = vshll.u32 %v5355_v25, 30  ;;  %v1213_v15 = vadd.f32 %v5820_v21, %v5090_v14  ;;  %v2004_v55 = vadd.s32 3, %v2000_v0 }
 0x43e   : > { %v2108_v18 = vadd.s32 3, %v2104_v50  ;;  %v5821_v62 = vand.u32 2147483647, %v5819_v59  ;;  %v2449_v2 = vcvt.s32.f32 %v2442_v13  ;;  %v2546_v17 = vor.u32 %v2545_v48, %v2544_v3 }
 0x43f   : > { %v5378_v36 = vsub.s32 %v2303_v58, %v2306_v1  ;;  %vm2369_vm2 = vcmp.lt.s32.totalorder %v5772_v24, 0  ;;  %v2100_v56 = vsel %vm2017_vm8, %v2099_v23, %v2098_v46  ;;  %v1548_v14 = vadd.s32 3, %v1544_v29  ;;  %v5825_v46 = vld [vmem:[#allocation9_spill] sm:$0xff] }
 0x440   : > { %vm5374_vm9 = vcmp.le.f32.partialorder %v5821_v62, 0.7853982  ;;  %v1645_v4 = vsub.s32 4, %v5035_v60  ;;  %v2450_v0 = vmul.f32 %v2449_v2, %v2447_v6  ;;  %v2551_v35 = vand.u32 2147483647, %v2550_v32  ;;  %v2962_v34 = vpop.eup %2961 }
 0x441   : > { %v1647_v44 = vsel %vm5374_vm9, %v5819_v59, %v1644_v22  ;;  %v2223_v38 = vxor.u32 2147483648, %v2222_v12  ;;  %v2309_v9 = vsub.s32 0, %v5378_v36  ;;  %v5389_v7 = vadd.f32 %v5824_v53, %v984_v49 }
 0x442   : > { %v5391_v19 = vand.u32 3, %v2004_v55  ;;  %v5393_v10 = vand.u32 3, %v2108_v18  ;;  %v5396_v45 = vadd.f32 %v5825_v46, %v1213_v15  ;;  %v2103_v58 = vsel %vm5323_vm13, %v4420_v41, %v2100_v56 }
 0x443   : > { %2965 = vcosq.f32 %v1647_v44  ;;  %v2553_v8 = vcvt.s32.f32 %v2546_v17  ;;  %v2748_v43 = vmin.u32 %v2309_v9, %v5378_v36  ;;  %v2964_v47 = vpop.eup %2963  ;;  %vm2473_vm11 = vcmp.lt.s32.totalorder %v5786_v42, 0 }
 0x444   : > { %v1549_v26 = vand.u32 3, %v1548_v14  ;;  %v1646_v51 = vsel %vm1561_vm15, %v1645_v4, %v5035_v60  ;;  %2967 = vsinq.f32 %v1647_v44  ;;  %vm2141_vm8 = vcmp.lt.s32.totalorder %v5794_v28, 0 }
 0x445   : > { %v2451_v20 = vxor.u32 2147483648, %v2450_v0  ;;  %v2554_v57 = vmul.f32 %v2553_v8, %v2551_v35  ;;  %v2224_v52 = vsel %vm2141_vm8, %v2223_v38, %v2222_v12  ;;  %v2311_v50 = vclz %v2748_v43  ;;  %v5835_v43 = vld [vmem:[#allocation8_spill] sm:$0xff] }
 0x446   : > { %v2008_v13 = vxor.u32 2147483648, %v5319_v61  ;;  %v2011_v48 = vxor.u32 2147483648, %v5278_v37  ;;  %2969 = vcosq.f32 %v2103_v58  ;;  %v5826_v16 = vand.u32 2147483647, %v5772_v24 }
 0x447   : > { %2971 = vsinq.f32 %v2103_v58  ;;  %v1648_v60 = vsel %vm5374_vm9, 0, %v1646_v51  ;;  %v5829_v23 = vand.u32 2147483647, %v5794_v28  ;;  %v2749_v22 = vadd.s32 4294967294, %v2311_v50 }
 0x448   : > { %vm5413_vm10 = vcmp.le.f32.partialorder %v5826_v16, 0.7853982  ;;  %vm1551_vm3 = vcmp.eq.s32.totalorder %v1549_v26, 0  ;;  %v1552_v6 = vxor.u32 2147483648, %v2964_v47  ;;  %v1555_v3 = vxor.u32 2147483648, %v2962_v34 }
 0x449   : > { %vm5421_vm1 = vcmp.le.f32.partialorder %v5829_v23, 0.7853982  ;;  %vm2007_vm12 = vcmp.eq.s32.totalorder %v5391_v19, 0  ;;  %vm2010_vm0 = vcmp.eq.s32.totalorder %v5391_v19, 2  ;;  %vm1554_vm5 = vcmp.eq.s32.totalorder %v1549_v26, 2 }
 0x44a   : > { %v2227_v32 = vsel %vm5421_vm1, %v5794_v28, %v2224_v52  ;;  %v2452_v12 = vsel %vm2369_vm2, %v2451_v20, %v2450_v0  ;;  %v2555_v1 = vxor.u32 2147483648, %v2554_v57  ;;  %vm2750_vm4 = vcmp.lt.s32.totalorder %v2749_v22, 0 }
 0x44b   : > { %v1652_v49 = vadd.s32 3, %v1648_v60  ;;  %v2453_v21 = vsub.s32 4, %v5109_v63  ;;  %v2225_v15 = vsub.s32 4, %v5249_v40  ;;  %v2314_v55 = vsel %vm2750_vm4, 0, %v2749_v22 }
 0x44c   : > { %vm1547_vm7 = vweird.f32 %v4479_v11  ;;  %2973 = vcosq.f32 %v2227_v32  ;;  %v2299_v18 = vadd.s32 %v5315_v54, %v5312_v33  ;;  %v2315_v62 = vsub.s32 32, %v2314_v55 }
 0x44d   : > { %v2319_v30 = vsub.s32 4294967266, %v2314_v55  ;;  %v1553_v2 = vsel %vm1551_vm3, %v2962_v34, %v1552_v6  ;;  %v1556_v17 = vsel %vm1554_vm5, %v1555_v3, %v2964_v47  ;;  %v2455_v56 = vsel %vm5413_vm10, %v5772_v24, %v2452_v12  ;;  %v2966_v14 = vpop.eup %2965 }
 0x44e   : > { %2975 = vsinq.f32 %v2227_v32  ;;  %vm2006_vm13 = vcmp.lt.s32.totalorder %v5391_v19, 2  ;;  %v2556_v4 = vsel %vm2473_vm11, %v2555_v1, %v2554_v57  ;;  %v2316_v44 = vshll.u32 %v5378_v36, %v2314_v55  ;;  %v2968_v54 = vpop.eup %2967  ;;  %v1665_v1 = vpop.permute.xlu0 %1664 }
 0x44f   : > { %v2317_v0 = vshrl.u32 %v2299_v18, %v2315_v62  ;;  %v2320_v33 = vadd.s32 127, %v2319_v30  ;;  %vm1550_vm6 = vcmp.lt.s32.totalorder %v1549_v26, 2  ;;  %v1653_v35 = vand.u32 3, %v1652_v49 }
 0x450   : > { %v5832_v38 = vand.u32 2147483647, %v5786_v42  ;;  %v2226_v34 = vsel %vm2141_vm8, %v2225_v15, %v5249_v40  ;;  %v2454_v53 = vsel %vm2369_vm2, %v2453_v21, %v5109_v63  ;;  %2977 = vcosq.f32 %v2455_v56  ;;  %v2970_v58 = vpop.eup %2969 }
 0x451   : > { %v2318_v36 = vor.u32 %v2317_v0, %v2316_v44  ;;  %v2321_v46 = vshll.u32 %v2320_v33, 23  ;;  %v1557_v8 = vsel %vm1550_vm6, %v1553_v2, %v1556_v17  ;;  %2979 = vsinq.f32 %v2455_v56  ;;  %v2972_v51 = vpop.eup %2971 }
 0x452   : > { %vm5447_vm14 = vcmp.le.f32.partialorder %v5832_v38, 0.7853982  ;;  %v2557_v47 = vsub.s32 4, %v5835_v43  ;;  %vm2111_vm15 = vcmp.eq.s32.totalorder %v5393_v10, 0  ;;  %vm2114_vm9 = vcmp.eq.s32.totalorder %v5393_v10, 2 }
 0x453   : > { %v2559_v26 = vsel %vm5447_vm14, %v5786_v42, %v2556_v4  ;;  %v1656_v40 = vxor.u32 2147483648, %v2968_v54  ;;  %v1659_v20 = vxor.u32 2147483648, %v2966_v14  ;;  %v2228_v63 = vsel %vm5421_vm1, 0, %v2226_v34 }
 0x454   : > { %v2322_v57 = vor.u32 4788187, %v2321_v46  ;;  %v2009_v52 = vsel %vm2007_vm12, %v5278_v37, %v2008_v13  ;;  %v2012_v50 = vsel %vm2010_vm0, %v2011_v48, %v5319_v61  ;;  %vm1651_vm2 = vweird.f32 %v5819_v59 }
 0x455   : > { %vm1655_vm8 = vcmp.eq.s32.totalorder %v1653_v35, 0  ;;  %vm1658_vm3 = vcmp.eq.s32.totalorder %v1653_v35, 2  ;;  %v2456_v16 = vsel %vm5413_vm10, 0, %v2454_v53  ;;  %2981 = vcosq.f32 %v2559_v26 }
 0x456   : > { %v2323_v60 = vand.u32 2147483647, %v2322_v57  ;;  %v2325_v23 = vcvt.s32.f32 %v2318_v36  ;;  %v1558_v29 = vsel %vm1547_vm7, nan, %v1557_v8  ;;  %v2558_v37 = vsel %vm2473_vm11, %v2557_v47, %v5835_v43  ;;  %v2974_v61 = vpop.eup %2973  ;;  %v5838_v8 = vld [vmem:[#allocation17_spill] sm:$0xff]  ;;  %v2121_v57 = vpop.permute.xlu1 %2120 }
 0x457   : > { %2983 = vsinq.f32 %v2559_v26  ;;  %v2232_v13 = vadd.s32 3, %v2228_v63  ;;  %vm2003_vm1 = vweird.f32 %v4232_v5  ;;  %vm2110_vm12 = vcmp.lt.s32.totalorder %v5393_v10, 2 }
 0x458   : > { %v1657_v48 = vsel %vm1655_vm8, %v2966_v14, %v1656_v40  ;;  %v1660_v27 = vsel %vm1658_vm3, %v1659_v20, %v2968_v54  ;;  %v2326_v22 = vmul.f32 %v2325_v23, %v2323_v60  ;;  %v2329_v6 = vsub.s32 4, %v5355_v25  ;;  %v2976_v3 = vpop.eup %2975 }
 0x459   : > { %v2013_v11 = vsel %vm2006_vm13, %v2009_v52, %v2012_v50  ;;  %v2112_v32 = vxor.u32 2147483648, %v2972_v51  ;;  %v2115_v12 = vxor.u32 2147483648, %v2970_v58  ;;  %v2460_v49 = vadd.s32 3, %v2456_v16 }
 0x45a   : > { %vm1654_vm11 = vcmp.lt.s32.totalorder %v1653_v35, 2  ;;  %v1667_v21 = vmul.f32 %v1665_v1, %v1558_v29  ;;  %vm2245_vm10 = vcmp.lt.s32.totalorder %v5806_v31, 0  ;;  %v2327_v15 = vxor.u32 2147483648, %v2326_v22  ;;  %v2978_v19 = vpop.eup %2977  ;;  %v5841_v29 = vld [vmem:[#allocation43_spill] sm:$0xff] }
 0x45b   : > { %v1661_v55 = vsel %vm1654_vm11, %v1657_v48, %v1660_v27  ;;  %v2560_v18 = vsel %vm5447_vm14, 0, %v2558_v37  ;;  %v2233_v62 = vand.u32 3, %v2232_v13  ;;  %vm5489_vm0 = vcmp.le.f32.partialorder %v2243_v39, 0.7853982  ;;  %v2980_v4 = vpop.eup %2979  ;;  %v2349_v13 = vpop.permute.xlu0 %2348 }
 0x45c   : > { %v2236_v2 = vxor.u32 2147483648, %v2976_v3  ;;  %v2239_v17 = vxor.u32 2147483648, %v2974_v61  ;;  %v2328_v56 = vsel %vm2245_vm10, %v2327_v15, %v2326_v22  ;;  %v2330_v14 = vsel %vm2245_vm10, %v2329_v6, %v5355_v25 }
 0x45d   : > { %v2113_v44 = vsel %vm2111_vm15, %v2970_v58, %v2112_v32  ;;  %v2116_v0 = vsel %vm2114_vm9, %v2115_v12, %v2972_v51  ;;  %v2461_v33 = vand.u32 3, %v2460_v49  ;;  %v2331_v39 = vsel %vm5489_vm0, %v5806_v31, %v2328_v56  ;;  %v5839_v51 = vld [vmem:[#allocation44_spill] sm:$0xff]  ;;  %v2577_v49 = vpop.permute.xlu1 %2576 }
 0x45e   : > { %v1662_v54 = vsel %vm1651_vm2, nan, %v1661_v55  ;;  %v1669_v35 = vadd.f32 %v1667_v21, %v5396_v45  ;;  %v2564_v38 = vadd.s32 3, %v2560_v18  ;;  %2985 = vcosq.f32 %v2331_v39 }
 0x45f   : > { %vm2235_vm5 = vcmp.eq.s32.totalorder %v2233_v62, 0  ;;  %vm2238_vm4 = vcmp.eq.s32.totalorder %v2233_v62, 2  ;;  %v2332_v25 = vsel %vm5489_vm0, 0, %v2330_v14  ;;  %2987 = vsinq.f32 %v2331_v39  ;;  %v2982_v9 = vpop.eup %2981 }
 0x460   : > { %v2464_v34 = vxor.u32 2147483648, %v2980_v4  ;;  %v2467_v53 = vxor.u32 2147483648, %v2978_v19  ;;  %v2237_v36 = vsel %vm2235_vm5, %v2974_v61, %v2236_v2  ;;  %v2240_v46 = vsel %vm2238_vm4, %v2239_v17, %v2976_v3 }
 0x461   : > { %v2984_v58 = vpop.eup %2983  ;;  %v2014_v59 = vsel %vm2003_vm1, nan, %v2013_v11  ;;  %vm2107_vm7 = vweird.f32 %v4420_v41  ;;  %v2117_v45 = vsel %vm2110_vm12, %v2113_v44, %v2116_v0  ;;  %v1442_v43 = vadd.f32 %v5838_v8, %v5389_v7  ;;  %v5840_v7 = vld [vmem:[#allocation19_spill] sm:$0xff]  ;;  %v2587_v44 = vpop.permute.xlu1 %2586 }
 0x462   : > { %vm2463_vm13 = vcmp.eq.s32.totalorder %v2461_v33, 0  ;;  %vm2466_vm6 = vcmp.eq.s32.totalorder %v2461_v33, 2  ;;  %vm2234_vm14 = vcmp.lt.s32.totalorder %v2233_v62, 2  ;;  %v2336_v47 = vadd.s32 3, %v2332_v25 }
 0x463   : > { %v1668_v26 = vmul.f32 %v1665_v1, %v1662_v54  ;;  %v1897_v40 = vadd.f32 %v5839_v51, %v1669_v35  ;;  %v2565_v20 = vand.u32 3, %v2564_v38  ;;  %v2241_v63 = vsel %vm2234_vm14, %v2237_v36, %v2240_v46 }
 0x464   : > { %v2465_v5 = vsel %vm2463_vm13, %v2978_v19, %v2464_v34  ;;  %v2468_v52 = vsel %vm2466_vm6, %v2467_v53, %v2980_v4  ;;  %v2568_v50 = vxor.u32 2147483648, %v2984_v58  ;;  %v2571_v16 = vxor.u32 2147483648, %v2982_v9 }
 0x465   : > { %v2118_v10 = vsel %vm2107_vm7, nan, %v2117_v45  ;;  %v2123_v60 = vmul.f32 %v2121_v57, %v2014_v59  ;;  %v1670_v23 = vadd.f32 %v1668_v26, %v1442_v43  ;;  %vm2231_vm15 = vweird.f32 %v5794_v28 }
 0x466   : > { %v1896_v37 = vmul.f32 %v5841_v29, %v5840_v7  ;;  %vm2462_vm9 = vcmp.lt.s32.totalorder %v2461_v33, 2  ;;  %v2242_v61 = vsel %vm2231_vm15, nan, %v2241_v63  ;;  %v2337_v48 = vand.u32 3, %v2336_v47 }
 0x467   : > { %v2469_v27 = vsel %vm2462_vm9, %v2465_v5, %v2468_v52  ;;  %vm2567_vm2 = vcmp.eq.s32.totalorder %v2565_v20, 0  ;;  %vm2570_vm8 = vcmp.eq.s32.totalorder %v2565_v20, 2  ;;  %v2125_v22 = vadd.f32 %v2123_v60, %v1897_v40 }
 0x468   : > { %v2986_v6 = vpop.eup %2985  ;;  %v2124_v3 = vmul.f32 %v2121_v57, %v2118_v10  ;;  %v2569_v11 = vsel %vm2567_vm2, %v2982_v9, %v2568_v50  ;;  %v2572_v41 = vsel %vm2570_vm8, %v2571_v16, %v2984_v58  ;;  %v1898_v12 = vadd.f32 %v1896_v37, %v1670_v23 }
 0x469   : > { %v2988_v32 = vpop.eup %2987  ;;  %vm2459_vm3 = vweird.f32 %v5772_v24  ;;  %v2343_v28 = vxor.u32 2147483648, %v2986_v6  ;;  %v2351_v1 = vmul.f32 %v2349_v13, %v2242_v61  ;;  %vm2566_vm1 = vcmp.lt.s32.totalorder %v2565_v20, 2 }
 0x46a   : > { %v2470_v21 = vsel %vm2459_vm3, nan, %v2469_v27  ;;  %v2340_v15 = vxor.u32 2147483648, %v2988_v32  ;;  %vm2342_vm12 = vcmp.eq.s32.totalorder %v2337_v48, 2  ;;  %v2573_v55 = vsel %vm2566_vm1, %v2569_v11, %v2572_v41 }
 0x46b   : > { %vm2339_vm11 = vcmp.eq.s32.totalorder %v2337_v48, 0  ;;  %v2344_v18 = vsel %vm2342_vm12, %v2343_v28, %v2988_v32  ;;  %v2353_v62 = vadd.f32 %v2351_v1, %v2125_v22  ;;  %vm2563_vm10 = vweird.f32 %v5786_v42 }
 0x46c   : > { %vm2338_vm0 = vcmp.lt.s32.totalorder %v2337_v48, 2  ;;  %v2341_v30 = vsel %vm2339_vm11, %v2986_v6, %v2340_v15  ;;  %v2579_v19 = vmul.f32 %v2577_v49, %v2470_v21  ;;  %v2126_v2 = vadd.f32 %v2124_v3, %v1898_v12 }
 0x46d   : > { %vm2335_vm5 = vweird.f32 %v5806_v31  ;;  %v2345_v24 = vsel %vm2338_vm0, %v2341_v30, %v2344_v18  ;;  %v2574_v17 = vsel %vm2563_vm10, nan, %v2573_v55 }
 0x46e   : > { %v2346_v56 = vsel %vm2335_vm5, nan, %v2345_v24  ;;  %v2581_v4 = vadd.f32 %v2579_v19, %v2353_v62  ;;  %v2580_v0 = vmul.f32 %v2577_v49, %v2574_v17 }
 0x46f   : > { %v2352_v14 = vmul.f32 %v2349_v13, %v2346_v56 }
 0x470   : > { %v2589_v54 = vadd.f32 %v2587_v44, %v2581_v4 }
 0x471   : > { %v2354_v33 = vadd.f32 %v2352_v14, %v2126_v2 }
 0x473   : > { %v2582_v39 = vadd.f32 %v2580_v0, %v2354_v33 }
 0x475   : > { %v2590_v42 = vadd.f32 %v2587_v44, %v2582_v39 }
 0x477   : > { %v2593_v35 = vcombine.low %v2589_v54, %v2590_v42 }
 0x479   : > { %2759 = vst.sshfl [vmem:[%s380_s26] sm:$0x33 pattern:$0x76325410] %v2593_v35 }
 0x47a   : > { %3002 = shalt.err (!%p2999_p3)
}
 0x47b   : > { %s3003_s16 = scalar_lea.hbm %s5527_s12, 64  ;;  %s3007_s25 = scalar_lea.hbm %s5580_s11, 128 }
 0x47c   : > { %p3004_p4 = scmp.ne.s32.totalorder %s5527_s12, %s3003_s16  ;;  %p3008_p9 = scmp.lt.u32.totalorder %s5527_s12, %s5580_s11 }
 0x47d   : > { %p3009_p10 = scmp.lt.u32.totalorder %s3007_s25, %s3003_s16  ;;  %p3011_p12 = scmp.lt.u32.totalorder %s3003_s16, %s5527_s12 }
 0x47e   : > { %p3005_p7 = pnand %p3004_p4, %p3167_p5 }
 0x47f   : > { %p3010_p11 = por %p3009_p10, %p3008_p9 }
 0x480   : > { %p3006_p8 = pneg %p3005_p7 }
 0x481   : > { %p3012_p13 = por %p3011_p12, %p3010_p11 }
 0x483   : > { %p3013_p0 = pnand %p3012_p13, %p3006_p8 }
 0x485   : > { %3016 = shalt.err (!%p3013_p0)
}
 0x486   : > { %2846 = dma.vmem_to_hbm [thread:$0]  (%p3167_p5), %s5529_s24, 64, %s5527_s12, %s2604_s13  }
 0x487 PF: > { %p2852_p1 = scmp.ge.s32.totalorder %s3051_s20, 2  ;;  %s2630_s14 = sand.u32 1, %s3039_s17  }
 0x488   : > { %s2631_s15 = scalar_lea.sflag [#allocation3], %s2630_s14 }
 0x489   : > { %p2849_p2 = pnand %p2852_p1, %p3171_p6 }
 0x48b   : > { %3034 = dma.done.wait (!%p2849_p2), %s2631_s15, 64  }
 0x48c   : > { %3036 = vsyncadd (!%p2849_p2), %s2631_s15, 4294967232  ;;  %s5842_s22 = sld [smem:[#allocation5_spill]]  ;;  %p21_p3 = scmp.ge.s32.totalorder %s3154_s23, 4  }
 0x48d   : > { %s5843_s17 = smov %s3043_s18  ;;  %s5844_s18 = smov %s3047_s19 }
 0x48e   : > { %s5846_s20 = smov %s3154_s23  ;;  %23 = sbr.rel (!%p21_p3) target bundleno = 3 (0x3), region = 99 }
 0x492   : > { %s5845_s19 = smov %s5842_s22 }
 0x495   :  { %2636 = vsyncpa [#allocation3], 1 }
 0x496   :  { %2638 = vsyncpa [#allocation3 + $0x1], 1 }

</bundles_post_ra>
